<compile_context>
chip_gen: v7x
topology: tpu7x:2x2x1
jax: 0.10.0
libtpu: 0.0.40
codegen_flags: <defaults>
</compile_context>

<pallas_src>
import jax
import jax.numpy as jnp
from jax.experimental import pallas as pl
from jax.experimental.pallas import tpu as pltpu

# ---- model configuration (mirrors the training script's module-level constants) ----
SEQ_LEN = 32          # seq_length (small synthetic value)
BATCH = 8             # per-minibatch batch size (rows compared by MinibatchDiscrimination)
N_FEATURES = 1
CV1_OUT = 10
CV1_K = 3
CV1_S = 1
P1_K = 3
P1_S = 2
MINIBATCH = 5         # MinibatchDiscrimination output_features
MB_HIDDEN = 16        # MinibatchDiscrimination hidden_features

CONV_LEN = (SEQ_LEN - CV1_K) // CV1_S + 1                             # 30
CV1_DIMS = int(((SEQ_LEN - CV1_K) / CV1_S + 1 - P1_K) / P1_S + 1)     # 14
FEAT = CV1_DIMS * CV1_OUT                                             # 140
LIN_IN = FEAT + MINIBATCH                                             # 145
MB_TOT = MINIBATCH * MB_HIDDEN                                        # 80

# ---- tiling: minibatches per grid step ----
# T_MB * BATCH is the MXU row dim per step: 16*8=128 fills a v5e pass; use 32 (-> 256) on v6e/v7x.
T_MB = 16
M_BLOCK = T_MB * BATCH                                                # 128
NUM_MB = 32                                                           # minibatches in the example


def discriminator_kernel(x_ref, wc_ref, t_ref, g_ref, wfeat_ref, wmb_ref, linb_ref, out_ref):
    # x_ref:     VMEM (M_BLOCK, SEQ_LEN+1)      rows = T_MB minibatches of BATCH; last col = 1.0
    # wc_ref:    VMEM (P1_K, SEQ_LEN+1, FEAT)   fused conv+maxpool-tap weights (+bias row)
    # t_ref:     VMEM (FEAT, MB_TOT)            MinibatchDiscrimination T.view(F, O*H)
    # g_ref:     VMEM (MB_TOT, MINIBATCH)       group indicator for the per-group L1 sum
    # wfeat_ref: VMEM (1, FEAT)                 final Linear weight, feature half
    # wmb_ref:   VMEM (1, MINIBATCH)            final Linear weight, minibatch half
    # linb_ref:  SMEM (1, 1)                    final Linear bias
    # out_ref:   VMEM (1, 1, M_BLOCK)           sigmoid scores, batch index in lanes (lane-dense)
    x = x_ref[...]                                                     # (M, SEQ+1)

    # Conv1d(1,C,3,1) + ReLU + MaxPool1d(3,2), fully lane-dense on the MXU:
    #   tap_k[r, c*14+p] = conv_pre_relu[r, c, 2p+k]  (bias folded via the ones column of x)
    #   pooled = relu(max_k tap_k)   (ReLU commutes with max)
    # The stride-2 window selection and the torch channel-major flatten are folded into wc on
    # the host, so no strided slices, reshapes, or per-channel loops are needed here.
    t0 = jnp.dot(x, wc_ref[0], preferred_element_type=jnp.float32)     # (M, FEAT)
    t1 = jnp.dot(x, wc_ref[1], preferred_element_type=jnp.float32)
    t2 = jnp.dot(x, wc_ref[2], preferred_element_type=jnp.float32)
    pooled = jnp.maximum(jnp.maximum(jnp.maximum(t0, t1), t2), 0.0)    # (M, FEAT)

    # MinibatchDiscrimination: M = feat @ T, pairwise L1 *within each minibatch of BATCH rows*.
    m = jnp.dot(pooled, t_ref[...], preferred_element_type=jnp.float32)        # (M, O*H)
    mg = m.reshape(T_MB, BATCH, MB_TOT)
    diff = jnp.abs(mg[:, :, None, :] - mg[:, None, :, :])                      # (T, B, B, O*H)
    d = jnp.dot(diff.reshape(T_MB * BATCH * BATCH, MB_TOT), g_ref[...],
                preferred_element_type=jnp.float32)                            # per-group L1
    d = d.reshape(T_MB, BATCH, BATCH, MINIBATCH)
    mb_out = jnp.sum(jnp.exp(-d), axis=2) - 1.0                                # (T, B, O)
    mb_out = mb_out.reshape(M_BLOCK, MINIBATCH)                                # (M, O)

    # Final Linear(145, 1) + Sigmoid, computed lane-dense (batch index in lanes).
    # TODO(synk): torch.nn.Dropout(0.2) before the Sigmoid is identity in eval mode; not applied.
    logit = (jnp.dot(wfeat_ref[...], pooled.T, preferred_element_type=jnp.float32)
             + jnp.dot(wmb_ref[...], mb_out.T, preferred_element_type=jnp.float32)
             + linb_ref[0, 0])                                                 # (1, M)
    pos = logit >= 0.0
    z = jnp.exp(jnp.where(pos, -logit, logit))                                 # exp of non-positive
    sig = jnp.where(pos, 1.0, z) / (1.0 + z)                                   # stable sigmoid
    out_ref[...] = sig[None]                                                   # (1, 1, M)


def _prep_weights(conv_w, conv_b, T, lin_w, lin_b):
    """Host-side (trace-time) weight fusion."""
    conv_w2 = conv_w.reshape(CV1_OUT, CV1_K).astype(jnp.float32)
    conv_b2 = conv_b.reshape(CV1_OUT).astype(jnp.float32)

    # wc[k, 2p+k+j, c*CV1_DIMS+p] = conv_w[c, j];  wc[k, SEQ_LEN, c*CV1_DIMS+p] = conv_b[c]
    p_idx = jnp.arange(CV1_DIMS)
    c_idx = jnp.arange(CV1_OUT)
    col = c_idx[:, None] * CV1_DIMS + p_idx[None, :]                    # (C, P)
    wc = jnp.zeros((P1_K, SEQ_LEN + 1, FEAT), jnp.float32)
    for k in range(P1_K):
        for j in range(CV1_K):
            rows = jnp.broadcast_to((P1_S * p_idx + k + j)[None, :], (CV1_OUT, CV1_DIMS))
            vals = jnp.broadcast_to(conv_w2[:, j][:, None], (CV1_OUT, CV1_DIMS))
            wc = wc.at[k, rows, col].add(vals)
        wc = wc.at[k, SEQ_LEN, :].set(jnp.repeat(conv_b2, CV1_DIMS))

    t2d = T.reshape(FEAT, MB_TOT).astype(jnp.float32)                   # torch T.view(F, O*H)
    # group indicator for the per-group (over hidden) L1 reduction
    g = (jnp.arange(MB_TOT)[:, None] // MB_HIDDEN
         == jnp.arange(MINIBATCH)[None, :]).astype(jnp.float32)         # (O*H, O)

    lw = lin_w.reshape(LIN_IN).astype(jnp.float32)
    w_feat = lw[:FEAT].reshape(1, FEAT)       # torch cat([features, mb_out], 1) order
    w_mb = lw[FEAT:].reshape(1, MINIBATCH)
    lin_b2 = lin_b.reshape(1, 1).astype(jnp.float32)
    return wc, t2d, g, w_feat, w_mb, lin_b2


@jax.jit
def discriminator_forward(x, conv_w, conv_b, T, lin_w, lin_b):
    """x: (num_minibatches, BATCH, 1, SEQ_LEN). Returns (num_minibatches, BATCH, 1) scores."""
    num_mb = x.shape[0]
    assert num_mb % T_MB == 0, "num_minibatches must be a multiple of T_MB"
    num_steps = num_mb // T_MB
    total = num_mb * BATCH

    x2 = x.reshape(total, SEQ_LEN).astype(jnp.float32)
    x_aug = jnp.concatenate([x2, jnp.ones((total, 1), jnp.float32)], axis=1)   # bias column
    wc, t2d, g, w_feat, w_mb, lin_b2 = _prep_weights(conv_w, conv_b, T, lin_w, lin_b)

    def resident(shape):  # weight stays in the same VMEM block for every grid step
        nd = len(shape)
        return pl.BlockSpec(shape, lambda i, nd=nd: (0,) * nd)

    out = pl.pallas_call(
        discriminator_kernel,
        out_shape=jax.ShapeDtypeStruct((num_steps, 1, M_BLOCK), jnp.float32),
        grid=(num_steps,),
        in_specs=[
            pl.BlockSpec((M_BLOCK, SEQ_LEN + 1), lambda i: (i, 0)),
            resident(wc.shape),
            resident(t2d.shape),
            resident(g.shape),
            resident(w_feat.shape),
            resident(w_mb.shape),
            pl.BlockSpec((1, 1), lambda i: (0, 0), memory_space=pltpu.MemorySpace.SMEM),
        ],
        out_specs=pl.BlockSpec((1, 1, M_BLOCK), lambda i: (i, 0, 0)),
        compiler_params=pltpu.CompilerParams(dimension_semantics=("parallel",)),
    )(x_aug, wc, t2d, g, w_feat, w_mb, lin_b2)

    return out.reshape(num_mb, BATCH, 1)


def reference_forward(x, conv_w, conv_b, T, lin_w, lin_b):
    """Plain-JAX forward of the torch Discriminator, applied per minibatch."""
    g_, b_ = x.shape[0], x.shape[1]
    xs = x.reshape(g_ * b_, SEQ_LEN).astype(jnp.float32)
    w = conv_w.reshape(CV1_OUT, CV1_K)
    taps = jnp.stack([xs[:, j:j + CONV_LEN] for j in range(CV1_K)], axis=-1)   # (N, 30, 3)
    conv = jnp.einsum("nlk,ck->ncl", taps, w) + conv_b.reshape(1, CV1_OUT, 1)
    conv = jnp.maximum(conv, 0.0)
    pooled = jnp.stack(
        [conv[:, :, P1_S * p:P1_S * p + P1_K].max(axis=-1) for p in range(CV1_DIMS)],
        axis=-1)                                                               # (N, C, 14)
    feat = pooled.reshape(g_ * b_, FEAT)
    m = feat @ T.reshape(FEAT, MB_TOT)
    mg = m.reshape(g_, b_, MINIBATCH, MB_HIDDEN)
    l1 = jnp.abs(mg[:, :, None] - mg[:, None, :]).sum(-1)                      # (G, B, B, O)
    mb = jnp.exp(-l1).sum(axis=1) - 1.0                                        # (G, B, O)
    cat = jnp.concatenate([feat.reshape(g_, b_, FEAT), mb], axis=-1)           # (G, B, 145)
    logit = jnp.einsum("gbf,f->gb", cat, lin_w.reshape(LIN_IN)) + lin_b.reshape(())
    return jax.nn.sigmoid(logit)[..., None]


if __name__ == "__main__":
    key = jax.random.PRNGKey(0)
    k_x, k_cw, k_cb, k_t, k_lw, k_lb = jax.random.split(key, 6)

    # deterministic synthetic parameters (shapes from Discriminator.__init__)
    x = jax.random.normal(k_x, (NUM_MB, BATCH, N_FEATURES, SEQ_LEN), dtype=jnp.float32)
    conv_w = jax.random.normal(k_cw, (CV1_OUT, N_FEATURES, CV1_K), dtype=jnp.float32) * 0.1
    conv_b = jax.random.normal(k_cb, (CV1_OUT,), dtype=jnp.float32) * 0.1
    T = jax.random.normal(k_t, (FEAT, MINIBATCH, MB_HIDDEN), dtype=jnp.float32) * 0.02
    lin_w = jax.random.normal(k_lw, (1, LIN_IN), dtype=jnp.float32) * 0.1
    lin_b = jax.random.normal(k_lb, (1,), dtype=jnp.float32) * 0.1

    out = discriminator_forward(x, conv_w, conv_b, T, lin_w, lin_b)
    out = jax.block_until_ready(out)
    assert out.shape == (NUM_MB, BATCH, 1)
    assert bool(jnp.all(jnp.isfinite(out)))
    assert bool(jnp.all((out >= 0.0) & (out <= 1.0)))

    ref = jax.block_until_ready(reference_forward(x, conv_w, conv_b, T, lin_w, lin_b))
    max_err = float(jnp.max(jnp.abs(out - ref)))
    assert max_err < 2e-2, f"max abs error vs reference: {max_err}"
    print("KERNEL_OK")
</pallas_src>

<mosaic_0001>
module attributes {stable_mosaic.version = 11 : i64} {
  func.func @discriminator_kernel(%arg0: i32, %arg1: memref<128x33xf32, #tpu.memory_space<vmem>>, %arg2: memref<3x33x140xf32, #tpu.memory_space<vmem>>, %arg3: memref<140x80xf32, #tpu.memory_space<vmem>>, %arg4: memref<80x5xf32, #tpu.memory_space<vmem>>, %arg5: memref<1x140xf32, #tpu.memory_space<vmem>>, %arg6: memref<1x5xf32, #tpu.memory_space<vmem>>, %arg7: memref<1x1xf32, #tpu.memory_space<smem>>, %arg8: memref<1x1x128xf32, #tpu.memory_space<vmem>>) attributes {dimension_semantics = [#tpu.dimension_semantics<parallel>], iteration_bounds = array<i64: 2>, scalar_prefetch = 0 : i64, scratch_operands = 0 : i64, tpu.core_type = #tpu.core_type<tc>, window_params = [{transform_indices = @transform_0, window_bounds = array<i64: 128, 33>}, {pipeline_mode = #tpu.pipeline_mode<synchronous>, transform_indices = @transform_1, window_bounds = array<i64: 3, 33, 140>}, {pipeline_mode = #tpu.pipeline_mode<synchronous>, transform_indices = @transform_2, window_bounds = array<i64: 140, 80>}, {pipeline_mode = #tpu.pipeline_mode<synchronous>, transform_indices = @transform_3, window_bounds = array<i64: 80, 5>}, {pipeline_mode = #tpu.pipeline_mode<synchronous>, transform_indices = @transform_4, window_bounds = array<i64: 1, 140>}, {pipeline_mode = #tpu.pipeline_mode<synchronous>, transform_indices = @transform_5, window_bounds = array<i64: 1, 5>}, {transform_indices = @transform_6, window_bounds = array<i64: 1, 1>}, {transform_indices = @transform_7, window_bounds = array<i64: 1, 1, 128>}]} {
    %c0 = arith.constant 0 : index
    %c0_0 = arith.constant 0 : index
    %0 = vector.load %arg1[%c0, %c0_0] : memref<128x33xf32, #tpu.memory_space<vmem>>, vector<128x33xf32>
    %c0_1 = arith.constant 0 : index
    %c0_2 = arith.constant 0 : index
    %c0_3 = arith.constant 0 : index
    %1 = vector.load %arg2[%c0_1, %c0_2, %c0_3] : memref<3x33x140xf32, #tpu.memory_space<vmem>>, vector<1x33x140xf32>
    %2 = vector.shape_cast %1 : vector<1x33x140xf32> to vector<33x140xf32>
    %cst = arith.constant dense<0.000000e+00> : vector<128x140xf32>
    %3 = tpu.matmul %0, %2, %cst {dimension_numbers = #tpu.dot_dimension_numbers<[1], [0], [0], [1], [0, 0, 1, 1], [], []>} : vector<128x33xf32>, vector<33x140xf32>, vector<128x140xf32> -> vector<128x140xf32>
    %c1 = arith.constant 1 : index
    %c0_4 = arith.constant 0 : index
    %c0_5 = arith.constant 0 : index
    %4 = vector.load %arg2[%c1, %c0_4, %c0_5] : memref<3x33x140xf32, #tpu.memory_space<vmem>>, vector<1x33x140xf32>
    %5 = vector.shape_cast %4 : vector<1x33x140xf32> to vector<33x140xf32>
    %cst_6 = arith.constant dense<0.000000e+00> : vector<128x140xf32>
    %6 = tpu.matmul %0, %5, %cst_6 {dimension_numbers = #tpu.dot_dimension_numbers<[1], [0], [0], [1], [0, 0, 1, 1], [], []>} : vector<128x33xf32>, vector<33x140xf32>, vector<128x140xf32> -> vector<128x140xf32>
    %c2 = arith.constant 2 : index
    %c0_7 = arith.constant 0 : index
    %c0_8 = arith.constant 0 : index
    %7 = vector.load %arg2[%c2, %c0_7, %c0_8] : memref<3x33x140xf32, #tpu.memory_space<vmem>>, vector<1x33x140xf32>
    %8 = vector.shape_cast %7 : vector<1x33x140xf32> to vector<33x140xf32>
    %cst_9 = arith.constant dense<0.000000e+00> : vector<128x140xf32>
    %9 = tpu.matmul %0, %8, %cst_9 {dimension_numbers = #tpu.dot_dimension_numbers<[1], [0], [0], [1], [0, 0, 1, 1], [], []>} : vector<128x33xf32>, vector<33x140xf32>, vector<128x140xf32> -> vector<128x140xf32>
    %10 = arith.maximumf %3, %6 : vector<128x140xf32>
    %11 = arith.maximumf %10, %9 : vector<128x140xf32>
    %cst_10 = arith.constant 0.000000e+00 : f32
    %12 = vector.broadcast %cst_10 : f32 to vector<128x140xf32>
    %13 = arith.maximumf %11, %12 : vector<128x140xf32>
    %c0_11 = arith.constant 0 : index
    %c0_12 = arith.constant 0 : index
    %14 = vector.load %arg3[%c0_11, %c0_12] : memref<140x80xf32, #tpu.memory_space<vmem>>, vector<140x80xf32>
    %cst_13 = arith.constant dense<0.000000e+00> : vector<128x80xf32>
    %15 = tpu.matmul %13, %14, %cst_13 {dimension_numbers = #tpu.dot_dimension_numbers<[1], [0], [0], [1], [0, 0, 1, 1], [], []>} : vector<128x140xf32>, vector<140x80xf32>, vector<128x80xf32> -> vector<128x80xf32>
    %16 = vector.shape_cast %15 : vector<128x80xf32> to vector<16x8x80xf32>
    %17 = vector.shape_cast %16 : vector<16x8x80xf32> to vector<16x8x1x80xf32>
    %18 = vector.shape_cast %16 : vector<16x8x80xf32> to vector<16x1x8x80xf32>
    %19 = vector.broadcast %17 : vector<16x8x1x80xf32> to vector<16x8x8x80xf32>
    %20 = vector.broadcast %18 : vector<16x1x8x80xf32> to vector<16x8x8x80xf32>
    %21 = arith.subf %19, %20 : vector<16x8x8x80xf32>
    %22 = math.absf %21 : vector<16x8x8x80xf32>
    %23 = vector.shape_cast %22 : vector<16x8x8x80xf32> to vector<1024x80xf32>
    %c0_14 = arith.constant 0 : index
    %c0_15 = arith.constant 0 : index
    %24 = vector.load %arg4[%c0_14, %c0_15] : memref<80x5xf32, #tpu.memory_space<vmem>>, vector<80x5xf32>
    %cst_16 = arith.constant dense<0.000000e+00> : vector<1024x5xf32>
    %25 = tpu.matmul %23, %24, %cst_16 {dimension_numbers = #tpu.dot_dimension_numbers<[1], [0], [0], [1], [0, 0, 1, 1], [], []>} : vector<1024x80xf32>, vector<80x5xf32>, vector<1024x5xf32> -> vector<1024x5xf32>
    %26 = vector.shape_cast %25 : vector<1024x5xf32> to vector<16x8x8x5xf32>
    %cst_17 = arith.constant 0.000000e+00 : f32
    %27 = vector.broadcast %cst_17 : f32 to vector<16x8x8x5xf32>
    %28 = arith.subf %27, %26 : vector<16x8x8x5xf32>
    %29 = math.exp %28 : vector<16x8x8x5xf32>
    %cst_18 = arith.constant dense<0.000000e+00> : vector<16x8x5xf32>
    %30 = vector.multi_reduction <add>, %29, %cst_18 [2] : vector<16x8x8x5xf32> to vector<16x8x5xf32>
    %cst_19 = arith.constant 1.000000e+00 : f32
    %31 = vector.broadcast %cst_19 : f32 to vector<16x8x5xf32>
    %32 = arith.subf %30, %31 : vector<16x8x5xf32>
    %33 = vector.shape_cast %32 : vector<16x8x5xf32> to vector<128x5xf32>
    %c0_20 = arith.constant 0 : index
    %c0_21 = arith.constant 0 : index
    %34 = vector.load %arg5[%c0_20, %c0_21] : memref<1x140xf32, #tpu.memory_space<vmem>>, vector<1x140xf32>
    %35 = tpu.transpose %13, [1, 0] : vector<128x140xf32> -> vector<140x128xf32>
    %cst_22 = arith.constant dense<0.000000e+00> : vector<1x128xf32>
    %36 = tpu.matmul %34, %35, %cst_22 {dimension_numbers = #tpu.dot_dimension_numbers<[1], [0], [0], [1], [0, 0, 1, 1], [], []>} : vector<1x140xf32>, vector<140x128xf32>, vector<1x128xf32> -> vector<1x128xf32>
    %c0_23 = arith.constant 0 : index
    %c0_24 = arith.constant 0 : index
    %37 = vector.load %arg6[%c0_23, %c0_24] : memref<1x5xf32, #tpu.memory_space<vmem>>, vector<1x5xf32>
    %38 = tpu.transpose %33, [1, 0] : vector<128x5xf32> -> vector<5x128xf32>
    %cst_25 = arith.constant dense<0.000000e+00> : vector<1x128xf32>
    %39 = tpu.matmul %37, %38, %cst_25 {dimension_numbers = #tpu.dot_dimension_numbers<[1], [0], [0], [1], [0, 0, 1, 1], [], []>} : vector<1x5xf32>, vector<5x128xf32>, vector<1x128xf32> -> vector<1x128xf32>
    %40 = arith.addf %36, %39 : vector<1x128xf32>
    %c0_26 = arith.constant 0 : index
    %c0_27 = arith.constant 0 : index
    %41 = memref.load %arg7[%c0_26, %c0_27] : memref<1x1xf32, #tpu.memory_space<smem>>
    %42 = vector.broadcast %41 : f32 to vector<1x128xf32>
    %43 = arith.addf %40, %42 : vector<1x128xf32>
    %cst_28 = arith.constant 0.000000e+00 : f32
    %44 = vector.broadcast %cst_28 : f32 to vector<1x128xf32>
    %45 = arith.cmpf oge, %43, %44 : vector<1x128xf32>
    %cst_29 = arith.constant 0.000000e+00 : f32
    %46 = vector.broadcast %cst_29 : f32 to vector<1x128xf32>
    %47 = arith.subf %46, %43 : vector<1x128xf32>
    %48 = arith.select %45, %47, %43 : vector<1x128xi1>, vector<1x128xf32>
    %49 = math.exp %48 : vector<1x128xf32>
    %cst_30 = arith.constant 1.000000e+00 : f32
    %50 = vector.broadcast %cst_30 : f32 to vector<1x128xf32>
    %51 = arith.select %45, %50, %49 : vector<1x128xi1>, vector<1x128xf32>
    %cst_31 = arith.constant 1.000000e+00 : f32
    %52 = vector.broadcast %cst_31 : f32 to vector<1x128xf32>
    %53 = arith.addf %52, %49 : vector<1x128xf32>
    %54 = arith.divf %51, %53 : vector<1x128xf32>
    %55 = vector.shape_cast %54 : vector<1x128xf32> to vector<1x1x128xf32>
    %c0_32 = arith.constant 0 : index
    %c0_33 = arith.constant 0 : index
    %c0_34 = arith.constant 0 : index
    %56 = vector.load %arg8[%c0_32, %c0_33, %c0_34] : memref<1x1x128xf32, #tpu.memory_space<vmem>>, vector<1x1x128xf32>
    tpu.vector_store %arg8[%c0_32, %c0_33, %c0_34], %55 {strides = array<i32>} : memref<1x1x128xf32, #tpu.memory_space<vmem>>, vector<1x1x128xf32>,
    return
  }
  func.func @transform_0(%arg0: i32) -> (i32, i32) {
    %c0_i32 = arith.constant 0 : i32
    %c0_i32_0 = arith.constant 0 : i32
    return %arg0, %c0_i32 : i32, i32
  }
  func.func @transform_1(%arg0: i32) -> (i32, i32, i32) {
    %c0_i32 = arith.constant 0 : i32
    %c0_i32_0 = arith.constant 0 : i32
    %c0_i32_1 = arith.constant 0 : i32
    %c0_i32_2 = arith.constant 0 : i32
    return %c0_i32, %c0_i32_0, %c0_i32_1 : i32, i32, i32
  }
  func.func @transform_2(%arg0: i32) -> (i32, i32) {
    %c0_i32 = arith.constant 0 : i32
    %c0_i32_0 = arith.constant 0 : i32
    %c0_i32_1 = arith.constant 0 : i32
    return %c0_i32, %c0_i32_0 : i32, i32
  }
  func.func @transform_3(%arg0: i32) -> (i32, i32) {
    %c0_i32 = arith.constant 0 : i32
    %c0_i32_0 = arith.constant 0 : i32
    %c0_i32_1 = arith.constant 0 : i32
    return %c0_i32, %c0_i32_0 : i32, i32
  }
  func.func @transform_4(%arg0: i32) -> (i32, i32) {
    %c0_i32 = arith.constant 0 : i32
    %c0_i32_0 = arith.constant 0 : i32
    %c0_i32_1 = arith.constant 0 : i32
    return %c0_i32, %c0_i32_0 : i32, i32
  }
  func.func @transform_5(%arg0: i32) -> (i32, i32) {
    %c0_i32 = arith.constant 0 : i32
    %c0_i32_0 = arith.constant 0 : i32
    %c0_i32_1 = arith.constant 0 : i32
    return %c0_i32, %c0_i32_0 : i32, i32
  }
  func.func @transform_6(%arg0: i32) -> (i32, i32) {
    %c0_i32 = arith.constant 0 : i32
    %c0_i32_0 = arith.constant 0 : i32
    %c0_i32_1 = arith.constant 0 : i32
    return %c0_i32, %c0_i32_0 : i32, i32
  }
  func.func @transform_7(%arg0: i32) -> (i32, i32, i32) {
    %c0_i32 = arith.constant 0 : i32
    %c0_i32_0 = arith.constant 0 : i32
    %c0_i32_1 = arith.constant 0 : i32
    return %arg0, %c0_i32, %c0_i32_0 : i32, i32, i32
  }
}

</mosaic_0001>

<bundles_post_ra>
// kernel: discriminator_forward.1
= control target key start
LH: loop header
LB: loop body
LE: loop exit
PB: predicated region body
PF: predicated region fallthrough
CT: control target
= control target key end

     0   :  { %s7165_s26 = smov 0   ;;  %s9622_s0 = inlined_call_operand.vmem [shape: f32[256,33], index: 0, kind: input, shape index: {}]   ;;  %s9623_s1 = inlined_call_operand.vmem [shape: f32[3,33,140], index: 1, kind: input, shape index: {}]   ;;  %s9624_s2 = inlined_call_operand.vmem [shape: f32[140,80], index: 2, kind: input, shape index: {}]   ;;  %s9625_s3 = inlined_call_operand.vmem [shape: f32[80,5], index: 3, kind: input, shape index: {}]   ;;  %s9626_s4 = inlined_call_operand.vmem [shape: f32[1,140], index: 4, kind: input, shape index: {}]   ;;  %s9627_s5 = inlined_call_operand.vmem [shape: f32[1,5], index: 5, kind: input, shape index: {}]   ;;  %s9628_s6 = inlined_call_operand.<no memory space> [shape: f32[1,1], index: 6, kind: input, shape index: {}]   ;;  %s9629_s7 = inlined_call_operand.vmem [shape: f32[2,1,128], index: 7, kind: output, shape index: {}]  }
   0x1   :  { %12 = sst [smem:[#allocation2]] %s9628_s6 }
   0x2 LB: > { %s7171_s27 = sadd.s32 4294967295, %s7115_s26   ;;  %p5894_p0 = scmp.ge.s32.totalorder %s7115_s26, 1  ;;  %s7115_s26 = sphi %s7165_s26, %s18_s26  }
   0x3   : > { %p239_p1 = scmp.lt.s32.totalorder %s7115_s26, 3 }
   0x5   : > { %p240_p2 = pnand %p5894_p0, %p239_p1 }
   0x7   : > { %243 = sbr.rel (%p240_p2) target bundleno = 1489 (0x5d1), region = 48 }
   0xe   : > { %v295_v0 = vld [vmem:[%s9623_s1 + $0x8] sm:$0xff]  ;;  %v297_v1 = vld [vmem:[%s9623_s1 + $0x18] sm:$0xff]  ;;  %s5895_s10 = sshll.u32 %s7171_s27, 4  ;;  %v294_v5 = vld [vmem:[%s9623_s1] sm:$0xff]  ;;  %v9630_v7 = vmov 0.0   ;;  %vm353_vm0 = vcmask 1040384  }
   0xf   : > { %v5916_v2 = vld [vmem:[%s9623_s1 + $0x58] sm:$0xff]  ;;  %v6682_v3 = vpack.c.bf16 %v297_v1, %v295_v0  ;;  %v5918_v4 = vld [vmem:[%s9623_s1 + $0x68] sm:$0xff]  ;;  %v296_v6 = vld [vmem:[%s9623_s1 + $0x10] sm:$0xff]  ;;  %424 = vmatprep.mubr.f32.mxu0 %v9630_v7  ;;  %602 = vmatprep.mubr.f32.mxu1 %v9630_v7  ;;  %p270_p3 = scmp.lt.s32.totalorder %s5895_s10, 31  ;;  %vm304_vm1 = vcmask 269312   ;;  %v9631_v59 = vmov 0.0|0.0  }
  0x10   : > { %v6690_v8 = vpack.c.bf16 %v5918_v4, %v5916_v2  ;;  %v6684_v9 = vpack.c.bf16 %v296_v6, %v294_v5  ;;  %v5915_v10 = vld [vmem:[%s9623_s1 + $0x50] sm:$0xff]  ;;  %v5917_v11 = vld [vmem:[%s9623_s1 + $0x60] sm:$0xff]  ;;  %v299_v12 = vld [vmem:[%s9623_s1 + $0x28] sm:$0xff]  ;;  %vm1040_vm2 = vcmask 1043456   ;;  %vm7119_vm3 = vmmov 1   ;;  %s5830_s20 = sld [smem:[#allocation2]] }
  0x11   : > { %6683 = vmatprep.subr.bf16.mxu0 %v6682_v3  ;;  %v6692_v13 = vpack.c.bf16 %v5917_v11, %v5915_v10  ;;  %v301_v14 = vld [vmem:[%s9623_s1 + $0x38] sm:$0xff]  ;;  %v5922_v16 = vld [vmem:[%s9623_s1 + $0x88] sm:$0xff]  ;;  %s9938_s10 = smov (!%p270_p3, %s5895_s10), 31  ;;  %v298_v19 = vld [vmem:[%s9623_s1 + $0x20] sm:$0xff]  ;;  %vm991_vm5 = vcmask 97280   ;;  %vm2895_vm6 = vcmask 654336  }
  0x12   : > { %v5920_v15 = vld [vmem:[%s9623_s1 + $0x78] sm:$0xff]  ;;  %6691 = vmatprep.subr.bf16.mxu1 %v6690_v8  ;;  %6685 = vmatpush1.bf16.msra.mxu0 %v6684_v9  ;;  %v6686_v17 = vpack.c.bf16 %v301_v14, %v299_v12  ;;  %v300_v20 = vld [vmem:[%s9623_s1 + $0x30] sm:$0xff]  ;;  %v5921_v23 = vld [vmem:[%s9623_s1 + $0x80] sm:$0xff]  ;;  %s5896_s16 = sshll.u32 %s9938_s10, 3  ;;  %vm4369_vm7 = vcmask 39936   ;;  %vm5524_vm8 = vcmask 1041409  }
  0x13   : > { %v6694_v18 = vpack.c.bf16 %v5922_v16, %v5920_v15  ;;  %v5919_v21 = vld [vmem:[%s9623_s1 + $0x70] sm:$0xff]  ;;  %6693 = vmatpush1.bf16.msra.mxu1 %v6692_v13  ;;  %v6688_v22 = vpack.c.bf16 %v300_v20, %v298_v19  ;;  %v303_v25 = vld [vmem:[%s9623_s1 + $0x48] sm:$0x1]  ;;  %v5924_v26 = vld [vmem:[%s9623_s1 + $0x98] sm:$0x1]  ;;  %s7235_s23 = scalar_lea.vmem %s9622_s0, %s5896_s16  ;;  %vm5526_vm9 = vcmask 1042434  }
  0x14   : > { %6687 = vmatprep.subr.bf16.mxu0 %v6686_v17  ;;  %v6696_v24 = vpack.c.bf16 %v5921_v23, %v5919_v21  ;;  %v5944_v27 = vld [vmem:[%s9623_s1 + $0xa8] sm:$0xff]  ;;  %v5946_v28 = vld [vmem:[%s9623_s1 + $0xb8] sm:$0xff]  ;;  %v302_v29 = vld [vmem:[%s9623_s1 + $0x40] sm:$0x1]  ;;  %vm5528_vm10 = vcmask 1043459   ;;  %vm5530_vm11 = vcmask 1044484  }
  0x15   : > { %6695 = vmatprep.subr.bf16.mxu1 %v6694_v18  ;;  %v5943_v30 = vld [vmem:[%s9623_s1 + $0xa0] sm:$0xff]  ;;  %v5945_v31 = vld [vmem:[%s9623_s1 + $0xb0] sm:$0xff]  ;;  %v6698_v34 = vpack.c.bf16 %v5946_v28, %v5944_v27  ;;  %v5948_v35 = vld [vmem:[%s9623_s1 + $0xc8] sm:$0xff]  ;;  %vm5532_vm12 = vcmask 1045509   ;;  %vm5534_vm13 = vcmask 1046534   ;;  %vm5536_vm14 = vcmask 1047559  }
  0x16   : > { %6689 = vmatpush1.bf16.msra.mxu0 %v6688_v22  ;;  %v5923_v32 = vld [vmem:[%s9623_s1 + $0x90] sm:$0x1]  ;;  %v7258_v33 = vld [vmem:[%s7235_s23] sm:$0xff]  ;;  %v5950_v36 = vld [vmem:[%s9623_s1 + $0xd8] sm:$0xff]  ;;  %v6700_v37 = vpack.c.bf16 %v5945_v31, %v5943_v30  ;;  %p275_p4 = scmp.lt.s32.totalorder %s7171_s27, 1 }
  0x17   : > { %6697 = vmatpush1.bf16.msra.mxu1 %v6696_v24  ;;  %5897 = vmatprep.subr.msk.mxu0 %vm353_vm0, %v303_v25  ;;  %v6702_v38 = vpack.c.bf16 %v5950_v36, %v5948_v35  ;;  %v5947_v39 = vld [vmem:[%s9623_s1 + $0xc0] sm:$0xff]  ;;  %v5949_v40 = vld [vmem:[%s9623_s1 + $0xd0] sm:$0xff]  ;;  %v7280_v41 = vld [vmem:[%s7235_s23 + $0x8] sm:$0xff] }
  0x18   : > { %5925 = vmatprep.subr.msk.mxu1 %vm353_vm0, %v5924_v26  ;;  %v6704_v42 = vpack.c.bf16 %v5949_v40, %v5947_v39  ;;  %v7289_v43 = vld [vmem:[%s7235_s23 + $0x10] sm:$0xff]  ;;  %v5952_v44 = vld [vmem:[%s9623_s1 + $0xe8] sm:$0x1]  ;;  %v5951_v45 = vld [vmem:[%s9623_s1 + $0xe0] sm:$0x1]  ;;  %s9940_s27 = smov (!%p275_p4, %s7171_s27), 1 }
  0x19   : > { %v7305_v46 = vld [vmem:[%s7235_s23 + $0x18] sm:$0xff]  ;;  %v7315_v47 = vld [vmem:[%s7235_s23 + $0x20] sm:$0xff]  ;;  %v7324_v48 = vld [vmem:[%s7235_s23 + $0x28] sm:$0xff]  ;;  %s277_s10 = scalar_lea.vmem %s9629_s7, %s9940_s27 }
  0x1a   : > { %5898 = vmatpush1.msk.msra.mxu0 %vm353_vm0, %v302_v29  ;;  %v284_v49 = vld [vmem:[%s7235_s23 + $0x30] sm:$0xff]  ;;  %v285_v50 = vld [vmem:[%s7235_s23 + $0x38] sm:$0xff]  ;;  %v286_v51 = vld [vmem:[%s7235_s23 + $0x40] sm:$0xff] }
  0x1b   : > { %5926 = vmatpush1.msk.msra.mxu1 %vm353_vm0, %v5923_v32  ;;  %5899 = vmatmul.mubr.msk.f32.vlgmr.msra.gmra.mrb[0].mxu0 %vm304_vm1, %v7258_v33  ;;  %v287_v52 = vld [vmem:[%s7235_s23 + $0x48] sm:$0xff]  ;;  %v288_v53 = vld [vmem:[%s7235_s23 + $0x50] sm:$0xff]  ;;  %v289_v54 = vld [vmem:[%s7235_s23 + $0x58] sm:$0xff] }
  0x1c   : > { %5927 = vmatmul.mubr.msk.f32.vlgmr.msra.gmra.mrb[0].mxu1 %vm304_vm1, %v7258_v33  ;;  %430 = vmatprep.mubr.f32.mxu0 %v9630_v7  ;;  %v290_v55 = vld [vmem:[%s7235_s23 + $0x60] sm:$0xff]  ;;  %v291_v56 = vld [vmem:[%s7235_s23 + $0x68] sm:$0xff]  ;;  %v292_v57 = vld [vmem:[%s7235_s23 + $0x70] sm:$0xff] }
  0x1d   : > { %608 = vmatprep.mubr.f32.mxu1 %v9630_v7  ;;  %6699 = vmatprep.subr.bf16.mxu0 %v6698_v34  ;;  %v293_v58 = vld [vmem:[%s7235_s23 + $0x78] sm:$0xff]  ;;  %v973_v60 = vld [vmem:[%s9624_s2] sm:$0xff]  ;;  %v974_v61 = vld [vmem:[%s9624_s2 + $0x8] sm:$0xff] }
  0x1e   : > { %6701 = vmatpush1.bf16.msra.mxu0 %v6700_v37  ;;  %6706 = vmatprep.subr.bf16.mxu1 %v9631_v59  ;;  %v6707_v62 = vpack.c.bf16 %v974_v61, %v973_v60  ;;  %v975_v63 = vld [vmem:[%s9624_s2 + $0x10] sm:$0xff]  ;;  %v976_v0 = vld [vmem:[%s9624_s2 + $0x18] sm:$0xff]  ;;  %v977_v2 = vld [vmem:[%s9624_s2 + $0x20] sm:$0xff] }
  0x1f   : > { %5900 = vmatmul.mubr.msk.f32.gmra.mrb[2].mxu0 %vm304_vm1, %v7280_v41  ;;  %6703 = vmatprep.subr.bf16.mxu0 %v6702_v38  ;;  %v6710_v1 = vpack.c.bf16 %v976_v0, %v975_v63  ;;  %v978_v3 = vld [vmem:[%s9624_s2 + $0x28] sm:$0xff]  ;;  %v979_v5 = vld [vmem:[%s9624_s2 + $0x30] sm:$0xff]  ;;  %v980_v6 = vld [vmem:[%s9624_s2 + $0x38] sm:$0xff] }
  0x20   : > { %5928 = vmatmul.mubr.msk.f32.gmra.mrb[2].mxu1 %vm304_vm1, %v7280_v41  ;;  %436 = vmatprep.mubr.f32.mxu0 %v9630_v7  ;;  %v6713_v4 = vpack.c.bf16 %v978_v3, %v977_v2  ;;  %v6716_v8 = vpack.c.bf16 %v980_v6, %v979_v5  ;;  %v981_v9 = vld [vmem:[%s9624_s2 + $0x40] sm:$0xff]  ;;  %v982_v10 = vld [vmem:[%s9624_s2 + $0x48] sm:$0xff]  ;;  %v983_v12 = vld [vmem:[%s9624_s2 + $0x50] sm:$0xff] }
  0x21   : > { %614 = vmatprep.mubr.f32.mxu1 %v9630_v7  ;;  %6708 = vmatpush1.bf16.msra.mxu1 %v6707_v62  ;;  %v6719_v11 = vpack.c.bf16 %v982_v10, %v981_v9  ;;  %v984_v13 = vld [vmem:[%s9624_s2 + $0x58] sm:$0xff]  ;;  %v985_v15 = vld [vmem:[%s9624_s2 + $0x60] sm:$0xff]  ;;  %v986_v16 = vld [vmem:[%s9624_s2 + $0x68] sm:$0xff] }
  0x22   : > { %6705 = vmatpush1.bf16.msra.mxu0 %v6704_v42  ;;  %6709 = vmatprep.subr.bf16.mxu1 %v9631_v59  ;;  %v6722_v14 = vpack.c.bf16 %v984_v13, %v983_v12  ;;  %v6725_v17 = vpack.c.bf16 %v986_v16, %v985_v15  ;;  %v987_v18 = vld [vmem:[%s9624_s2 + $0x70] sm:$0xff]  ;;  %v988_v19 = vld [vmem:[%s9624_s2 + $0x78] sm:$0xff]  ;;  %v989_v21 = vld [vmem:[%s9624_s2 + $0x80] sm:$0xff] }
  0x23   : > { %5901 = vmatmul.mubr.msk.f32.gmra.mrb[4].mxu0 %vm304_vm1, %v7289_v43  ;;  %5953 = vmatprep.subr.msk.mxu0 %vm353_vm0, %v5952_v44  ;;  %v6728_v20 = vpack.c.bf16 %v988_v19, %v987_v18  ;;  %v990_v22 = vld [vmem:[%s9624_s2 + $0x88] sm:$0xf]  ;;  %vm6732_vm4 = vmpackc.low %vm1040_vm2, %vm7119_vm3  ;;  %v2885_v30 = vld [vmem:[%s9625_s3] sm:$0xff] }
  0x24   : > { %5929 = vmatmul.mubr.msk.f32.gmra.mrb[4].mxu1 %vm304_vm1, %v7289_v43  ;;  %442 = vmatprep.mubr.f32.mxu0 %v9630_v7  ;;  %v6731_v23 = vpack.c.bf16 %v990_v22, %v989_v21  ;;  %v2886_v31 = vld [vmem:[%s9625_s3 + $0x8] sm:$0xff]  ;;  %v2887_v32 = vld [vmem:[%s9625_s3 + $0x10] sm:$0xff]  ;;  %v2888_v35 = vld [vmem:[%s9625_s3 + $0x18] sm:$0xff] }
  0x25   : > { %620 = vmatprep.mubr.f32.mxu1 %v9630_v7  ;;  %6711 = vmatpush1.bf16.msra.mxu1 %v6710_v1  ;;  %v7505_v34 = vpack.c.bf16 %v2886_v31, %v2885_v30  ;;  %v7514_v38 = vpack.c.bf16 %v2888_v35, %v2887_v32  ;;  %v2889_v39 = vld [vmem:[%s9625_s3 + $0x20] sm:$0xff]  ;;  %v2890_v40 = vld [vmem:[%s9625_s3 + $0x28] sm:$0xff]  ;;  %vm8945_vm15 = vmpackc.low %vm4369_vm7, %vm4369_vm7 }
  0x26   : > { %5954 = vmatpush1.msk.msra.mxu0 %vm353_vm0, %v5951_v45  ;;  %6712 = vmatprep.subr.bf16.mxu1 %v9631_v59  ;;  %v7534_v45 = vpack.c.bf16 %v2890_v40, %v2889_v39  ;;  %vm7121_vm0 = vmmov 0  }
  0x27   : > { %5902 = vmatmul.mubr.msk.f32.gmra.mrb[6].mxu0 %vm304_vm1, %v7305_v46  ;;  %6735 = vmatprep.subr.bf16.mxu0 %v7505_v34 }
  0x28   : > { %5930 = vmatmul.mubr.msk.f32.gmra.mrb[6].mxu1 %vm304_vm1, %v7305_v46  ;;  %448 = vmatprep.mubr.f32.mxu0 %v9630_v7 }
  0x29   : > { %626 = vmatprep.mubr.f32.mxu1 %v9630_v7  ;;  %6714 = vmatpush1.bf16.msra.mxu1 %v6713_v4 }
  0x2a   : > { %6715 = vmatprep.subr.bf16.mxu1 %v9631_v59 }
  0x2b   : > { %5903 = vmatmul.mubr.msk.f32.gmra.mrb[8].mxu0 %vm304_vm1, %v7315_v47 }
  0x2c   : > { %5931 = vmatmul.mubr.msk.f32.gmra.mrb[8].mxu1 %vm304_vm1, %v7315_v47  ;;  %454 = vmatprep.mubr.f32.mxu0 %v9630_v7 }
  0x2d   : > { %632 = vmatprep.mubr.f32.mxu1 %v9630_v7  ;;  %6717 = vmatpush1.bf16.msra.mxu1 %v6716_v8 }
  0x2e   : > { %6718 = vmatprep.subr.bf16.mxu1 %v9631_v59 }
  0x2f   : > { %5904 = vmatmul.mubr.msk.f32.gmra.mrb[10].mxu0 %vm304_vm1, %v7324_v48 }
  0x30   : > { %5932 = vmatmul.mubr.msk.f32.gmra.mrb[10].mxu1 %vm304_vm1, %v7324_v48  ;;  %460 = vmatprep.mubr.f32.mxu0 %v9630_v7 }
  0x31   : > { %638 = vmatprep.mubr.f32.mxu1 %v9630_v7  ;;  %6720 = vmatpush1.bf16.msra.mxu1 %v6719_v11 }
  0x32   : > { %6721 = vmatprep.subr.bf16.mxu1 %v9631_v59 }
  0x33   : > { %5905 = vmatmul.mubr.msk.f32.gmra.mrb[12].mxu0 %vm304_vm1, %v284_v49 }
  0x34   : > { %5933 = vmatmul.mubr.msk.f32.gmra.mrb[12].mxu1 %vm304_vm1, %v284_v49  ;;  %466 = vmatprep.mubr.f32.mxu0 %v9630_v7 }
  0x35   : > { %644 = vmatprep.mubr.f32.mxu1 %v9630_v7  ;;  %6723 = vmatpush1.bf16.msra.mxu1 %v6722_v14 }
  0x36   : > { %6724 = vmatprep.subr.bf16.mxu1 %v9631_v59 }
  0x37   : > { %5906 = vmatmul.mubr.msk.f32.gmra.mrb[14].mxu0 %vm304_vm1, %v285_v50 }
  0x38   : > { %5934 = vmatmul.mubr.msk.f32.gmra.mrb[14].mxu1 %vm304_vm1, %v285_v50  ;;  %472 = vmatprep.mubr.f32.mxu0 %v9630_v7 }
  0x39   : > { %650 = vmatprep.mubr.f32.mxu1 %v9630_v7  ;;  %6726 = vmatpush1.bf16.msra.mxu1 %v6725_v17 }
  0x3a   : > { %6727 = vmatprep.subr.bf16.mxu1 %v9631_v59 }
  0x3b   : > { %5907 = vmatmul.mubr.msk.f32.gmra.mrb[16].mxu0 %vm304_vm1, %v286_v51 }
  0x3c   : > { %5935 = vmatmul.mubr.msk.f32.gmra.mrb[16].mxu1 %vm304_vm1, %v286_v51  ;;  %478 = vmatprep.mubr.f32.mxu0 %v9630_v7 }
  0x3d   : > { %656 = vmatprep.mubr.f32.mxu1 %v9630_v7  ;;  %6729 = vmatpush1.bf16.msra.mxu1 %v6728_v20 }
  0x3e   : > { %6730 = vmatprep.subr.bf16.mxu1 %v9631_v59 }
  0x3f   : > { %5908 = vmatmul.mubr.msk.f32.gmra.mrb[18].mxu0 %vm304_vm1, %v287_v52 }
  0x40   : > { %5936 = vmatmul.mubr.msk.f32.gmra.mrb[18].mxu1 %vm304_vm1, %v287_v52  ;;  %484 = vmatprep.mubr.f32.mxu0 %v9630_v7 }
  0x41   : > { %662 = vmatprep.mubr.f32.mxu1 %v9630_v7  ;;  %6733 = vmatpush1.bf16.msk.msra.mxu1 %vm6732_vm4, %v6731_v23 }
  0x42   : > { %6826 = vmatprep.subr.bf16.mxu1 %v7505_v34 }
  0x43   : > { %5909 = vmatmul.mubr.msk.f32.gmra.mrb[20].mxu0 %vm304_vm1, %v288_v53 }
  0x44   : > { %5937 = vmatmul.mubr.msk.f32.gmra.mrb[20].mxu1 %vm304_vm1, %v288_v53  ;;  %490 = vmatprep.mubr.f32.mxu0 %v9630_v7 }
  0x45   : > { %668 = vmatprep.mubr.f32.mxu1 %v9630_v7 }
  0x47   : > { %5910 = vmatmul.mubr.msk.f32.gmra.mrb[22].mxu0 %vm304_vm1, %v289_v54 }
  0x48   : > { %5938 = vmatmul.mubr.msk.f32.gmra.mrb[22].mxu1 %vm304_vm1, %v289_v54  ;;  %496 = vmatprep.mubr.f32.mxu0 %v9630_v7 }
  0x49   : > { %674 = vmatprep.mubr.f32.mxu1 %v9630_v7 }
  0x4b   : > { %5911 = vmatmul.mubr.msk.f32.gmra.mrb[24].mxu0 %vm304_vm1, %v290_v55 }
  0x4c   : > { %5939 = vmatmul.mubr.msk.f32.gmra.mrb[24].mxu1 %vm304_vm1, %v290_v55  ;;  %502 = vmatprep.mubr.f32.mxu0 %v9630_v7 }
  0x4d   : > { %680 = vmatprep.mubr.f32.mxu1 %v9630_v7 }
  0x4f   : > { %5912 = vmatmul.mubr.msk.f32.gmra.mrb[26].mxu0 %vm304_vm1, %v291_v56 }
  0x50   : > { %5940 = vmatmul.mubr.msk.f32.gmra.mrb[26].mxu1 %vm304_vm1, %v291_v56  ;;  %508 = vmatprep.mubr.f32.mxu0 %v9630_v7 }
  0x51   : > { %686 = vmatprep.mubr.f32.mxu1 %v9630_v7 }
  0x53   : > { %5913 = vmatmul.mubr.msk.f32.gmra.mrb[28].mxu0 %vm304_vm1, %v292_v57 }
  0x54   : > { %5941 = vmatmul.mubr.msk.f32.gmra.mrb[28].mxu1 %vm304_vm1, %v292_v57  ;;  %514 = vmatprep.mubr.f32.mxu0 %v9630_v7 }
  0x55   : > { %692 = vmatprep.mubr.f32.mxu1 %v9630_v7 }
  0x57   : > { %5914 = vmatmul.mubr.msk.f32.gmra.mrb[30].mxu0 %vm304_vm1, %v293_v58 }
  0x58   : > { %5942 = vmatmul.mubr.msk.f32.gmra.mrb[30].mxu1 %vm304_vm1, %v293_v58  ;;  %780 = vmatprep.mubr.f32.mxu0 %v9630_v7 }
  0x5b   : > { %5955 = vmatmul.mubr.msk.f32.vlgmr.msra.gmra.mrb[32].mxu0 %vm304_vm1, %v7258_v33 }
  0x5c   : > { %786 = vmatprep.mubr.f32.mxu0 %v9630_v7  ;;  %6737 = vmatpush3.bf16.msra.mxu0 %v7505_v34 }
  0x5d   : > { %6739 = vmatprep.subr.bf16.mxu0 %v7514_v38 }
  0x5f   : > { %5956 = vmatmul.mubr.msk.f32.gmra.mrb[34].mxu0 %vm304_vm1, %v7280_v41 }
  0x60   : > { %792 = vmatprep.mubr.f32.mxu0 %v9630_v7  ;;  %6741 = vmatpush3.bf16.msra.mxu0 %v7514_v38 }
  0x61   : > { %6743 = vmatprep.subr.bf16.mxu0 %v7534_v45 }
  0x63   : > { %5957 = vmatmul.mubr.msk.f32.gmra.mrb[36].mxu0 %vm304_vm1, %v7289_v43 }
  0x64   : > { %798 = vmatprep.mubr.f32.mxu0 %v9630_v7  ;;  %6745 = vmatpush3.bf16.msra.mxu0 %v7534_v45 }
  0x67   : > { %5958 = vmatmul.mubr.msk.f32.gmra.mrb[38].mxu0 %vm304_vm1, %v7305_v46 }
  0x68   : > { %804 = vmatprep.mubr.f32.mxu0 %v9630_v7 }
  0x6b   : > { %5959 = vmatmul.mubr.msk.f32.gmra.mrb[40].mxu0 %vm304_vm1, %v7315_v47 }
  0x6c   : > { %810 = vmatprep.mubr.f32.mxu0 %v9630_v7 }
  0x6f   : > { %5960 = vmatmul.mubr.msk.f32.gmra.mrb[42].mxu0 %vm304_vm1, %v7324_v48 }
  0x70   : > { %816 = vmatprep.mubr.f32.mxu0 %v9630_v7 }
  0x73   : > { %5961 = vmatmul.mubr.msk.f32.gmra.mrb[44].mxu0 %vm304_vm1, %v284_v49 }
  0x74   : > { %822 = vmatprep.mubr.f32.mxu0 %v9630_v7 }
  0x77   : > { %5962 = vmatmul.mubr.msk.f32.gmra.mrb[46].mxu0 %vm304_vm1, %v285_v50 }
  0x78   : > { %828 = vmatprep.mubr.f32.mxu0 %v9630_v7 }
  0x7b   : > { %5963 = vmatmul.mubr.msk.f32.gmra.mrb[48].mxu0 %vm304_vm1, %v286_v51 }
  0x7c   : > { %834 = vmatprep.mubr.f32.mxu0 %v9630_v7 }
  0x7f   : > { %5964 = vmatmul.mubr.msk.f32.gmra.mrb[50].mxu0 %vm304_vm1, %v287_v52 }
  0x80   : > { %840 = vmatprep.mubr.f32.mxu0 %v9630_v7 }
  0x83   : > { %5965 = vmatmul.mubr.msk.f32.gmra.mrb[52].mxu0 %vm304_vm1, %v288_v53 }
  0x84   : > { %846 = vmatprep.mubr.f32.mxu0 %v9630_v7 }
  0x87   : > { %5966 = vmatmul.mubr.msk.f32.gmra.mrb[54].mxu0 %vm304_vm1, %v289_v54 }
  0x88   : > { %852 = vmatprep.mubr.f32.mxu0 %v9630_v7 }
  0x8b   : > { %5967 = vmatmul.mubr.msk.f32.gmra.mrb[56].mxu0 %vm304_vm1, %v290_v55 }
  0x8c   : > { %858 = vmatprep.mubr.f32.mxu0 %v9630_v7 }
  0x8f   : > { %5968 = vmatmul.mubr.msk.f32.gmra.mrb[58].mxu0 %vm304_vm1, %v291_v56 }
  0x90   : > { %864 = vmatprep.mubr.f32.mxu0 %v9630_v7 }
  0x93   : > { %5969 = vmatmul.mubr.msk.f32.gmra.mrb[60].mxu0 %vm304_vm1, %v292_v57 }
  0x94   : > { %870 = vmatprep.mubr.f32.mxu0 %v9630_v7 }
  0x97   : > { %5970 = vmatmul.mubr.msk.f32.gmra.mrb[62].mxu0 %vm304_vm1, %v293_v58  ;;  %vm9566_vm1 = vmpackc.low %vm991_vm5, %vm991_vm5 }
  0xee   : > { %v7482_v24 = vpop.f32.mrb[0].mxu0 }
  0xef   : > { %v7484_v25 = vpop.f32.mrb[0].mxu1  ;;  %v7486_v26 = vpop.f32.mrb[1].mxu0 }
  0xf0   : > { %v7490_v28 = vpop.f32.mrb[1].mxu1 }
  0xf2   : > { %v7503_v33 = vpop.f32.mrb[2].mxu0 }
  0xf3   : > { %v7510_v36 = vpop.f32.mrb[2].mxu1  ;;  %v7512_v37 = vpop.f32.mrb[3].mxu0 }
  0xf4   : > { %v7524_v42 = vpop.f32.mrb[3].mxu1  ;;  %v9680_v29 = vmax.f32 %v7503_v33, %v7510_v36 }
  0xf6   : > { %v7531_v44 = vpop.f32.mrb[4].mxu0 }
  0xf7   : > { %v7536_v46 = vpop.f32.mrb[4].mxu1  ;;  %v7538_v47 = vpop.f32.mrb[5].mxu0 }
  0xf8   : > { %v7542_v49 = vpop.f32.mrb[5].mxu1 }
  0xfa   : > { %v7547_v51 = vpop.f32.mrb[6].mxu0 }
  0xfb   : > { %v7550_v52 = vpop.f32.mrb[6].mxu1  ;;  %v7552_v53 = vpop.f32.mrb[7].mxu0 }
  0xfc   : > { %v7556_v55 = vpop.f32.mrb[7].mxu1 }
  0xfe   : > { %v7561_v57 = vpop.f32.mrb[8].mxu0 }
  0xff   : > { %v7563_v58 = vpop.f32.mrb[8].mxu1  ;;  %v7565_v60 = vpop.f32.mrb[9].mxu0 }
 0x100   : > { %v7569_v62 = vpop.f32.mrb[9].mxu1 }
 0x102   : > { %v7573_v0 = vpop.f32.mrb[10].mxu0 }
 0x103   : > { %v7575_v1 = vpop.f32.mrb[10].mxu1  ;;  %v7577_v2 = vpop.f32.mrb[11].mxu0 }
 0x104   : > { %v7581_v4 = vpop.f32.mrb[11].mxu1 }
 0x106   : > { %v7585_v6 = vpop.f32.mrb[12].mxu0 }
 0x107   : > { %v7587_v8 = vpop.f32.mrb[12].mxu1  ;;  %v7589_v9 = vpop.f32.mrb[13].mxu0 }
 0x108   : > { %v7593_v11 = vpop.f32.mrb[13].mxu1 }
 0x10a   : > { %v7597_v13 = vpop.f32.mrb[14].mxu0 }
 0x10b   : > { %v7599_v14 = vpop.f32.mrb[14].mxu1  ;;  %v7601_v15 = vpop.f32.mrb[15].mxu0 }
 0x10c   : > { %v7605_v17 = vpop.f32.mrb[15].mxu1 }
 0x10e   : > { %v7609_v19 = vpop.f32.mrb[16].mxu0 }
 0x10f   : > { %v7611_v20 = vpop.f32.mrb[16].mxu1  ;;  %v7613_v21 = vpop.f32.mrb[17].mxu0 }
 0x110   : > { %v7617_v23 = vpop.f32.mrb[17].mxu1 }
 0x112   : > { %v7621_v31 = vpop.f32.mrb[18].mxu0 }
 0x113   : > { %v7623_v32 = vpop.f32.mrb[18].mxu1  ;;  %v7625_v35 = vpop.f32.mrb[19].mxu0 }
 0x114   : > { %v7629_v40 = vpop.f32.mrb[19].mxu1 }
 0x116   : > { %v7633_v59 = vpop.f32.mrb[20].mxu0 }
 0x117   : > { %v7635_v22 = vpop.f32.mrb[20].mxu1  ;;  %v7637_v18 = vpop.f32.mrb[21].mxu0 }
 0x118   : > { %v7641_v16 = vpop.f32.mrb[21].mxu1 }
 0x11a   : > { %v7645_v39 = vpop.f32.mrb[22].mxu0 }
 0x11b   : > { %v7647_v10 = vpop.f32.mrb[22].mxu1  ;;  %v7649_v5 = vpop.f32.mrb[23].mxu0 }
 0x11c   : > { %9661 = vst [vmem:[#allocation3_spill] sm:$0xff] %v7649_v5  ;;  %v7653_v3 = vpop.f32.mrb[23].mxu1 }
 0x11d   : > { %9662 = vst [vmem:[#allocation4_spill] sm:$0xff] %v7653_v3 }
 0x11e   : > { %v7657_v30 = vpop.f32.mrb[24].mxu0 }
 0x11f   : > { %9663 = vst [vmem:[#allocation5_spill] sm:$0xff] %v7657_v30  ;;  %v7659_v61 = vpop.f32.mrb[24].mxu1  ;;  %v7661_v56 = vpop.f32.mrb[25].mxu0 }
 0x120   : > { %9664 = vst [vmem:[#allocation6_spill] sm:$0xff] %v7659_v61  ;;  %9665 = vst [vmem:[#allocation7_spill] sm:$0xff] %v7661_v56  ;;  %v7665_v54 = vpop.f32.mrb[25].mxu1 }
 0x121   : > { %9666 = vst [vmem:[#allocation8_spill] sm:$0xff] %v7665_v54 }
 0x122   : > { %v7669_v7 = vpop.f32.mrb[26].mxu0 }
 0x123   : > { %9667 = vst [vmem:[#allocation9_spill] sm:$0xff] %v7669_v7  ;;  %v7671_v48 = vpop.f32.mrb[26].mxu1  ;;  %v7673_v43 = vpop.f32.mrb[27].mxu0 }
 0x124   : > { %9668 = vst [vmem:[#allocation10_spill] sm:$0xff] %v7671_v48  ;;  %9669 = vst [vmem:[#allocation11_spill] sm:$0xff] %v7673_v43  ;;  %v7677_v41 = vpop.f32.mrb[27].mxu1  ;;  %v9681_v43 = vmax.f32 %v7512_v37, %v7524_v42  ;;  %v9685_v37 = vmax.f32 %v7538_v47, %v7542_v49 }
 0x125   : > { %9670 = vst [vmem:[#allocation12_spill] sm:$0xff] %v7677_v41 }
 0x126   : > { %v7681_v12 = vpop.f32.mrb[28].mxu0 }
 0x127   : > { %9671 = vst [vmem:[#allocation13_spill] sm:$0xff] %v7681_v12  ;;  %v7683_v27 = vpop.f32.mrb[28].mxu1  ;;  %v7685_v61 = vpop.f32.mrb[29].mxu0 }
 0x128   : > { %9672 = vst [vmem:[#allocation14_spill] sm:$0xff] %v7683_v27  ;;  %9673 = vst [vmem:[#allocation15_spill] sm:$0xff] %v7685_v61  ;;  %v7689_v54 = vpop.f32.mrb[29].mxu1  ;;  %v9678_v27 = vmax.f32 %v7482_v24, %v7484_v25 }
 0x129   : > { %9674 = vst [vmem:[#allocation16_spill] sm:$0xff] %v7689_v54  ;;  %v9679_v54 = vmax.f32 %v7486_v26, %v7490_v28  ;;  %v9683_v28 = vmax.f32 %v7531_v44, %v7536_v46  ;;  %v9686_v44 = vmax.f32 %v7547_v51, %v7550_v52  ;;  %v9689_v51 = vmax.f32 %v7561_v57, %v7563_v58 }
 0x12a   : > { %v7693_v63 = vpop.f32.mrb[30].mxu0  ;;  %v9693_v57 = vmax.f32 %v7577_v2, %v7581_v4 }
 0x12b   : > { %9675 = vst [vmem:[#allocation17_spill] sm:$0xff] %v7693_v63  ;;  %v7695_v48 = vpop.f32.mrb[30].mxu1  ;;  %v7697_v7 = vpop.f32.mrb[31].mxu0 }
 0x12c   : > { %9676 = vst [vmem:[#allocation18_spill] sm:$0xff] %v7695_v48  ;;  %v7701_v41 = vpop.f32.mrb[31].mxu1 }
 0x12d   : > { %9677 = vst [vmem:[#allocation19_spill] sm:$0xff] %v7701_v41 }
 0x12e   : > { %v782_v50 = vpop.f32.mrb[32].mxu0 }
 0x12f   : > { %v909_v12 = vmax.f32 %v9678_v27, %v782_v50  ;;  %v784_v56 = vpop.f32.mrb[33].mxu0  ;;  %v9687_v50 = vmax.f32 %v7552_v53, %v7556_v55  ;;  %v9691_v53 = vmax.f32 %v7565_v60, %v7569_v62 }
 0x130   : > { %v910_v61 = vmax.f32 %v9679_v54, %v784_v56 }
 0x131   : > { %v941_v5 = vmax.f32 %v909_v12, 0.0 }
 0x132   : > { %v942_v30 = vmax.f32 %v910_v61, 0.0  ;;  %v788_v3 = vpop.f32.mrb[34].mxu0 }
 0x133   : > { %v911_v48 = vmax.f32 %v9680_v29, %v788_v3  ;;  %v790_v63 = vpop.f32.mrb[35].mxu0 }
 0x134   : > { %v912_v41 = vmax.f32 %v9681_v43, %v790_v63  ;;  %5972 = vmatprep.mubr.msk.f32.mxu1 %vm991_vm5, %v942_v30 }
 0x135   : > { %v943_v24 = vmax.f32 %v911_v48, 0.0  ;;  %1109 = vmatmul.mubr.f32.vlgmr.msra.gmra.mrb[32].mxu1 %v941_v5 }
 0x136   : > { %v944_v25 = vmax.f32 %v912_v41, 0.0  ;;  %v794_v26 = vpop.f32.mrb[36].mxu0  ;;  %6831 = vmatpush3.bf16.msra.mxu1 %v7505_v34 }
 0x137   : > { %v7719_v27 = vpack.c.bf16 %v943_v24, %v941_v5  ;;  %v913_v33 = vmax.f32 %v9683_v28, %v794_v26  ;;  %v796_v29 = vpop.f32.mrb[37].mxu0  ;;  %6827 = vmatprep.subr.bf16.mxu1 %v7514_v38  ;;  %v9695_v28 = vmax.f32 %v7585_v6, %v7587_v8  ;;  %v9699_v6 = vmax.f32 %v7601_v15, %v7605_v17 }
 0x138   : > { %v7725_v36 = vpack.c.bf16 %v944_v25, %v942_v30  ;;  %v914_v42 = vmax.f32 %v9685_v37, %v796_v29  ;;  %5973 = vmatprep.mubr.msk.f32.mxu1 %vm991_vm5, %v944_v25 }
 0x139   : > { %9682 = vst [vmem:[#allocation20_spill] sm:$0xff] %v7719_v27  ;;  %1114 = vmatmul.mubr.f32.gmra.mrb[34].mxu1 %v943_v24  ;;  %v945_v43 = vmax.f32 %v913_v33, 0.0 }
 0x13a   : > { %9684 = vst [vmem:[#allocation21_spill] sm:$0xff] %v7725_v36  ;;  %v946_v41 = vmax.f32 %v914_v42, 0.0  ;;  %v800_v34 = vpop.f32.mrb[38].mxu0  ;;  %6832 = vmatpush3.bf16.msra.mxu1 %v7514_v38 }
 0x13b   : > { %v915_v46 = vmax.f32 %v9686_v44, %v800_v34  ;;  %v802_v48 = vpop.f32.mrb[39].mxu0  ;;  %6828 = vmatprep.subr.bf16.mxu1 %v7534_v45 }
 0x13c   : > { %v916_v47 = vmax.f32 %v9687_v50, %v802_v48  ;;  %5974 = vmatprep.mubr.msk.f32.mxu1 %vm991_vm5, %v946_v41  ;;  %v9701_v48 = vmax.f32 %v7609_v19, %v7611_v20  ;;  %v9705_v19 = vmax.f32 %v7625_v35, %v7629_v40 }
 0x13d   : > { %v947_v49 = vmax.f32 %v915_v46, 0.0  ;;  %1119 = vmatmul.mubr.f32.gmra.mrb[36].mxu1 %v945_v43 }
 0x13e   : > { %v948_v54 = vmax.f32 %v916_v47, 0.0  ;;  %v806_v56 = vpop.f32.mrb[40].mxu0  ;;  %6833 = vmatpush3.bf16.msra.mxu1 %v7534_v45  ;;  %v9692_v45 = vmax.f32 %v7573_v0, %v7575_v1  ;;  %v9697_v1 = vmax.f32 %v7589_v9, %v7593_v11 }
 0x13f   : > { %v7741_v38 = vpack.c.bf16 %v947_v49, %v945_v43  ;;  %v917_v52 = vmax.f32 %v9689_v51, %v806_v56  ;;  %v808_v61 = vpop.f32.mrb[41].mxu0  ;;  %v9704_v56 = vmax.f32 %v7621_v31, %v7623_v32  ;;  %v9709_v32 = vmax.f32 %v7637_v18, %v7641_v16 }
 0x140   : > { %v7746_v63 = vpack.c.bf16 %v948_v54, %v946_v41  ;;  %v918_v55 = vmax.f32 %v9691_v53, %v808_v61  ;;  %5975 = vmatprep.mubr.msk.f32.mxu1 %vm991_vm5, %v948_v54  ;;  %v9698_v41 = vmax.f32 %v7597_v13, %v7599_v14  ;;  %v9703_v14 = vmax.f32 %v7613_v21, %v7617_v23 }
 0x141   : > { %9688 = vst [vmem:[#allocation22_spill] sm:$0xff] %v7741_v38  ;;  %1124 = vmatmul.mubr.f32.gmra.mrb[38].mxu1 %v947_v49  ;;  %v949_v12 = vmax.f32 %v917_v52, 0.0 }
 0x142   : > { %9690 = vst [vmem:[#allocation23_spill] sm:$0xff] %v7746_v63  ;;  %v950_v3 = vmax.f32 %v918_v55, 0.0  ;;  %v812_v5 = vpop.f32.mrb[42].mxu0  ;;  %v9707_v55 = vmax.f32 %v7633_v59, %v7635_v22  ;;  %v9711_v59 = vld [vmem:[#allocation3_spill] sm:$0xff]  ;;  %v9712_v22 = vld [vmem:[#allocation4_spill] sm:$0xff] }
 0x143   : > { %v919_v30 = vmax.f32 %v9692_v45, %v812_v5  ;;  %v814_v24 = vpop.f32.mrb[43].mxu0 }
 0x144   : > { %v920_v58 = vmax.f32 %v9693_v57, %v814_v24  ;;  %5976 = vmatprep.mubr.msk.f32.mxu1 %vm991_vm5, %v950_v3 }
 0x145   : > { %v951_v25 = vmax.f32 %v919_v30, 0.0  ;;  %1129 = vmatmul.mubr.f32.gmra.mrb[40].mxu1 %v949_v12  ;;  %v9710_v30 = vmax.f32 %v7645_v39, %v7647_v10  ;;  %v9719_v39 = vld [vmem:[#allocation7_spill] sm:$0xff] }
 0x146   : > { %v952_v60 = vmax.f32 %v920_v58, 0.0  ;;  %v818_v62 = vpop.f32.mrb[44].mxu0  ;;  %v9713_v58 = vmax.f32 %v9711_v59, %v9712_v22 }
 0x147   : > { %v7759_v26 = vpack.c.bf16 %v951_v25, %v949_v12  ;;  %v921_v33 = vmax.f32 %v9695_v28, %v818_v62  ;;  %v820_v29 = vpop.f32.mrb[45].mxu0  ;;  %v9715_v28 = vld [vmem:[#allocation5_spill] sm:$0xff] }
 0x148   : > { %v7764_v0 = vpack.c.bf16 %v952_v60, %v950_v3  ;;  %v922_v2 = vmax.f32 %v9697_v1, %v820_v29  ;;  %5977 = vmatprep.mubr.msk.f32.mxu1 %vm991_vm5, %v952_v60 }
 0x149   : > { %9694 = vst [vmem:[#allocation24_spill] sm:$0xff] %v7759_v26  ;;  %1134 = vmatmul.mubr.f32.gmra.mrb[42].mxu1 %v951_v25  ;;  %v953_v42 = vmax.f32 %v921_v33, 0.0  ;;  %v9716_v33 = vld [vmem:[#allocation6_spill] sm:$0xff] }
 0x14a   : > { %9696 = vst [vmem:[#allocation25_spill] sm:$0xff] %v7764_v0  ;;  %v954_v4 = vmax.f32 %v922_v2, 0.0  ;;  %v824_v37 = vpop.f32.mrb[46].mxu0  ;;  %v9717_v29 = vmax.f32 %v9715_v28, %v9716_v33  ;;  %v2893_v33 = vld [vmem:[%s9625_s3 + $0x40] sm:$0xff] }
 0x14b   : > { %v923_v34 = vmax.f32 %v9698_v41, %v824_v37  ;;  %v826_v43 = vpop.f32.mrb[47].mxu0 }
 0x14c   : > { %v924_v8 = vmax.f32 %v9699_v6, %v826_v43  ;;  %5978 = vmatprep.mubr.msk.f32.mxu1 %vm991_vm5, %v954_v4  ;;  %v9722_v6 = vld [vmem:[#allocation9_spill] sm:$0xff] }
 0x14d   : > { %v955_v44 = vmax.f32 %v923_v34, 0.0  ;;  %1139 = vmatmul.mubr.f32.gmra.mrb[44].mxu1 %v953_v42 }
 0x14e   : > { %v956_v9 = vmax.f32 %v924_v8, 0.0  ;;  %v830_v11 = vpop.f32.mrb[48].mxu0  ;;  %v9723_v8 = vld [vmem:[#allocation10_spill] sm:$0xff] }
 0x14f   : > { %v7777_v46 = vpack.c.bf16 %v955_v44, %v953_v42  ;;  %v925_v50 = vmax.f32 %v9701_v48, %v830_v11  ;;  %v832_v47 = vpop.f32.mrb[49].mxu0  ;;  %v9725_v48 = vld [vmem:[#allocation11_spill] sm:$0xff] }
 0x150   : > { %v7782_v13 = vpack.c.bf16 %v956_v9, %v954_v4  ;;  %v926_v15 = vmax.f32 %v9703_v14, %v832_v47  ;;  %5979 = vmatprep.mubr.msk.f32.mxu1 %vm991_vm5, %v956_v9  ;;  %v9720_v4 = vld [vmem:[#allocation8_spill] sm:$0xff] }
 0x151   : > { %9700 = vst [vmem:[#allocation26_spill] sm:$0xff] %v7777_v46  ;;  %1144 = vmatmul.mubr.f32.gmra.mrb[46].mxu1 %v955_v44  ;;  %v957_v54 = vmax.f32 %v925_v50, 0.0  ;;  %v9721_v37 = vmax.f32 %v9719_v39, %v9720_v4  ;;  %v9724_v44 = vmax.f32 %v9722_v6, %v9723_v8  ;;  %v9726_v50 = vld [vmem:[#allocation12_spill] sm:$0xff]  ;;  %v7120_v39 = vmov 1966171168  }
 0x152   : > { %9702 = vst [vmem:[#allocation27_spill] sm:$0xff] %v7782_v13  ;;  %v958_v17 = vmax.f32 %v926_v15, 0.0  ;;  %v836_v49 = vpop.f32.mrb[50].mxu0  ;;  %v9727_v47 = vmax.f32 %v9725_v48, %v9726_v50  ;;  %v1207_v4 = vunpack.c.l.s4 %v7120_v39 }
 0x153   : > { %v927_v51 = vmax.f32 %v9704_v56, %v836_v49  ;;  %v838_v52 = vpop.f32.mrb[51].mxu0  ;;  %v9729_v56 = vld [vmem:[#allocation13_spill] sm:$0xff] }
 0x154   : > { %v928_v20 = vmax.f32 %v9705_v19, %v838_v52  ;;  %5980 = vmatprep.mubr.msk.f32.mxu1 %vm991_vm5, %v958_v17 }
 0x155   : > { %v959_v61 = vmax.f32 %v927_v51, 0.0  ;;  %1149 = vmatmul.mubr.f32.gmra.mrb[48].mxu1 %v957_v54  ;;  %v9730_v51 = vld [vmem:[#allocation14_spill] sm:$0xff] }
 0x156   : > { %v960_v21 = vmax.f32 %v928_v20, 0.0  ;;  %v842_v23 = vpop.f32.mrb[52].mxu0  ;;  %v9731_v52 = vmax.f32 %v9729_v56, %v9730_v51 }
 0x157   : > { %v7795_v53 = vpack.c.bf16 %v959_v61, %v957_v54  ;;  %v929_v3 = vmax.f32 %v9707_v55, %v842_v23  ;;  %v844_v5 = vpop.f32.mrb[53].mxu0  ;;  %v9734_v23 = vld [vmem:[#allocation16_spill] sm:$0xff] }
 0x158   : > { %v7800_v31 = vpack.c.bf16 %v960_v21, %v958_v17  ;;  %v930_v35 = vmax.f32 %v9709_v32, %v844_v5  ;;  %5981 = vmatprep.mubr.msk.f32.mxu1 %vm991_vm5, %v960_v21  ;;  %v9733_v21 = vld [vmem:[#allocation15_spill] sm:$0xff] }
 0x159   : > { %9706 = vst [vmem:[#allocation28_spill] sm:$0xff] %v7795_v53  ;;  %1154 = vmatmul.mubr.f32.gmra.mrb[50].mxu1 %v959_v61  ;;  %v961_v45 = vmax.f32 %v929_v3, 0.0  ;;  %v9735_v55 = vmax.f32 %v9733_v21, %v9734_v23 }
 0x15a   : > { %9708 = vst [vmem:[#allocation29_spill] sm:$0xff] %v7800_v31  ;;  %v962_v40 = vmax.f32 %v930_v35, 0.0  ;;  %v848_v12 = vpop.f32.mrb[54].mxu0 }
 0x15b   : > { %v931_v24 = vmax.f32 %v9710_v30, %v848_v12  ;;  %v850_v57 = vpop.f32.mrb[55].mxu0  ;;  %v9737_v12 = vld [vmem:[#allocation18_spill] sm:$0xff] }
 0x15c   : > { %v932_v25 = vmax.f32 %v9713_v58, %v850_v57  ;;  %5982 = vmatprep.mubr.msk.f32.mxu1 %vm991_vm5, %v962_v40  ;;  %v9739_v57 = vld [vmem:[#allocation19_spill] sm:$0xff] }
 0x15d   : > { %v963_v60 = vmax.f32 %v931_v24, 0.0  ;;  %1159 = vmatmul.mubr.f32.gmra.mrb[52].mxu1 %v961_v45  ;;  %v9740_v59 = vmax.f32 %v7697_v7, %v9739_v57  ;;  %v2892_v7 = vld [vmem:[%s9625_s3 + $0x38] sm:$0xff] }
 0x15e   : > { %v964_v16 = vmax.f32 %v932_v25, 0.0  ;;  %v854_v18 = vpop.f32.mrb[56].mxu0 }
 0x15f   : > { %v7813_v62 = vpack.c.bf16 %v963_v60, %v961_v45  ;;  %v933_v1 = vmax.f32 %v9717_v29, %v854_v18  ;;  %v856_v2 = vpop.f32.mrb[57].mxu0  ;;  %v2891_v18 = vld [vmem:[%s9625_s3 + $0x30] sm:$0xff]  ;;  %v2894_v29 = vld [vmem:[%s9625_s3 + $0x48] sm:$0xff] }
 0x160   : > { %v7818_v10 = vpack.c.bf16 %v964_v16, %v962_v40  ;;  %v934_v42 = vmax.f32 %v9721_v37, %v856_v2  ;;  %5983 = vmatprep.mubr.msk.f32.mxu1 %vm991_vm5, %v964_v16  ;;  %v9736_v40 = vld [vmem:[#allocation17_spill] sm:$0xff]  ;;  %v6746_v28 = vpack.c.bf16 %v2892_v7, %v2891_v18  ;;  %v9743_v2 = vmov 0.0|0.0  }
 0x161   : > { %9714 = vst [vmem:[#allocation3_spill] sm:$0xff] %v7813_v62  ;;  %1164 = vmatmul.mubr.f32.gmra.mrb[54].mxu1 %v963_v60  ;;  %v965_v43 = vmax.f32 %v933_v1, 0.0  ;;  %v9738_v45 = vmax.f32 %v9736_v40, %v9737_v12  ;;  %v6750_v1 = vpack.c.bf16 %v2894_v29, %v2893_v33  ;;  %v1209_v37 = vlaneseq }
 0x162   : > { %9718 = vst [vmem:[#allocation4_spill] sm:$0xff] %v7818_v10  ;;  %v966_v41 = vmax.f32 %v934_v42, 0.0  ;;  %v860_v34 = vpop.f32.mrb[58].mxu0  ;;  %6747 = vmatprep.subr.bf16.mxu0 %v6746_v28  ;;  %6829 = vmatprep.subr.bf16.mxu1 %v6746_v28  ;;  %v1208_v42 = vunpack.c.0.s8 %v1207_v4 }
 0x163   : > { %v935_v9 = vmax.f32 %v9724_v44, %v860_v34  ;;  %v862_v11 = vpop.f32.mrb[59].mxu0  ;;  %6749 = vmatpush3.bf16.msra.mxu0 %v6746_v28  ;;  %6834 = vmatpush3.bf16.msra.mxu1 %v6746_v28 }
 0x164   : > { %v936_v14 = vmax.f32 %v9727_v47, %v862_v11  ;;  %5984 = vmatprep.mubr.msk.f32.mxu1 %vm991_vm5, %v966_v41  ;;  %6751 = vmatprep.subr.bf16.mxu0 %v6750_v1 }
 0x165   : > { %v967_v15 = vmax.f32 %v935_v9, 0.0  ;;  %1169 = vmatmul.mubr.f32.gmra.mrb[56].mxu1 %v965_v43  ;;  %6830 = vmatprep.subr.bf16.mxu1 %v6750_v1 }
 0x166   : > { %v968_v17 = vmax.f32 %v936_v14, 0.0  ;;  %v866_v49 = vpop.f32.mrb[60].mxu0 }
 0x167   : > { %v7831_v54 = vpack.c.bf16 %v967_v15, %v965_v43  ;;  %v937_v19 = vmax.f32 %v9731_v52, %v866_v49  ;;  %v868_v20 = vpop.f32.mrb[61].mxu0  ;;  %6753 = vmatpush3.bf16.msra.mxu0 %v6750_v1  ;;  %6835 = vmatpush3.bf16.msra.mxu1 %v6750_v1 }
 0x168   : > { %v7836_v61 = vpack.c.bf16 %v968_v17, %v966_v41  ;;  %v938_v3 = vmax.f32 %v9735_v55, %v868_v20  ;;  %5985 = vmatprep.mubr.msk.f32.mxu1 %vm991_vm5, %v968_v17  ;;  %6754 = vmatprep.subr.bf16.mxu1 %v9743_v2  ;;  %v7867_v41 = vshrl.u32 %v1209_v37, 7 }
 0x169   : > { %9728 = vst [vmem:[#allocation5_spill] sm:$0xff] %v7831_v54  ;;  %1174 = vmatmul.mubr.f32.gmra.mrb[58].mxu1 %v967_v15  ;;  %v969_v35 = vmax.f32 %v937_v19, 0.0 }
 0x16a   : > { %9732 = vst [vmem:[#allocation6_spill] sm:$0xff] %v7836_v61  ;;  %v970_v5 = vmax.f32 %v938_v3, 0.0  ;;  %v872_v32 = vpop.f32.mrb[62].mxu0  ;;  %9744 = vst [vmem:[#allocation9_spill] sm:$0xff] %v7867_v41  ;;  %v7870_v34 = vsub.s32 %v1208_v42, %v7867_v41  ;;  %v7877_v44 = vsub.s32 0, %v7867_v41 }
 0x16b   : > { %v939_v30 = vmax.f32 %v9738_v45, %v872_v32  ;;  %v874_v24 = vpop.f32.mrb[63].mxu0 }
 0x16c   : > { %v940_v22 = vmax.f32 %v9740_v59, %v874_v24  ;;  %5986 = vmatprep.mubr.msk.f32.mxu1 %vm991_vm5, %v970_v5  ;;  %9745 = vst [vmem:[#allocation10_spill] sm:$0xff] %v7877_v44 }
 0x16d   : > { %v971_v58 = vmax.f32 %v939_v30, 0.0  ;;  %1179 = vmatmul.mubr.f32.gmra.mrb[60].mxu1 %v969_v35 }
 0x16e   : > { %v972_v25 = vmax.f32 %v940_v22, 0.0 }
 0x16f   : > { %v7849_v60 = vpack.c.bf16 %v971_v58, %v969_v35 }
 0x170   : > { %v7851_v16 = vpack.c.bf16 %v972_v25, %v970_v5  ;;  %5987 = vmatprep.mubr.msk.f32.mxu1 %vm991_vm5, %v972_v25 }
 0x171   : > { %9741 = vst [vmem:[#allocation7_spill] sm:$0xff] %v7849_v60  ;;  %1184 = vmatmul.mubr.f32.gmra.mrb[62].mxu1 %v971_v58 }
 0x172   : > { %9742 = vst [vmem:[#allocation8_spill] sm:$0xff] %v7851_v16 }
 0x208   : > { %v7872_v43 = vpop.f32.mrb[32].mxu1 }
 0x209   : > { %v1112_v6 = vpop.f32.mrb[33].mxu1  ;;  %v1212_v8 = vrot.slane %v7872_v43, %v7870_v34  ;;  %v1205_v9 = vcombine.high %v7872_v43, %v7872_v43 }
 0x20b   : > { %v1220_v11 = vcombine.high %v1212_v8, %v1212_v8  ;;  %v1228_v48 = vrot.slane %v1212_v8, %v7870_v34  ;;  %v1219_v50 = vrot.slane %v1205_v9, %v7870_v34 }
 0x20c   : > { %v7883_v47 = vpop.f32.mrb[34].mxu1 }
 0x20d   : > { %v1117_v14 = vpop.f32.mrb[35].mxu1  ;;  %v1242_v15 = vrot.slane %v1220_v11, %v7870_v34  ;;  %v1992_v17 = vrot.slane %v1228_v48, %v7877_v44  ;;  %v1250_v49 = vcombine.high %v1228_v48, %v1228_v48  ;;  %v1235_v56 = vrot.slane %v1219_v50, %v7870_v34 }
 0x20e   : > { %v1221_v51 = vcombine.high %v1219_v50, %v1219_v50  ;;  %v1261_v52 = vrot.slane %v7883_v47, %v7870_v34  ;;  %v1254_v19 = vcombine.high %v7883_v47, %v7883_v47 }
 0x20f   : > { %v2629_v20 = vsub.f32 %v1992_v17, %v7872_v43  ;;  %v1996_v21 = vrot.slane %v1242_v15, %v7877_v44  ;;  %v2000_v23 = vrot.slane %v1250_v49, %v7877_v44  ;;  %v1252_v55 = vcombine.high %v1242_v15, %v1242_v15 }
 0x210   : > { %v7895_v3 = vpop.f32.mrb[36].mxu1  ;;  %v2008_v5 = vrot.slane %v1235_v56, %v7877_v44  ;;  %v1249_v32 = vrot.slane %v1221_v51, %v7870_v34  ;;  %v1251_v35 = vcombine.high %v1235_v56, %v1235_v56  ;;  %v1277_v40 = vrot.slane %v1261_v52, %v7870_v34 }
 0x211   : > { %v1122_v12 = vpop.f32.mrb[37].mxu1  ;;  %v2757_v45 = vand.u32 2147483647, %v2629_v20  ;;  %v2630_v30 = vsub.f32 %v1996_v21, %v7872_v43  ;;  %v2631_v24 = vsub.f32 %v2000_v23, %v7872_v43  ;;  %v2004_v57 = vrot.slane %v1252_v55, %v7877_v44 }
 0x212   : > { %v2633_v59 = vsub.f32 %v2008_v5, %v7872_v43  ;;  %v2012_v22 = vrot.slane %v1249_v32, %v7877_v44  ;;  %v2016_v58 = vrot.slane %v1251_v35, %v7877_v44  ;;  %v1253_v25 = vcombine.high %v1249_v32, %v1249_v32 }
 0x213   : > { %6455 = vmatprep.mubr.msk.f32.mxu0 %vm2895_vm6, %v2757_v45  ;;  %v2758_v18 = vand.u32 2147483647, %v2630_v30  ;;  %v2759_v7 = vand.u32 2147483647, %v2631_v24  ;;  %v2632_v28 = vsub.f32 %v2004_v57, %v7872_v43  ;;  %v2024_v33 = vrot.slane %v1277_v40, %v7877_v44 }
 0x214   : > { %v7909_v29 = vpop.f32.mrb[38].mxu1  ;;  %v2634_v1 = vsub.f32 %v2012_v22, %v7872_v43  ;;  %v2635_v39 = vsub.f32 %v2016_v58, %v7872_v43  ;;  %v2020_v4 = vrot.slane %v1253_v25, %v7877_v44  ;;  %v1269_v6 = vcombine.high %v1261_v52, %v1261_v52 }
 0x215   : > { %v1127_v37 = vpop.f32.mrb[39].mxu1  ;;  %6456 = vmatmul.mubr.msk.f32.vlgmr.msra.gmra.mrb[64].mxu0 %vm2895_vm6, %v2758_v18  ;;  %v7916_v42 = vsub.f32 %v2024_v33, %v7883_v47  ;;  %v1299_v8 = vcombine.high %v1277_v40, %v1277_v40  ;;  %v2760_v9 = vand.u32 2147483647, %v2632_v28  ;;  %v2761_v11 = vand.u32 2147483647, %v2633_v59 }
 0x216   : > { %6458 = vmatprep.mubr.msk.f32.mxu0 %vm2895_vm6, %v2759_v7  ;;  %v2762_v48 = vand.u32 2147483647, %v2634_v1  ;;  %v1268_v50 = vrot.slane %v1254_v19, %v7870_v34  ;;  %v2636_v14 = vsub.f32 %v2020_v4, %v7872_v43  ;;  %v1291_v15 = vrot.slane %v1269_v6, %v7870_v34 }
 0x217   : > { %v2032_v17 = vrot.slane %v1299_v8, %v7877_v44  ;;  %v1310_v49 = vrot.slane %v7895_v3, %v7870_v34  ;;  %v2763_v51 = vand.u32 2147483647, %v2635_v39  ;;  %v2765_v52 = vand.u32 2147483647, %v7916_v42 }
 0x218   : > { %v7925_v56 = vpop.f32.mrb[40].mxu1  ;;  %v1284_v20 = vrot.slane %v1268_v50, %v7870_v34  ;;  %v1270_v21 = vcombine.high %v1268_v50, %v1268_v50  ;;  %v2028_v43 = vrot.slane %v1291_v15, %v7877_v44  ;;  %v1301_v55 = vcombine.high %v1291_v15, %v1291_v15 }
 0x219   : > { %v1132_v23 = vpop.f32.mrb[41].mxu1  ;;  %6459 = vmatmul.mubr.msk.f32.gmra.mrb[66].mxu0 %vm2895_vm6, %v2760_v9  ;;  %v2639_v19 = vsub.f32 %v2032_v17, %v7883_v47  ;;  %v1326_v5 = vrot.slane %v1310_v49, %v7870_v34  ;;  %v1318_v12 = vcombine.high %v1310_v49, %v1310_v49  ;;  %v2764_v45 = vand.u32 2147483647, %v2636_v14 }
 0x21a   : > { %6461 = vmatprep.mubr.msk.f32.mxu0 %vm2895_vm6, %v2761_v11  ;;  %v2040_v32 = vrot.slane %v1284_v20, %v7877_v44  ;;  %v1298_v35 = vrot.slane %v1270_v21, %v7870_v34  ;;  %v1300_v40 = vcombine.high %v1284_v20, %v1284_v20  ;;  %v2638_v30 = vsub.f32 %v2028_v43, %v7883_v47 }
 0x21b   : > { %v2036_v24 = vrot.slane %v1301_v55, %v7877_v44  ;;  %v2056_v57 = vrot.slane %v1326_v5, %v7877_v44  ;;  %v1340_v1 = vrot.slane %v1318_v12, %v7870_v34  ;;  %v1303_v39 = vcombine.high %v7895_v3, %v7895_v3 }
 0x21c   : > { %v7939_v59 = vpop.f32.mrb[42].mxu1  ;;  %v7942_v22 = vsub.f32 %v2040_v32, %v7883_v47  ;;  %v2044_v58 = vrot.slane %v1298_v35, %v7877_v44  ;;  %v2048_v25 = vrot.slane %v1300_v40, %v7877_v44  ;;  %v1302_v18 = vcombine.high %v1298_v35, %v1298_v35 }
 0x21d   : > { %v1137_v7 = vpop.f32.mrb[43].mxu1  ;;  %6462 = vmatmul.mubr.msk.f32.gmra.mrb[68].mxu0 %vm2895_vm6, %v2762_v48  ;;  %v2640_v28 = vsub.f32 %v2036_v24, %v7883_v47  ;;  %v7949_v33 = vsub.f32 %v2056_v57, %v7895_v3  ;;  %v2767_v4 = vand.u32 2147483647, %v2639_v19  ;;  %v2766_v8 = vand.u32 2147483647, %v2638_v30 }
 0x21e   : > { %6464 = vmatprep.mubr.msk.f32.mxu0 %vm2895_vm6, %v2763_v51  ;;  %v7956_v37 = vsub.f32 %v2044_v58, %v7883_v47  ;;  %v2643_v42 = vsub.f32 %v2048_v25, %v7883_v47  ;;  %v2052_v6 = vrot.slane %v1302_v18, %v7877_v44  ;;  %v2769_v9 = vand.u32 2147483647, %v7942_v22 }
 0x21f   : > { %v2060_v11 = vrot.slane %v1340_v1, %v7877_v44  ;;  %v1348_v48 = vcombine.high %v1326_v5, %v1326_v5  ;;  %v2768_v14 = vand.u32 2147483647, %v2640_v28  ;;  %v2773_v17 = vand.u32 2147483647, %v7949_v33 }
 0x220   : > { %v7962_v50 = vpop.f32.mrb[44].mxu1  ;;  %v2644_v15 = vsub.f32 %v2052_v6, %v7883_v47  ;;  %v1350_v49 = vcombine.high %v1340_v1, %v1340_v1  ;;  %v1317_v23 = vrot.slane %v1303_v39, %v7870_v34  ;;  %v1359_v43 = vrot.slane %v7909_v29, %v7870_v34 }
 0x221   : > { %v1142_v51 = vpop.f32.mrb[45].mxu1  ;;  %6465 = vmatmul.mubr.msk.f32.gmra.mrb[70].mxu0 %vm2895_vm6, %v2764_v45  ;;  %v7968_v20 = vsub.f32 %v2060_v11, %v7895_v3  ;;  %v2064_v21 = vrot.slane %v1348_v48, %v7877_v44  ;;  %v2770_v47 = vand.u32 2147483647, %v7956_v37  ;;  %v2771_v19 = vand.u32 2147483647, %v2643_v42 }
 0x222   : > { %6467 = vmatprep.mubr.msk.f32.mxu0 %vm2895_vm6, %v2765_v52  ;;  %v2068_v55 = vrot.slane %v1350_v49, %v7877_v44  ;;  %v1352_v5 = vcombine.high %v7909_v29, %v7909_v29  ;;  %v7979_v32 = vand.u32 2147483647, %v2644_v15  ;;  %v1333_v35 = vrot.slane %v1317_v23, %v7870_v34 }
 0x223   : > { %v1319_v40 = vcombine.high %v1317_v23, %v1317_v23  ;;  %v7984_v12 = vrot.slane %v7925_v56, %v7870_v34  ;;  %v2774_v52 = vand.u32 2147483647, %v7968_v20  ;;  %v2647_v30 = vsub.f32 %v2064_v21, %v7895_v3 }
 0x224   : > { %v7986_v45 = vpop.f32.mrb[46].mxu1  ;;  %v1375_v24 = vrot.slane %v1359_v43, %v7870_v34  ;;  %v1367_v57 = vcombine.high %v1359_v43, %v1359_v43  ;;  %v2648_v58 = vsub.f32 %v2068_v55, %v7895_v3  ;;  %v2072_v25 = vrot.slane %v1333_v35, %v7877_v44 }
 0x225   : > { %v1147_v22 = vpop.f32.mrb[47].mxu1  ;;  %6468 = vmatmul.mubr.msk.f32.gmra.mrb[72].mxu0 %vm2895_vm6, %v2766_v8  ;;  %v1347_v18 = vrot.slane %v1319_v40, %v7870_v34  ;;  %v1349_v7 = vcombine.high %v1333_v35, %v1333_v35  ;;  %v1366_v37 = vrot.slane %v1352_v5, %v7870_v34  ;;  %v8012_v23 = vand.u32 2147483647, %v2647_v30 }
 0x226   : > { %6470 = vmatprep.mubr.msk.f32.mxu0 %vm2895_vm6, %v2767_v4  ;;  %v2088_v28 = vrot.slane %v1375_v24, %v7877_v44  ;;  %v1389_v1 = vrot.slane %v1367_v57, %v7870_v34  ;;  %v1397_v39 = vcombine.high %v1375_v24, %v1375_v24  ;;  %v8000_v42 = vsub.f32 %v2072_v25, %v7895_v3 }
 0x227   : > { %v2076_v6 = vrot.slane %v1347_v18, %v7877_v44  ;;  %v2080_v8 = vrot.slane %v1349_v7, %v7877_v44  ;;  %v1351_v11 = vcombine.high %v1347_v18, %v1347_v18  ;;  %v8020_v35 = vand.u32 2147483647, %v2648_v58 }
 0x228   : > { %v8004_v48 = vpop.f32.mrb[48].mxu1  ;;  %v8007_v15 = vsub.f32 %v2088_v28, %v7909_v29  ;;  %v2092_v4 = vrot.slane %v1389_v1, %v7877_v44  ;;  %v2096_v49 = vrot.slane %v1397_v39, %v7877_v44  ;;  %v1399_v51 = vcombine.high %v1389_v1, %v1389_v1 }
 0x229   : > { %v1152_v21 = vpop.f32.mrb[49].mxu1  ;;  %6471 = vmatmul.mubr.msk.f32.gmra.mrb[74].mxu0 %vm2895_vm6, %v2768_v14  ;;  %v8015_v43 = vsub.f32 %v2076_v6, %v7895_v3  ;;  %v2651_v55 = vsub.f32 %v2080_v8, %v7895_v3  ;;  %v2084_v5 = vrot.slane %v1351_v11, %v7877_v44  ;;  %v1382_v25 = vrot.slane %v1366_v37, %v7870_v34 }
 0x22a   : > { %6473 = vmatprep.mubr.msk.f32.mxu0 %vm2895_vm6, %v2769_v9  ;;  %v8023_v40 = vsub.f32 %v2092_v4, %v7909_v29  ;;  %v2655_v24 = vsub.f32 %v2096_v49, %v7909_v29  ;;  %v2100_v14 = vrot.slane %v1399_v51, %v7877_v44  ;;  %v1368_v28 = vcombine.high %v1366_v37, %v1366_v37 }
 0x22b   : > { %v2652_v57 = vsub.f32 %v2084_v5, %v7895_v3  ;;  %v8034_v58 = vand.u32 2147483647, %v2651_v55  ;;  %v2104_v3 = vrot.slane %v1382_v25, %v7877_v44  ;;  %v1398_v6 = vcombine.high %v1382_v25, %v1382_v25 }
 0x22c   : > { %v8031_v18 = vpop.f32.mrb[50].mxu1  ;;  %v2656_v7 = vsub.f32 %v2100_v14, %v7909_v29  ;;  %v8042_v8 = vrot.slane %v7984_v12, %v7870_v34  ;;  %v8047_v4 = vand.u32 2147483647, %v2655_v24  ;;  %v1396_v37 = vrot.slane %v1368_v28, %v7870_v34 }
 0x22d   : > { %v1157_v1 = vpop.f32.mrb[51].mxu1  ;;  %6474 = vmatmul.mubr.msk.f32.gmra.mrb[76].mxu0 %vm2895_vm6, %v2770_v47  ;;  %v8045_v11 = vand.u32 2147483647, %v2652_v57  ;;  %v1416_v47 = vcombine.high %v7984_v12, %v7984_v12  ;;  %v8055_v51 = vsub.f32 %v2104_v3, %v7909_v29  ;;  %v2112_v21 = vrot.slane %v1398_v6, %v7877_v44 }
 0x22e   : > { %6476 = vmatprep.mubr.msk.f32.mxu0 %vm2895_vm6, %v2771_v19  ;;  %v8052_v49 = vand.u32 2147483647, %v2656_v7  ;;  %v2120_v55 = vrot.slane %v8042_v8, %v7877_v44  ;;  %v2108_v5 = vrot.slane %v1396_v37, %v7877_v44  ;;  %v1400_v24 = vcombine.high %v1396_v37, %v1396_v37 }
 0x22f   : > { %v8064_v14 = vrot.slane %v1416_v47, %v7870_v34  ;;  %v1401_v12 = vcombine.high %v7925_v56, %v7925_v56  ;;  %v2659_v28 = vsub.f32 %v2112_v21, %v7909_v29  ;;  %v9746_v16 = vand.u32 2147483647, %v8000_v42 }
 0x230   : > { %v8060_v19 = vpop.f32.mrb[52].mxu1  ;;  %v8081_v3 = vsub.f32 %v2108_v5, %v7909_v29  ;;  %v8085_v6 = vsub.f32 %v2120_v55, %v7925_v56 }
 0x231   : > { %v1162_v57 = vpop.f32.mrb[53].mxu1  ;;  %6477 = vmatmul.mubr.msk.f32.gmra.mrb[78].mxu0 %vm2895_vm6, %v7979_v32  ;;  %v1702_v25 = vrot.slane %v8060_v19, %v7870_v34  ;;  %v1695_v7 = vcombine.high %v8060_v19, %v8060_v19  ;;  %v2116_v32 = vrot.slane %v1400_v24, %v7877_v44  ;;  %v2124_v37 = vrot.slane %v8064_v14, %v7877_v44 }
 0x232   : > { %6479 = vmatprep.mubr.msk.f32.mxu0 %vm2895_vm6, %v2773_v17  ;;  %v8097_v39 = vand.u32 2147483647, %v2659_v28  ;;  %v8101_v24 = vrot.slane %v1401_v12, %v7870_v34 }
 0x233   : > { %v1710_v47 = vcombine.high %v1702_v25, %v1702_v25  ;;  %v8090_v21 = vrot.slane %v1702_v25, %v7870_v34  ;;  %v1709_v57 = vrot.slane %v1695_v7, %v7870_v34  ;;  %v2660_v55 = vsub.f32 %v2116_v32, %v7909_v29 }
 0x234   : > { %v8094_v17 = vpop.f32.mrb[54].mxu1 }
 0x235   : > { %v1167_v22 = vpop.f32.mrb[55].mxu1  ;;  %6480 = vmatmul.mubr.msk.f32.gmra.mrb[80].mxu0 %vm2895_vm6, %v2774_v52  ;;  %v8107_v25 = vrot.slane %v1710_v47, %v7870_v34  ;;  %v1740_v7 = vcombine.high %v8090_v21, %v8090_v21  ;;  %v1725_v5 = vrot.slane %v1709_v57, %v7870_v34  ;;  %v1711_v28 = vcombine.high %v1709_v57, %v1709_v57 }
 0x236   : > { %6482 = vmatprep.mubr.msk.f32.mxu0 %vm2895_vm6, %v8012_v23  ;;  %v1751_v29 = vrot.slane %v8094_v17, %v7870_v34  ;;  %v1744_v20 = vcombine.high %v8094_v17, %v8094_v17  ;;  %v8120_v22 = vsub.f32 %v2124_v37, %v7925_v56  ;;  %v8130_v30 = vand.u32 2147483647, %v2660_v55 }
 0x237   : > { %v2320_v12 = vrot.slane %v1740_v7, %v7877_v44  ;;  %v1742_v32 = vcombine.high %v8107_v25, %v8107_v25  ;;  %v2328_v47 = vrot.slane %v1725_v5, %v7877_v44  ;;  %v1739_v23 = vrot.slane %v1711_v28, %v7870_v34 }
 0x238   : > { %v8127_v57 = vpop.f32.mrb[56].mxu1  ;;  %v1741_v33 = vcombine.high %v1725_v5, %v1725_v5  ;;  %v1767_v1 = vrot.slane %v1751_v29, %v7870_v34  ;;  %v1759_v9 = vcombine.high %v1751_v29, %v1751_v29 }
 0x239   : > { %v1172_v52 = vpop.f32.mrb[57].mxu1  ;;  %6483 = vmatmul.mubr.msk.f32.gmra.mrb[82].mxu0 %vm2895_vm6, %v8020_v35  ;;  %v2711_v37 = vsub.f32 %v2320_v12, %v8060_v19  ;;  %v2324_v7 = vrot.slane %v1742_v32, %v7877_v44  ;;  %v2713_v60 = vsub.f32 %v2328_v47, %v8060_v19  ;;  %v2332_v28 = vrot.slane %v1739_v23, %v7877_v44 }
 0x23a   : > { %6485 = vmatprep.mubr.msk.f32.mxu0 %vm2895_vm6, %v9746_v16  ;;  %v2336_v5 = vrot.slane %v1741_v33, %v7877_v44  ;;  %v1743_v55 = vcombine.high %v1739_v23, %v1739_v23  ;;  %v2344_v29 = vrot.slane %v1767_v1, %v7877_v44  ;;  %v1781_v52 = vrot.slane %v1759_v9, %v7870_v34 }
 0x23b   : > { %v2839_v35 = vand.u32 2147483647, %v2711_v37  ;;  %v2712_v12 = vsub.f32 %v2324_v7, %v8060_v19  ;;  %v2714_v32 = vsub.f32 %v2332_v28, %v8060_v19  ;;  %v1758_v47 = vrot.slane %v1744_v20, %v7870_v34 }
 0x23c   : > { %v8147_v54 = vpop.f32.mrb[58].mxu1  ;;  %v2715_v42 = vsub.f32 %v2336_v5, %v8060_v19  ;;  %v2340_v16 = vrot.slane %v1743_v55, %v7877_v44  ;;  %v8152_v33 = vsub.f32 %v2344_v29, %v8094_v17  ;;  %v2348_v23 = vrot.slane %v1781_v52, %v7877_v44 }
 0x23d   : > { %v1177_v61 = vpop.f32.mrb[59].mxu1  ;;  %v9747_v9 = vand.u32 2147483647, %v8015_v43  ;;  %6578 = vmatprep.mubr.msk.f32.mxu1 %vm2895_vm6, %v2839_v35  ;;  %v2840_v37 = vand.u32 2147483647, %v2712_v12  ;;  %v1789_v20 = vcombine.high %v1767_v1, %v1767_v1  ;;  %v1791_v7 = vcombine.high %v1781_v52, %v1781_v52 }
 0x23e   : > { %v2790_v28 = vand.u32 2147483647, %v8120_v22  ;;  %v2841_v5 = vand.u32 2147483647, %v2713_v60  ;;  %v2842_v55 = vand.u32 2147483647, %v2714_v32  ;;  %v2716_v29 = vsub.f32 %v2340_v16, %v8060_v19 }
 0x23f   : > { %6486 = vmatmul.mubr.msk.f32.gmra.mrb[84].mxu0 %vm2895_vm6, %v9747_v9  ;;  %v8164_v61 = vsub.f32 %v2348_v23, %v8094_v17  ;;  %6579 = vmatmul.mubr.msk.f32.vlgmr.msra.gmra.mrb[64].mxu1 %vm2895_vm6, %v2840_v37  ;;  %v2352_v43 = vrot.slane %v1789_v20, %v7877_v44  ;;  %v2356_v35 = vrot.slane %v1791_v7, %v7877_v44  ;;  %v2843_v60 = vand.u32 2147483647, %v2715_v42 }
 0x240   : > { %6488 = vmatprep.mubr.msk.f32.mxu0 %vm2895_vm6, %v8034_v58  ;;  %v1774_v1 = vrot.slane %v1758_v47, %v7870_v34  ;;  %v1760_v52 = vcombine.high %v1758_v47, %v1758_v47  ;;  %v8170_v12 = vpop.f32.mrb[60].mxu1  ;;  %6581 = vmatprep.mubr.msk.f32.mxu1 %vm2895_vm6, %v2841_v5  ;;  %v2845_v58 = vand.u32 2147483647, %v8152_v33  ;;  %v9748_v32 = vcombine.high %v8042_v8, %v8042_v8 }
 0x241   : > { %v1800_v23 = vrot.slane %v8127_v57, %v7870_v34  ;;  %v1182_v9 = vpop.f32.mrb[61].mxu1  ;;  %v2719_v47 = vsub.f32 %v2352_v43, %v8094_v17  ;;  %v2720_v37 = vsub.f32 %v2356_v35, %v8094_v17  ;;  %v9749_v20 = vand.u32 2147483647, %v8007_v15 }
 0x242   : > { %v2128_v16 = vrot.slane %v9748_v32, %v7877_v44  ;;  %v2360_v42 = vrot.slane %v1774_v1, %v7877_v44  ;;  %v1788_v33 = vrot.slane %v1760_v52, %v7870_v34  ;;  %v2844_v8 = vand.u32 2147483647, %v2716_v29 }
 0x243   : > { %6489 = vmatmul.mubr.msk.f32.gmra.mrb[86].mxu0 %vm2895_vm6, %v8045_v11  ;;  %v1790_v7 = vcombine.high %v1774_v1, %v1774_v1  ;;  %v1816_v5 = vrot.slane %v1800_v23, %v7870_v34  ;;  %v1448_v32 = vcombine.high %v8064_v14, %v8064_v14  ;;  %6582 = vmatmul.mubr.msk.f32.gmra.mrb[66].mxu1 %vm2895_vm6, %v2842_v55  ;;  %v2846_v11 = vand.u32 2147483647, %v8164_v61 }
 0x244   : > { %6491 = vmatprep.mubr.msk.f32.mxu0 %vm2895_vm6, %v9749_v20  ;;  %v2847_v43 = vand.u32 2147483647, %v2719_v47  ;;  %v2364_v35 = vrot.slane %v1788_v33, %v7877_v44  ;;  %v2663_v52 = vsub.f32 %v2128_v16, %v7925_v56  ;;  %v8196_v9 = vpop.f32.mrb[62].mxu1  ;;  %6584 = vmatprep.mubr.msk.f32.mxu1 %vm2895_vm6, %v2843_v60  ;;  %v2721_v15 = vsub.f32 %v2360_v42, %v8094_v17 }
 0x245   : > { %v2368_v29 = vrot.slane %v1790_v7, %v7877_v44  ;;  %v1792_v1 = vcombine.high %v1788_v33, %v1788_v33  ;;  %v2376_v14 = vrot.slane %v1816_v5, %v7877_v44  ;;  %v1187_v20 = vpop.f32.mrb[63].mxu1  ;;  %v9750_v55 = vand.u32 2147483647, %v8023_v40 }
 0x246   : > { %v2848_v61 = vand.u32 2147483647, %v2720_v37  ;;  %v8206_v47 = vsub.f32 %v2364_v35, %v8094_v17  ;;  %v2132_v16 = vrot.slane %v1448_v32, %v7877_v44  ;;  %v1431_v60 = vrot.slane %v8101_v24, %v7870_v34 }
 0x247   : > { %6492 = vmatmul.mubr.msk.f32.gmra.mrb[88].mxu0 %vm2895_vm6, %v9750_v55  ;;  %v2723_v42 = vsub.f32 %v2368_v29, %v8094_v17  ;;  %v2372_v33 = vrot.slane %v1792_v1, %v7877_v44  ;;  %v8216_v40 = vsub.f32 %v2376_v14, %v8127_v57  ;;  %v1808_v7 = vcombine.high %v1800_v23, %v1800_v23 }
 0x248   : > { %6494 = vmatprep.mubr.msk.f32.mxu0 %vm2895_vm6, %v8047_v4  ;;  %6585 = vmatmul.mubr.msk.f32.gmra.mrb[68].mxu1 %vm2895_vm6, %v2844_v8  ;;  %v8219_v37 = vand.u32 2147483647, %v2663_v52  ;;  %v2664_v32 = vsub.f32 %v2132_v16, %v7925_v56  ;;  %v2136_v35 = vrot.slane %v1431_v60, %v7877_v44  ;;  %v1838_v20 = vcombine.high %v1816_v5, %v1816_v5 }
 0x249   : > { %6587 = vmatprep.mubr.msk.f32.mxu1 %vm2895_vm6, %v2845_v58  ;;  %v2849_v4 = vand.u32 2147483647, %v2721_v15  ;;  %v2850_v29 = vand.u32 2147483647, %v8206_v47  ;;  %v2851_v55 = vand.u32 2147483647, %v2723_v42  ;;  %v1830_v1 = vrot.slane %v1808_v7, %v7870_v34 }
 0x24a   : > { %v2724_v23 = vsub.f32 %v2372_v33, %v8094_v17  ;;  %v2853_v8 = vand.u32 2147483647, %v8216_v40  ;;  %v2384_v52 = vrot.slane %v1838_v20, %v7877_v44  ;;  %v1417_v5 = vcombine.high %v8101_v24, %v8101_v24 }
 0x24b   : > { %6495 = vmatmul.mubr.msk.f32.gmra.mrb[90].mxu0 %vm2895_vm6, %v8052_v49  ;;  %v9751_v58 = vand.u32 2147483647, %v8055_v51  ;;  %v8237_v15 = vsub.f32 %v2136_v35, %v7925_v56  ;;  %v2380_v14 = vrot.slane %v1830_v1, %v7877_v44  ;;  %v1447_v47 = vcombine.high %v1431_v60, %v1431_v60 }
 0x24c   : > { %v1840_v49 = vcombine.high %v1830_v1, %v1830_v1  ;;  %6588 = vmatmul.mubr.msk.f32.gmra.mrb[70].mxu1 %vm2895_vm6, %v2846_v11  ;;  %v8241_v17 = vand.u32 2147483647, %v2664_v32  ;;  %v2727_v16 = vsub.f32 %v2384_v52, %v8127_v57  ;;  %v1445_v42 = vrot.slane %v1417_v5, %v7870_v34 }
 0x24d   : > { %6497 = vmatprep.mubr.msk.f32.mxu0 %vm2895_vm6, %v9751_v58  ;;  %v1793_v51 = vcombine.high %v8127_v57, %v8127_v57  ;;  %6590 = vmatprep.mubr.msk.f32.mxu1 %vm2895_vm6, %v2847_v43  ;;  %v8249_v24 = vsub.f32 %v2380_v14, %v8127_v57  ;;  %v2144_v33 = vrot.slane %v1447_v47, %v7877_v44  ;;  %v9752_v7 = vand.u32 2147483647, %v8081_v3 }
 0x24e   : > { %v2388_v60 = vrot.slane %v1840_v49, %v7877_v44  ;;  %v1457_v11 = vrot.slane %v7939_v59, %v7870_v34  ;;  %v2852_v32 = vand.u32 2147483647, %v2724_v23  ;;  %v2140_v35 = vrot.slane %v1445_v42, %v7877_v44 }
 0x24f   : > { %6498 = vmatmul.mubr.msk.f32.gmra.mrb[92].mxu0 %vm2895_vm6, %v9752_v7  ;;  %v1807_v20 = vrot.slane %v1793_v51, %v7870_v34  ;;  %v1449_v43 = vcombine.high %v1445_v42, %v1445_v42  ;;  %v2793_v1 = vand.u32 2147483647, %v8237_v15  ;;  %v2667_v52 = vsub.f32 %v2144_v33, %v7925_v56 }
 0x250   : > { %6500 = vmatprep.mubr.msk.f32.mxu0 %vm2895_vm6, %v8097_v39  ;;  %v2728_v5 = vsub.f32 %v2388_v60, %v8127_v57  ;;  %v1473_v58 = vrot.slane %v1457_v11, %v7870_v34  ;;  %6591 = vmatmul.mubr.msk.f32.gmra.mrb[72].mxu1 %vm2895_vm6, %v2848_v61  ;;  %v8268_v3 = vsub.f32 %v2140_v35, %v7925_v56  ;;  %v2854_v39 = vand.u32 2147483647, %v8249_v24 }
 0x251   : > { %v1823_v23 = vrot.slane %v1807_v20, %v7870_v34  ;;  %v2148_v14 = vrot.slane %v1449_v43, %v7877_v44  ;;  %v1809_v47 = vcombine.high %v1807_v20, %v1807_v20  ;;  %6593 = vmatprep.mubr.msk.f32.mxu1 %vm2895_vm6, %v2849_v4  ;;  %v2855_v15 = vand.u32 2147483647, %v2727_v16 }
 0x252   : > { %v2152_v49 = vrot.slane %v1473_v58, %v7877_v44  ;;  %v1465_v42 = vcombine.high %v1457_v11, %v1457_v11  ;;  %v8277_v61 = vand.u32 2147483647, %v2667_v52  ;;  %v9753_v7 = vand.u32 2147483647, %v8085_v6 }
 0x253   : > { %6501 = vmatmul.mubr.msk.f32.gmra.mrb[94].mxu0 %vm2895_vm6, %v8130_v30  ;;  %v2392_v51 = vrot.slane %v1823_v23, %v7877_v44  ;;  %v2668_v33 = vsub.f32 %v2148_v14, %v7925_v56  ;;  %v1837_v60 = vrot.slane %v1809_v47, %v7870_v34  ;;  %v8285_v4 = vand.u32 2147483647, %v2728_v5 }
 0x254   : > { %6503 = vmatprep.mubr.msk.f32.mxu0 %vm2895_vm6, %v9753_v7  ;;  %v1839_v16 = vcombine.high %v1823_v23, %v1823_v23  ;;  %v1487_v24 = vrot.slane %v1465_v42, %v7870_v34  ;;  %v1495_v11 = vcombine.high %v1473_v58, %v1473_v58  ;;  %6594 = vmatmul.mubr.msk.f32.gmra.mrb[74].mxu1 %vm2895_vm6, %v2850_v29  ;;  %v2794_v30 = vand.u32 2147483647, %v8268_v3 }
 0x255   : > { %v8291_v35 = vsub.f32 %v2152_v49, %v7939_v59  ;;  %v2396_v56 = vrot.slane %v1837_v60, %v7877_v44  ;;  %v1841_v20 = vcombine.high %v1837_v60, %v1837_v60  ;;  %6596 = vmatprep.mubr.msk.f32.mxu1 %vm2895_vm6, %v2851_v55  ;;  %v2729_v6 = vsub.f32 %v2392_v51, %v8127_v57 }
 0x256   : > { %v2400_v43 = vrot.slane %v1839_v16, %v7877_v44  ;;  %v2156_v52 = vrot.slane %v1487_v24, %v7877_v44  ;;  %v2160_v5 = vrot.slane %v1495_v11, %v7877_v44  ;;  %v2796_v29 = vand.u32 2147483647, %v2668_v33 }
 0x257   : > { %6504 = vmatmul.mubr.msk.f32.gmra.mrb[96].mxu0 %vm2895_vm6, %v2790_v28  ;;  %v8303_v58 = vsub.f32 %v2396_v56, %v8127_v57  ;;  %v2404_v3 = vrot.slane %v1841_v20, %v7877_v44  ;;  %v1849_v55 = vrot.slane %v8147_v54, %v7870_v34  ;;  %v1497_v28 = vcombine.high %v1487_v24, %v1487_v24 }
 0x258   : > { %6506 = vmatprep.mubr.msk.f32.mxu0 %vm2895_vm6, %v8219_v37  ;;  %v2731_v23 = vsub.f32 %v2400_v43, %v8127_v57  ;;  %v8312_v14 = vsub.f32 %v2156_v52, %v7939_v59  ;;  %v2671_v22 = vsub.f32 %v2160_v5, %v7939_v59  ;;  %6597 = vmatmul.mubr.msk.f32.gmra.mrb[76].mxu1 %vm2895_vm6, %v2852_v32  ;;  %v2797_v47 = vand.u32 2147483647, %v8291_v35 }
 0x259   : > { %v2732_v49 = vsub.f32 %v2404_v3, %v8127_v57  ;;  %v1865_v42 = vrot.slane %v1849_v55, %v7870_v34  ;;  %v1450_v51 = vcombine.high %v7939_v59, %v7939_v59  ;;  %6599 = vmatprep.mubr.msk.f32.mxu1 %vm2895_vm6, %v2853_v8  ;;  %v2857_v37 = vand.u32 2147483647, %v2729_v6 }
 0x25a   : > { %v2858_v33 = vand.u32 2147483647, %v8303_v58  ;;  %v2859_v60 = vand.u32 2147483647, %v2731_v23  ;;  %v2164_v7 = vrot.slane %v1497_v28, %v7877_v44  ;;  %v2798_v57 = vand.u32 2147483647, %v8312_v14 }
 0x25b   : > { %6507 = vmatmul.mubr.msk.f32.gmra.mrb[98].mxu0 %vm2895_vm6, %v8241_v17  ;;  %v2408_v32 = vrot.slane %v1865_v42, %v7877_v44  ;;  %v1464_v16 = vrot.slane %v1450_v51, %v7870_v34  ;;  %v1857_v24 = vcombine.high %v1849_v55, %v1849_v55  ;;  %v2799_v40 = vand.u32 2147483647, %v2671_v22 }
 0x25c   : > { %6509 = vmatprep.mubr.msk.f32.mxu0 %vm2895_vm6, %v2793_v1  ;;  %v1887_v8 = vcombine.high %v1865_v42, %v1865_v42  ;;  %v1842_v11 = vcombine.high %v8147_v54, %v8147_v54  ;;  %v8336_v35 = vrot.slane %v7962_v50, %v7870_v34  ;;  %6600 = vmatmul.mubr.msk.f32.gmra.mrb[78].mxu1 %vm2895_vm6, %v2854_v39  ;;  %v2860_v17 = vand.u32 2147483647, %v2732_v49 }
 0x25d   : > { %v1480_v56 = vrot.slane %v1464_v16, %v7870_v34  ;;  %v1879_v20 = vrot.slane %v1857_v24, %v7870_v34  ;;  %v1466_v6 = vcombine.high %v1464_v16, %v1464_v16  ;;  %6602 = vmatprep.mubr.msk.f32.mxu1 %vm2895_vm6, %v2855_v15  ;;  %v2733_v1 = vsub.f32 %v2408_v32, %v8147_v54 }
 0x25e   : > { %v2672_v43 = vsub.f32 %v2164_v7, %v7939_v59  ;;  %v2416_v52 = vrot.slane %v1887_v8, %v7877_v44  ;;  %v1856_v5 = vrot.slane %v1842_v11, %v7870_v34  ;;  %v1522_v55 = vrot.slane %v8336_v35, %v7870_v34 }
 0x25f   : > { %6510 = vmatmul.mubr.msk.f32.gmra.mrb[100].mxu0 %vm2895_vm6, %v2794_v30  ;;  %v2168_v39 = vrot.slane %v1480_v56, %v7877_v44  ;;  %v2412_v58 = vrot.slane %v1879_v20, %v7877_v44  ;;  %v1494_v3 = vrot.slane %v1466_v6, %v7870_v34  ;;  %v1496_v23 = vcombine.high %v1480_v56, %v1480_v56 }
 0x260   : > { %6512 = vmatprep.mubr.msk.f32.mxu0 %vm2895_vm6, %v8277_v61  ;;  %v2735_v15 = vsub.f32 %v2416_v52, %v8147_v54  ;;  %v1889_v14 = vcombine.high %v1879_v20, %v1879_v20  ;;  %v1872_v22 = vrot.slane %v1856_v5, %v7870_v34  ;;  %6603 = vmatmul.mubr.msk.f32.gmra.mrb[80].mxu1 %vm2895_vm6, %v8285_v4  ;;  %v2800_v51 = vand.u32 2147483647, %v2672_v43 }
 0x261   : > { %v2673_v30 = vsub.f32 %v2168_v39, %v7939_v59  ;;  %v2734_v28 = vsub.f32 %v2412_v58, %v8147_v54  ;;  %v2172_v49 = vrot.slane %v1494_v3, %v7877_v44  ;;  %v1498_v42 = vcombine.high %v1494_v3, %v1494_v3  ;;  %6605 = vmatprep.mubr.msk.f32.mxu1 %vm2895_vm6, %v2857_v37 }
 0x262   : > { %v2176_v61 = vrot.slane %v1496_v23, %v7877_v44  ;;  %v2420_v7 = vrot.slane %v1889_v14, %v7877_v44  ;;  %v2424_v32 = vrot.slane %v1872_v22, %v7877_v44  ;;  %v2861_v16 = vand.u32 2147483647, %v2733_v1 }
 0x263   : > { %6513 = vmatmul.mubr.msk.f32.gmra.mrb[102].mxu0 %vm2895_vm6, %v2796_v29  ;;  %v2863_v4 = vand.u32 2147483647, %v2735_v15  ;;  %v2674_v24 = vsub.f32 %v2172_v49, %v7939_v59  ;;  %v2180_v8 = vrot.slane %v1498_v42, %v7877_v44  ;;  %v2184_v20 = vrot.slane %v1522_v55, %v7877_v44 }
 0x264   : > { %6515 = vmatprep.mubr.msk.f32.mxu0 %vm2895_vm6, %v2797_v47  ;;  %v2675_v11 = vsub.f32 %v2176_v61, %v7939_v59  ;;  %v2736_v37 = vsub.f32 %v2420_v7, %v8147_v54  ;;  %v8372_v56 = vsub.f32 %v2424_v32, %v8147_v54  ;;  %6606 = vmatmul.mubr.msk.f32.gmra.mrb[82].mxu1 %vm2895_vm6, %v2858_v33  ;;  %v2801_v29 = vand.u32 2147483647, %v2673_v30 }
 0x265   : > { %v2862_v6 = vand.u32 2147483647, %v2734_v28  ;;  %v1858_v1 = vcombine.high %v1856_v5, %v1856_v5  ;;  %v1888_v43 = vcombine.high %v1872_v22, %v1872_v22  ;;  %6608 = vmatprep.mubr.msk.f32.mxu1 %vm2895_vm6, %v2859_v60  ;;  %v2802_v52 = vand.u32 2147483647, %v2674_v24 }
 0x266   : > { %v2803_v39 = vand.u32 2147483647, %v2675_v11  ;;  %v2864_v47 = vand.u32 2147483647, %v2736_v37  ;;  %v2676_v58 = vsub.f32 %v2180_v8, %v7939_v59  ;;  %v2865_v3 = vand.u32 2147483647, %v8372_v56 }
 0x267   : > { %6516 = vmatmul.mubr.msk.f32.gmra.mrb[104].mxu0 %vm2895_vm6, %v2798_v57  ;;  %v1886_v15 = vrot.slane %v1858_v1, %v7870_v34  ;;  %v2432_v23 = vrot.slane %v1888_v43, %v7877_v44  ;;  %v1514_v33 = vcombine.high %v8336_v35, %v8336_v35  ;;  %v2677_v60 = vsub.f32 %v2184_v20, %v7962_v50 }
 0x268   : > { %6518 = vmatprep.mubr.msk.f32.mxu0 %vm2895_vm6, %v2799_v40  ;;  %v1544_v5 = vcombine.high %v1522_v55, %v1522_v55  ;;  %v1898_v14 = vrot.slane %v8170_v12, %v7870_v34  ;;  %v1499_v59 = vcombine.high %v7962_v50, %v7962_v50  ;;  %6609 = vmatmul.mubr.msk.f32.gmra.mrb[84].mxu1 %vm2895_vm6, %v2860_v17  ;;  %v2804_v42 = vand.u32 2147483647, %v2676_v58 }
 0x269   : > { %v2428_v57 = vrot.slane %v1886_v15, %v7877_v44  ;;  %v2739_v22 = vsub.f32 %v2432_v23, %v8147_v54  ;;  %v1536_v30 = vrot.slane %v1514_v33, %v7870_v34  ;;  %v1890_v35 = vcombine.high %v1886_v15, %v1886_v15  ;;  %6611 = vmatprep.mubr.msk.f32.mxu1 %vm2895_vm6, %v2861_v16 }
 0x26a   : > { %v2192_v40 = vrot.slane %v1544_v5, %v7877_v44  ;;  %v1914_v55 = vrot.slane %v1898_v14, %v7870_v34  ;;  %v1513_v28 = vrot.slane %v1499_v59, %v7870_v34  ;;  %v1906_v49 = vcombine.high %v1898_v14, %v1898_v14 }
 0x26b   : > { %6519 = vmatmul.mubr.msk.f32.gmra.mrb[106].mxu0 %vm2895_vm6, %v2800_v51  ;;  %v2738_v17 = vsub.f32 %v2428_v57, %v8147_v54  ;;  %v2188_v61 = vrot.slane %v1536_v30, %v7877_v44  ;;  %v2436_v7 = vrot.slane %v1890_v35, %v7877_v44  ;;  %v1546_v24 = vcombine.high %v1536_v30, %v1536_v30 }
 0x26c   : > { %6521 = vmatprep.mubr.msk.f32.mxu0 %vm2895_vm6, %v2801_v29  ;;  %v2679_v32 = vsub.f32 %v2192_v40, %v7962_v50  ;;  %v2440_v16 = vrot.slane %v1914_v55, %v7877_v44  ;;  %v1529_v8 = vrot.slane %v1513_v28, %v7870_v34  ;;  %6612 = vmatmul.mubr.msk.f32.gmra.mrb[86].mxu1 %vm2895_vm6, %v2862_v6  ;;  %v2805_v11 = vand.u32 2147483647, %v2677_v60 }
 0x26d   : > { %v2867_v51 = vand.u32 2147483647, %v2739_v22  ;;  %v2678_v37 = vsub.f32 %v2188_v61, %v7962_v50  ;;  %v1928_v56 = vrot.slane %v1906_v49, %v7870_v34  ;;  %6614 = vmatprep.mubr.msk.f32.mxu1 %vm2895_vm6, %v2863_v4  ;;  %v2740_v20 = vsub.f32 %v2436_v7, %v8147_v54 }
 0x26e   : > { %v2741_v29 = vsub.f32 %v2440_v16, %v8170_v12  ;;  %v2196_v1 = vrot.slane %v1546_v24, %v7877_v44  ;;  %v2200_v43 = vrot.slane %v1529_v8, %v7877_v44  ;;  %v2866_v58 = vand.u32 2147483647, %v2738_v17 }
 0x26f   : > { %6522 = vmatmul.mubr.msk.f32.gmra.mrb[108].mxu0 %vm2895_vm6, %v2802_v52  ;;  %v2807_v6 = vand.u32 2147483647, %v2679_v32  ;;  %v2444_v15 = vrot.slane %v1928_v56, %v7877_v44  ;;  %v1936_v23 = vcombine.high %v1914_v55, %v1914_v55  ;;  %v2806_v33 = vand.u32 2147483647, %v2678_v37 }
 0x270   : > { %6524 = vmatprep.mubr.msk.f32.mxu0 %vm2895_vm6, %v2803_v39  ;;  %v2680_v4 = vsub.f32 %v2196_v1, %v7962_v50  ;;  %v2681_v54 = vsub.f32 %v2200_v43, %v7962_v50  ;;  %v1515_v60 = vcombine.high %v1513_v28, %v1513_v28  ;;  %6615 = vmatmul.mubr.msk.f32.gmra.mrb[88].mxu1 %vm2895_vm6, %v2864_v47  ;;  %v2868_v57 = vand.u32 2147483647, %v2740_v20 }
 0x271   : > { %v2742_v5 = vsub.f32 %v2444_v15, %v8170_v12  ;;  %v2448_v14 = vrot.slane %v1936_v23, %v7877_v44  ;;  %v1545_v52 = vcombine.high %v1529_v8, %v1529_v8  ;;  %v1938_v59 = vcombine.high %v1928_v56, %v1928_v56  ;;  %6617 = vmatprep.mubr.msk.f32.mxu1 %vm2895_vm6, %v2865_v3 }
 0x272   : > { %v2869_v22 = vand.u32 2147483647, %v2741_v29  ;;  %v1543_v39 = vrot.slane %v1515_v60, %v7870_v34  ;;  %v1891_v30 = vcombine.high %v8170_v12, %v8170_v12  ;;  %v2808_v35 = vand.u32 2147483647, %v2680_v4 }
 0x273   : > { %6525 = vmatmul.mubr.msk.f32.gmra.mrb[110].mxu0 %vm2895_vm6, %v2804_v42  ;;  %v2743_v47 = vsub.f32 %v2448_v14, %v8170_v12  ;;  %v2208_v40 = vrot.slane %v1545_v52, %v7877_v44  ;;  %v2452_v55 = vrot.slane %v1938_v59, %v7877_v44  ;;  %v1555_v17 = vrot.slane %v7986_v45, %v7870_v34 }
 0x274   : > { %6527 = vmatprep.mubr.msk.f32.mxu0 %vm2895_vm6, %v2805_v11  ;;  %v2204_v3 = vrot.slane %v1543_v39, %v7877_v44  ;;  %v1905_v28 = vrot.slane %v1891_v30, %v7870_v34  ;;  %v1547_v49 = vcombine.high %v1543_v39, %v1543_v39  ;;  %6618 = vmatmul.mubr.msk.f32.gmra.mrb[90].mxu1 %vm2895_vm6, %v2866_v58  ;;  %v2809_v42 = vand.u32 2147483647, %v2681_v54 }
 0x275   : > { %v2870_v61 = vand.u32 2147483647, %v2742_v5  ;;  %v2683_v7 = vsub.f32 %v2208_v40, %v7962_v50  ;;  %v2744_v32 = vsub.f32 %v2452_v55, %v8170_v12  ;;  %6620 = vmatprep.mubr.msk.f32.mxu1 %vm2895_vm6, %v2867_v51  ;;  %v1571_v8 = vrot.slane %v1555_v17, %v7870_v34 }
 0x276   : > { %v1921_v16 = vrot.slane %v1905_v28, %v7870_v34  ;;  %v2212_v24 = vrot.slane %v1547_v49, %v7877_v44  ;;  %v1947_v11 = vrot.slane %v8196_v9, %v7870_v34  ;;  %v2871_v37 = vand.u32 2147483647, %v2743_v47 }
 0x277   : > { %6528 = vmatmul.mubr.msk.f32.gmra.mrb[112].mxu0 %vm2895_vm6, %v2806_v33  ;;  %v2682_v56 = vsub.f32 %v2204_v3, %v7962_v50  ;;  %v1907_v20 = vcombine.high %v1905_v28, %v1905_v28  ;;  %v1563_v29 = vcombine.high %v1555_v17, %v1555_v17  ;;  %v2811_v1 = vand.u32 2147483647, %v2683_v7 }
 0x278   : > { %6530 = vmatprep.mubr.msk.f32.mxu0 %vm2895_vm6, %v2807_v6  ;;  %v2456_v51 = vrot.slane %v1921_v16, %v7877_v44  ;;  %v2684_v43 = vsub.f32 %v2212_v24, %v7962_v50  ;;  %v2216_v58 = vrot.slane %v1571_v8, %v7877_v44  ;;  %6621 = vmatmul.mubr.msk.f32.gmra.mrb[92].mxu1 %vm2895_vm6, %v2868_v57  ;;  %v2872_v54 = vand.u32 2147483647, %v2744_v32 }
 0x279   : > { %v1935_v15 = vrot.slane %v1907_v20, %v7870_v34  ;;  %v1937_v23 = vcombine.high %v1921_v16, %v1921_v16  ;;  %v1585_v33 = vrot.slane %v1563_v29, %v7870_v34  ;;  %v1593_v4 = vcombine.high %v1571_v8, %v1571_v8  ;;  %6623 = vmatprep.mubr.msk.f32.mxu1 %vm2895_vm6, %v2869_v22 }
 0x27a   : > { %v2745_v6 = vsub.f32 %v2456_v51, %v8170_v12  ;;  %v2685_v60 = vsub.f32 %v2216_v58, %v7986_v45  ;;  %v1963_v5 = vrot.slane %v1947_v11, %v7870_v34  ;;  %v2810_v57 = vand.u32 2147483647, %v2682_v56 }
 0x27b   : > { %6531 = vmatmul.mubr.msk.f32.gmra.mrb[114].mxu0 %vm2895_vm6, %v2808_v35  ;;  %v2460_v50 = vrot.slane %v1935_v15, %v7877_v44  ;;  %v2464_v14 = vrot.slane %v1937_v23, %v7877_v44  ;;  %v2220_v52 = vrot.slane %v1585_v33, %v7877_v44  ;;  %v2224_v59 = vrot.slane %v1593_v4, %v7877_v44 }
 0x27c   : > { %6533 = vmatprep.mubr.msk.f32.mxu0 %vm2895_vm6, %v2809_v42  ;;  %v2812_v22 = vand.u32 2147483647, %v2684_v43  ;;  %v1939_v39 = vcombine.high %v1935_v15, %v1935_v15  ;;  %v2472_v30 = vrot.slane %v1963_v5, %v7877_v44  ;;  %6624 = vmatmul.mubr.msk.f32.gmra.mrb[94].mxu1 %vm2895_vm6, %v2870_v61  ;;  %v1595_v49 = vcombine.high %v1585_v33, %v1585_v33 }
 0x27d   : > { %v2746_v47 = vsub.f32 %v2460_v50, %v8170_v12  ;;  %v2747_v35 = vsub.f32 %v2464_v14, %v8170_v12  ;;  %v2686_v40 = vsub.f32 %v2220_v52, %v7986_v45  ;;  %v2687_v55 = vsub.f32 %v2224_v59, %v7986_v45  ;;  %6626 = vmatprep.mubr.msk.f32.mxu1 %vm2895_vm6, %v2871_v37 }
 0x27e   : > { %v2468_v3 = vrot.slane %v1939_v39, %v7877_v44  ;;  %v2749_v28 = vsub.f32 %v2472_v30, %v8196_v9  ;;  %v1548_v17 = vcombine.high %v7986_v45, %v7986_v45  ;;  %v2873_v42 = vand.u32 2147483647, %v2745_v6 }
 0x27f   : > { %6534 = vmatmul.mubr.msk.f32.gmra.mrb[116].mxu0 %vm2895_vm6, %v2810_v57  ;;  %v2813_v61 = vand.u32 2147483647, %v2685_v60  ;;  %v2874_v7 = vand.u32 2147483647, %v2746_v47  ;;  %v1955_v32 = vcombine.high %v1947_v11, %v1947_v11  ;;  %v2875_v16 = vand.u32 2147483647, %v2747_v35 }
 0x280   : > { %6536 = vmatprep.mubr.msk.f32.mxu0 %vm2895_vm6, %v2811_v1  ;;  %v2814_v24 = vand.u32 2147483647, %v2686_v40  ;;  %v2748_v8 = vsub.f32 %v2468_v3, %v8170_v12  ;;  %v2228_v37 = vrot.slane %v1595_v49, %v7877_v44  ;;  %6627 = vmatmul.mubr.msk.f32.gmra.mrb[96].mxu1 %vm2895_vm6, %v2872_v54  ;;  %v1562_v56 = vrot.slane %v1548_v17, %v7870_v34 }
 0x281   : > { %v1977_v20 = vrot.slane %v1955_v32, %v7870_v34  ;;  %v1985_v29 = vcombine.high %v1963_v5, %v1963_v5  ;;  %v1940_v51 = vcombine.high %v8196_v9, %v8196_v9  ;;  %6629 = vmatprep.mubr.msk.f32.mxu1 %vm2895_vm6, %v2873_v42  ;;  %v2815_v11 = vand.u32 2147483647, %v2687_v55 }
 0x282   : > { %v2877_v1 = vand.u32 2147483647, %v2749_v28  ;;  %v2688_v43 = vsub.f32 %v2228_v37, %v7986_v45  ;;  %v1604_v12 = vrot.slane %v8004_v48, %v7870_v34  ;;  %v1578_v58 = vrot.slane %v1562_v56, %v7870_v34 }
 0x283   : > { %6537 = vmatmul.mubr.msk.f32.gmra.mrb[118].mxu0 %vm2895_vm6, %v2812_v22  ;;  %v2476_v15 = vrot.slane %v1977_v20, %v7877_v44  ;;  %v2480_v23 = vrot.slane %v1985_v29, %v7877_v44  ;;  %v1564_v33 = vcombine.high %v1562_v56, %v1562_v56  ;;  %v2876_v4 = vand.u32 2147483647, %v2748_v8 }
 0x284   : > { %6539 = vmatprep.mubr.msk.f32.mxu0 %vm2895_vm6, %v2813_v61  ;;  %v1987_v54 = vcombine.high %v1977_v20, %v1977_v20  ;;  %v1954_v6 = vrot.slane %v1940_v51, %v7870_v34  ;;  %v1620_v60 = vrot.slane %v1604_v12, %v7870_v34  ;;  %6630 = vmatmul.mubr.msk.f32.gmra.mrb[98].mxu1 %vm2895_vm6, %v2874_v7  ;;  %v2816_v30 = vand.u32 2147483647, %v2688_v43 }
 0x285   : > { %v2232_v5 = vrot.slane %v1578_v58, %v7877_v44  ;;  %v2750_v50 = vsub.f32 %v2476_v15, %v8196_v9  ;;  %v2751_v14 = vsub.f32 %v2480_v23, %v8196_v9  ;;  %v1592_v52 = vrot.slane %v1564_v33, %v7870_v34  ;;  %6632 = vmatprep.mubr.msk.f32.mxu1 %vm2895_vm6, %v2875_v16 }
 0x286   : > { %v1594_v59 = vcombine.high %v1578_v58, %v1578_v58  ;;  %v2484_v57 = vrot.slane %v1987_v54, %v7877_v44  ;;  %v1970_v22 = vrot.slane %v1954_v6, %v7870_v34  ;;  %v1597_v39 = vcombine.high %v8004_v48, %v8004_v48 }
 0x287   : > { %6540 = vmatmul.mubr.msk.f32.gmra.mrb[120].mxu0 %vm2895_vm6, %v2814_v24  ;;  %v2689_v47 = vsub.f32 %v2232_v5, %v7986_v45  ;;  %v2236_v35 = vrot.slane %v1592_v52, %v7877_v44  ;;  %v2248_v40 = vrot.slane %v1620_v60, %v7877_v44  ;;  %v1596_v49 = vcombine.high %v1592_v52, %v1592_v52 }
 0x288   : > { %6542 = vmatprep.mubr.msk.f32.mxu0 %vm2895_vm6, %v2815_v11  ;;  %v2240_v55 = vrot.slane %v1594_v59, %v7877_v44  ;;  %v2752_v3 = vsub.f32 %v2484_v57, %v8196_v9  ;;  %v2488_v28 = vrot.slane %v1970_v22, %v7877_v44  ;;  %6633 = vmatmul.mubr.msk.f32.gmra.mrb[100].mxu1 %vm2895_vm6, %v2876_v4  ;;  %v2878_v17 = vand.u32 2147483647, %v2750_v50 }
 0x289   : > { %v2879_v42 = vand.u32 2147483647, %v2751_v14  ;;  %v2690_v61 = vsub.f32 %v2236_v35, %v7986_v45  ;;  %v1956_v7 = vcombine.high %v1954_v6, %v1954_v6  ;;  %6635 = vmatprep.mubr.msk.f32.mxu1 %vm2895_vm6, %v2877_v1  ;;  %v2817_v32 = vand.u32 2147483647, %v2689_v47 }
 0x28a   : > { %v2691_v16 = vsub.f32 %v2240_v55, %v7986_v45  ;;  %v2753_v24 = vsub.f32 %v2488_v28, %v8196_v9  ;;  %v2244_v8 = vrot.slane %v1596_v49, %v7877_v44  ;;  %v2880_v37 = vand.u32 2147483647, %v2752_v3 }
 0x28b   : > { %6543 = vmatmul.mubr.msk.f32.gmra.mrb[122].mxu0 %vm2895_vm6, %v2816_v30  ;;  %v2693_v56 = vsub.f32 %v2248_v40, %v8004_v48  ;;  %v1984_v20 = vrot.slane %v1956_v7, %v7870_v34  ;;  %v1986_v29 = vcombine.high %v1970_v22, %v1970_v22  ;;  %v2818_v51 = vand.u32 2147483647, %v2690_v61 }
 0x28c   : > { %6545 = vmatprep.mubr.msk.f32.mxu0 %vm2895_vm6, %v2817_v32  ;;  %v2819_v11 = vand.u32 2147483647, %v2691_v16  ;;  %v2692_v1 = vsub.f32 %v2244_v8, %v7986_v45  ;;  %v1612_v43 = vcombine.high %v1604_v12, %v1604_v12  ;;  %6636 = vmatmul.mubr.msk.f32.gmra.mrb[102].mxu1 %vm2895_vm6, %v2878_v17  ;;  %v1642_v23 = vcombine.high %v1620_v60, %v1620_v60 }
 0x28d   : > { %v2492_v58 = vrot.slane %v1984_v20, %v7877_v44  ;;  %v2496_v15 = vrot.slane %v1986_v29, %v7877_v44  ;;  %v1988_v33 = vcombine.high %v1984_v20, %v1984_v20  ;;  %6638 = vmatprep.mubr.msk.f32.mxu1 %vm2895_vm6, %v2879_v42  ;;  %v2881_v4 = vand.u32 2147483647, %v2753_v24 }
 0x28e   : > { %v1634_v54 = vrot.slane %v1612_v43, %v7870_v34  ;;  %v1611_v6 = vrot.slane %v1597_v39, %v7870_v34  ;;  %v1653_v5 = vrot.slane %v8031_v18, %v7870_v34  ;;  %v2256_v50 = vrot.slane %v1642_v23, %v7877_v44 }
 0x28f   : > { %6546 = vmatmul.mubr.msk.f32.gmra.mrb[124].mxu0 %vm2895_vm6, %v2818_v51  ;;  %v2754_v45 = vsub.f32 %v2492_v58, %v8196_v9  ;;  %v2755_v12 = vsub.f32 %v2496_v15, %v8196_v9  ;;  %v2500_v60 = vrot.slane %v1988_v33, %v7877_v44  ;;  %v2820_v22 = vand.u32 2147483647, %v2692_v1 }
 0x290   : > { %6548 = vmatprep.mubr.msk.f32.mxu0 %vm2895_vm6, %v2819_v11  ;;  %v2252_v14 = vrot.slane %v1634_v54, %v7877_v44  ;;  %v1644_v52 = vcombine.high %v1634_v54, %v1634_v54  ;;  %v1627_v59 = vrot.slane %v1611_v6, %v7870_v34  ;;  %v1613_v57 = vcombine.high %v1611_v6, %v1611_v6 }
 0x291   : > { %6639 = vmatmul.mubr.msk.f32.gmra.mrb[104].mxu1 %vm2895_vm6, %v2880_v37  ;;  %v2821_v39 = vand.u32 2147483647, %v2693_v56  ;;  %v2695_v30 = vsub.f32 %v2256_v50, %v8004_v48  ;;  %v2882_v3 = vand.u32 2147483647, %v2754_v45  ;;  %v2756_v28 = vsub.f32 %v2500_v60, %v8196_v9 }
 0x292   : > { %6641 = vmatprep.mubr.msk.f32.mxu1 %vm2895_vm6, %v2881_v4  ;;  %v2694_v47 = vsub.f32 %v2252_v14, %v8004_v48  ;;  %v2260_v35 = vrot.slane %v1644_v52, %v7877_v44  ;;  %v2264_v40 = vrot.slane %v1627_v59, %v7877_v44  ;;  %v1641_v55 = vrot.slane %v1613_v57, %v7870_v34 }
 0x293   : > { %6549 = vmatmul.mubr.msk.f32.gmra.mrb[126].mxu0 %vm2895_vm6, %v2820_v22  ;;  %v1643_v49 = vcombine.high %v1627_v59, %v1627_v59  ;;  %v2883_v17 = vand.u32 2147483647, %v2755_v12  ;;  %v1669_v61 = vrot.slane %v1653_v5, %v7870_v34  ;;  %v1661_v24 = vcombine.high %v1653_v5, %v1653_v5 }
 0x294   : > { %6551 = vmatprep.mubr.msk.f32.mxu0 %vm2895_vm6, %v2821_v39  ;;  %v2268_v42 = vrot.slane %v1641_v55, %v7877_v44  ;;  %v2822_v7 = vand.u32 2147483647, %v2694_v47  ;;  %v2696_v32 = vsub.f32 %v2260_v35, %v8004_v48  ;;  %v1645_v16 = vcombine.high %v1641_v55, %v1641_v55 }
 0x295   : > { %6642 = vmatmul.mubr.msk.f32.gmra.mrb[106].mxu1 %vm2895_vm6, %v2882_v3  ;;  %v2823_v8 = vand.u32 2147483647, %v2695_v30  ;;  %v2697_v9 = vsub.f32 %v2264_v40, %v8004_v48  ;;  %v2272_v37 = vrot.slane %v1643_v49, %v7877_v44  ;;  %v2884_v56 = vand.u32 2147483647, %v2756_v28 }
 0x296   : > { %6644 = vmatprep.mubr.msk.f32.mxu1 %vm2895_vm6, %v2883_v17  ;;  %v2698_v20 = vsub.f32 %v2268_v42, %v8004_v48  ;;  %v1646_v29 = vcombine.high %v8031_v18, %v8031_v18  ;;  %v2824_v51 = vand.u32 2147483647, %v2696_v32  ;;  %v2276_v11 = vrot.slane %v1645_v16, %v7877_v44 }
 0x297   : > { %6552 = vmatmul.mubr.msk.f32.gmra.mrb[128].mxu0 %vm2895_vm6, %v2822_v7  ;;  %v2280_v1 = vrot.slane %v1669_v61, %v7877_v44  ;;  %v1683_v43 = vrot.slane %v1661_v24, %v7870_v34  ;;  %v2825_v58 = vand.u32 2147483647, %v2697_v9  ;;  %v2699_v15 = vsub.f32 %v2272_v37, %v8004_v48 }
 0x298   : > { %6554 = vmatprep.mubr.msk.f32.mxu0 %vm2895_vm6, %v2823_v8  ;;  %v1691_v23 = vcombine.high %v1669_v61, %v1669_v61  ;;  %v1660_v33 = vrot.slane %v1646_v29, %v7870_v34  ;;  %v2826_v4 = vand.u32 2147483647, %v2698_v20  ;;  %v2700_v54 = vsub.f32 %v2276_v11, %v8004_v48 }
 0x299   : > { %6645 = vmatmul.mubr.msk.f32.gmra.mrb[108].mxu1 %vm2895_vm6, %v2884_v56  ;;  %v2284_v6 = vrot.slane %v1683_v43, %v7877_v44  ;;  %v1693_v5 = vcombine.high %v1683_v43, %v1683_v43  ;;  %v2827_v12 = vand.u32 2147483647, %v2699_v15  ;;  %v2701_v50 = vsub.f32 %v2280_v1, %v8031_v18 }
 0x29a   : > { %v1662_v45 = vcombine.high %v1660_v33, %v1660_v33  ;;  %v2288_v60 = vrot.slane %v1691_v23, %v7877_v44  ;;  %v1676_v14 = vrot.slane %v1660_v33, %v7870_v34  ;;  %v2828_v52 = vand.u32 2147483647, %v2700_v54 }
 0x29b   : > { %6555 = vmatmul.mubr.msk.f32.gmra.mrb[130].mxu0 %vm2895_vm6, %v2824_v51  ;;  %v2702_v59 = vsub.f32 %v2284_v6, %v8031_v18  ;;  %v2292_v48 = vrot.slane %v1693_v5, %v7877_v44  ;;  %v2829_v22 = vand.u32 2147483647, %v2701_v50  ;;  %v2312_v16 = vrot.slane %v8090_v21, %v7877_v44 }
 0x29c   : > { %6557 = vmatprep.mubr.msk.f32.mxu0 %vm2895_vm6, %v2825_v58  ;;  %v1690_v57 = vrot.slane %v1662_v45, %v7870_v34  ;;  %v2703_v39 = vsub.f32 %v2288_v60, %v8031_v18  ;;  %v2296_v30 = vrot.slane %v1676_v14, %v7877_v44  ;;  %v1692_v47 = vcombine.high %v1676_v14, %v1676_v14 }
 0x29d   : > { %v2830_v35 = vand.u32 2147483647, %v2702_v59  ;;  %v2704_v40 = vsub.f32 %v2292_v48, %v8031_v18  ;;  %v2316_v9 = vrot.slane %v8107_v25, %v7877_v44  ;;  %v2709_v56 = vsub.f32 %v2312_v16, %v8060_v19 }
 0x29e   : > { %v2300_v55 = vrot.slane %v1690_v57, %v7877_v44  ;;  %v1694_v3 = vcombine.high %v1690_v57, %v1690_v57  ;;  %v2831_v28 = vand.u32 2147483647, %v2703_v39  ;;  %v2705_v49 = vsub.f32 %v2296_v30, %v8031_v18 }
 0x29f   : > { %6558 = vmatmul.mubr.msk.f32.gmra.mrb[132].mxu0 %vm2895_vm6, %v2826_v4  ;;  %v2304_v34 = vrot.slane %v1692_v47, %v7877_v44  ;;  %v2832_v17 = vand.u32 2147483647, %v2704_v40  ;;  %v2710_v21 = vsub.f32 %v2316_v9, %v8060_v19  ;;  %v2837_v29 = vand.u32 2147483647, %v2709_v56 }
 0x2a0   : > { %6560 = vmatprep.mubr.msk.f32.mxu0 %vm2895_vm6, %v2827_v12  ;;  %v2706_v42 = vsub.f32 %v2300_v55, %v8031_v18  ;;  %v2308_v61 = vrot.slane %v1694_v3, %v7877_v44  ;;  %v2833_v7 = vand.u32 2147483647, %v2705_v49 }
 0x2a1   : > { %v2707_v32 = vsub.f32 %v2304_v34, %v8031_v18  ;;  %v2838_v51 = vand.u32 2147483647, %v2710_v21 }
 0x2a2   : > { %v2834_v24 = vand.u32 2147483647, %v2706_v42  ;;  %v2708_v8 = vsub.f32 %v2308_v61, %v8031_v18 }
 0x2a3   : > { %6561 = vmatmul.mubr.msk.f32.gmra.mrb[134].mxu0 %vm2895_vm6, %v2828_v52  ;;  %v2835_v37 = vand.u32 2147483647, %v2707_v32 }
 0x2a4   : > { %6563 = vmatprep.mubr.msk.f32.mxu0 %vm2895_vm6, %v2829_v22  ;;  %v2836_v20 = vand.u32 2147483647, %v2708_v8 }
 0x2a7   : > { %6564 = vmatmul.mubr.msk.f32.gmra.mrb[136].mxu0 %vm2895_vm6, %v2830_v35 }
 0x2a8   : > { %6566 = vmatprep.mubr.msk.f32.mxu0 %vm2895_vm6, %v2831_v28 }
 0x2ab   : > { %6567 = vmatmul.mubr.msk.f32.gmra.mrb[138].mxu0 %vm2895_vm6, %v2832_v17 }
 0x2ac   : > { %6569 = vmatprep.mubr.msk.f32.mxu0 %vm2895_vm6, %v2833_v7 }
 0x2af   : > { %6570 = vmatmul.mubr.msk.f32.gmra.mrb[140].mxu0 %vm2895_vm6, %v2834_v24 }
 0x2b0   : > { %6572 = vmatprep.mubr.msk.f32.mxu0 %vm2895_vm6, %v2835_v37 }
 0x2b3   : > { %6573 = vmatmul.mubr.msk.f32.gmra.mrb[142].mxu0 %vm2895_vm6, %v2836_v20 }
 0x2b4   : > { %6575 = vmatprep.mubr.msk.f32.mxu0 %vm2895_vm6, %v2837_v29 }
 0x2b7   : > { %6576 = vmatmul.mubr.msk.f32.gmra.mrb[144].mxu0 %vm2895_vm6, %v2838_v51 }
 0x2e8   : > { %v6457_v18 = vpop.f32.mrb[64].mxu0 }
 0x2e9   : > { %v3986_v25 = vsub.f32 0.0, %v6457_v18  ;;  %v3346_v11 = vpop.f32.mrb[65].mxu0 }
 0x2ea   : > { %v3985_v1 = vsub.f32 0.0, %v3346_v11 }
 0x2eb   : > { %v4115_v43 = vmul.f32 1.442695, %v3986_v25 }
 0x2ec   : > { %v4113_v58 = vmul.f32 1.442695, %v3985_v1  ;;  %v6460_v15 = vpop.f32.mrb[66].mxu0 }
 0x2ed   : > { %6849 = vpow2.f32 %v4115_v43  ;;  %v3988_v23 = vsub.f32 0.0, %v6460_v15  ;;  %v3356_v33 = vpop.f32.mrb[67].mxu0 }
 0x2ee   : > { %6851 = vpow2.f32 %v4113_v58  ;;  %v3987_v19 = vsub.f32 0.0, %v3356_v33 }
 0x2ef   : > { %v4119_v4 = vmul.f32 1.442695, %v3988_v23 }
 0x2f0   : > { %v4117_v54 = vmul.f32 1.442695, %v3987_v19  ;;  %v6463_v6 = vpop.f32.mrb[68].mxu0 }
 0x2f1   : > { %6853 = vpow2.f32 %v4119_v4  ;;  %v3990_v5 = vsub.f32 0.0, %v6463_v6  ;;  %v3366_v45 = vpop.f32.mrb[69].mxu0 }
 0x2f2   : > { %6855 = vpow2.f32 %v4117_v54  ;;  %v3989_v12 = vsub.f32 0.0, %v3366_v45 }
 0x2f3   : > { %v4123_v50 = vmul.f32 1.442695, %v3990_v5 }
 0x2f4   : > { %v6466_v60 = vpop.f32.mrb[70].mxu0  ;;  %v4121_v52 = vmul.f32 1.442695, %v3989_v12 }
 0x2f5   : > { %v3376_v14 = vpop.f32.mrb[71].mxu0  ;;  %6857 = vpow2.f32 %v4123_v50  ;;  %v3992_v47 = vsub.f32 0.0, %v6466_v60 }
 0x2f6   : > { %6859 = vpow2.f32 %v4121_v52  ;;  %v3991_v21 = vsub.f32 0.0, %v3376_v14 }
 0x2f7   : > { %v6850_v59 = vpop.eup %6849  ;;  %v4127_v24 = vmul.f32 1.442695, %v3992_v47 }
 0x2f8   : > { %v6852_v48 = vpop.eup %6851  ;;  %v4377_v57 = vsel %vm4369_vm7, %v6850_v59, 0.0  ;;  %v6469_v22 = vpop.f32.mrb[72].mxu0  ;;  %v4125_v33 = vmul.f32 1.442695, %v3991_v21 }
 0x2f9   : > { %v4378_v39 = vrot.slane %v4377_v57, 4  ;;  %v4370_v30 = vsel %vm4369_vm7, %v6852_v48, 0.0  ;;  %v3994_v35 = vsub.f32 0.0, %v6469_v22  ;;  %v3386_v40 = vpop.f32.mrb[73].mxu0 }
 0x2fa   : > { %v4371_v55 = vrot.slane %v4370_v30, 4  ;;  %v3993_v3 = vsub.f32 0.0, %v3386_v40 }
 0x2fb   : > { %v6854_v28 = vpop.eup %6853  ;;  %v4379_v49 = vadd.f32 %v4378_v39, %v4377_v57  ;;  %v4131_v34 = vmul.f32 1.442695, %v3994_v35 }
 0x2fc   : > { %v6856_v17 = vpop.eup %6855  ;;  %v4372_v42 = vadd.f32 %v4371_v55, %v4370_v30  ;;  %v4129_v61 = vmul.f32 1.442695, %v3993_v3  ;;  %v6472_v7 = vpop.f32.mrb[74].mxu0  ;;  %v4391_v37 = vsel %vm4369_vm7, %v6854_v28, 0.0 }
 0x2fd   : > { %v4380_v32 = vrot.slane %v4379_v49, 2  ;;  %v4384_v16 = vsel %vm4369_vm7, %v6856_v17, 0.0  ;;  %6861 = vpow2.f32 %v4131_v34  ;;  %v3396_v8 = vpop.f32.mrb[75].mxu0  ;;  %v4392_v11 = vrot.slane %v4391_v37, 4 }
 0x2fe   : > { %v4373_v9 = vrot.slane %v4372_v42, 2  ;;  %v4385_v56 = vrot.slane %v4384_v16, 4  ;;  %6863 = vpow2.f32 %v4129_v61  ;;  %v3995_v6 = vsub.f32 0.0, %v3396_v8 }
 0x2ff   : > { %v4381_v20 = vadd.f32 %v4380_v32, %v4379_v49  ;;  %v6858_v43 = vpop.eup %6857  ;;  %6865 = vpow2.f32 %v4127_v24  ;;  %v4393_v12 = vadd.f32 %v4392_v11, %v4391_v37  ;;  %v3996_v50 = vsub.f32 0.0, %v6472_v7 }
 0x300   : > { %v4374_v29 = vadd.f32 %v4373_v9, %v4372_v42  ;;  %v4386_v51 = vadd.f32 %v4385_v56, %v4384_v16  ;;  %v6475_v18 = vpop.f32.mrb[76].mxu0  ;;  %v6860_v19 = vpop.eup %6859  ;;  %v4405_v59 = vsel %vm4369_vm7, %v6858_v43, 0.0  ;;  %6867 = vpow2.f32 %v4125_v33 }
 0x301   : > { %v4382_v25 = vrot.slane %v4381_v20, 1  ;;  %v8610_v1 = vpop.f32.mrb[77].mxu0  ;;  %v4398_v57 = vsel %vm4369_vm7, %v6860_v19, 0.0  ;;  %v4133_v35 = vmul.f32 1.442695, %v3995_v6  ;;  %v4394_v55 = vrot.slane %v4393_v12, 2 }
 0x302   : > { %v4375_v58 = vrot.slane %v4374_v29, 1  ;;  %v4387_v15 = vrot.slane %v4386_v51, 2  ;;  %v4406_v3 = vrot.slane %v4405_v59, 4  ;;  %v4135_v28 = vmul.f32 1.442695, %v3996_v50 }
 0x303   : > { %v4383_v23 = vadd.f32 %v4382_v25, %v4381_v20  ;;  %v4399_v61 = vrot.slane %v4398_v57, 4  ;;  %6869 = vpow2.f32 %v4133_v35  ;;  %v8620_v9 = vadd.f32 %v4394_v55, %v4393_v12 }
 0x304   : > { %v4376_v4 = vadd.f32 %v4375_v58, %v4374_v29  ;;  %v4388_v54 = vadd.f32 %v4387_v15, %v4386_v51  ;;  %v6478_v5 = vpop.f32.mrb[78].mxu0  ;;  %v4407_v37 = vadd.f32 %v4406_v3, %v4405_v59  ;;  %6871 = vpow2.f32 %v4135_v28 }
 0x305   : > { %v6117_v45 = vadd.f32 -1.0, %v4383_v23  ;;  %v3416_v60 = vpop.f32.mrb[79].mxu0  ;;  %v3998_v29 = vsub.f32 0.0, %v6475_v18  ;;  %v4400_v51 = vadd.f32 %v4399_v61, %v4398_v57  ;;  %v3997_v15 = vsub.f32 0.0, %v8610_v1 }
 0x306   : > { %v6116_v14 = vadd.f32 -1.0, %v4376_v4  ;;  %v4389_v52 = vrot.slane %v4388_v54, 1  ;;  %v4000_v23 = vsub.f32 0.0, %v6478_v5  ;;  %v4396_v4 = vrot.slane %v8620_v9, 1 }
 0x307   : > { %v6862_v48 = vpop.eup %6861  ;;  %v4139_v58 = vmul.f32 1.442695, %v3998_v29  ;;  %v4137_v50 = vmul.f32 1.442695, %v3997_v15  ;;  %v4401_v59 = vrot.slane %v4400_v51, 2 }
 0x308   : > { %v6864_v22 = vpop.eup %6863  ;;  %v5525_v39 = vsel %vm5524_vm8, %v6117_v45, %v6116_v14  ;;  %v4390_v30 = vadd.f32 %v4389_v52, %v4388_v54  ;;  %v4433_v47 = vsel %vm4369_vm7, %v6862_v48, 0.0  ;;  %v6481_v40 = vpop.f32.mrb[80].mxu0  ;;  %v4408_v54 = vrot.slane %v4407_v37, 2 }
 0x309   : > { %v3426_v49 = vpop.f32.mrb[81].mxu0  ;;  %v4434_v17 = vrot.slane %v4433_v47, 4  ;;  %v4426_v42 = vsel %vm4369_vm7, %v6864_v22, 0.0  ;;  %v6866_v32 = vpop.eup %6865  ;;  %v3999_v45 = vsub.f32 0.0, %v3416_v60  ;;  %6873 = vpow2.f32 %v4139_v58 }
 0x30a   : > { %v6118_v34 = vadd.f32 -1.0, %v4390_v30  ;;  %v4427_v7 = vrot.slane %v4426_v42, 4  ;;  %v4419_v25 = vsel %vm4369_vm7, %v6866_v32, 0.0  ;;  %v6868_v19 = vpop.eup %6867  ;;  %v4143_v14 = vmul.f32 1.442695, %v4000_v23 }
 0x30b   : > { %v4435_v24 = vadd.f32 %v4434_v17, %v4433_v47  ;;  %v4420_v48 = vrot.slane %v4419_v25, 4  ;;  %v4141_v5 = vmul.f32 1.442695, %v3999_v45  ;;  %6875 = vpow2.f32 %v4137_v50 }
 0x30c   : > { %v8618_v16 = vsel %vm5526_vm9, %v6118_v34, %v5525_v39  ;;  %v6484_v8 = vpop.f32.mrb[82].mxu0  ;;  %v4428_v56 = vadd.f32 %v4427_v7, %v4426_v42  ;;  %v4002_v39 = vsub.f32 0.0, %v6481_v40  ;;  %v4001_v30 = vsub.f32 0.0, %v3426_v49 }
 0x30d   : > { %v3436_v20 = vpop.f32.mrb[83].mxu0  ;;  %v4436_v21 = vrot.slane %v4435_v24, 2  ;;  %v4412_v60 = vsel %vm4369_vm7, %v6868_v19, 0.0  ;;  %6877 = vpow2.f32 %v4143_v14  ;;  %v4004_v55 = vsub.f32 0.0, %v6484_v8  ;;  %v6870_v28 = vpop.eup %6869 }
 0x30e   : > { %v4429_v11 = vrot.slane %v4428_v56, 2  ;;  %v4409_v34 = vadd.f32 %v4408_v54, %v4407_v37  ;;  %v4147_v42 = vmul.f32 1.442695, %v4002_v39  ;;  %v4145_v61 = vmul.f32 1.442695, %v4001_v30  ;;  %v6872_v32 = vpop.eup %6871 }
 0x30f   : > { %v4437_v43 = vadd.f32 %v4436_v21, %v4435_v24  ;;  %v4440_v40 = vsel %vm4369_vm7, %v6870_v28, 0.0  ;;  %6879 = vpow2.f32 %v4141_v5  ;;  %v4151_v49 = vmul.f32 1.442695, %v4004_v55 }
 0x310   : > { %v4430_v6 = vadd.f32 %v4429_v11, %v4428_v56  ;;  %v4413_v21 = vrot.slane %v4412_v60, 4  ;;  %v4441_v29 = vrot.slane %v4440_v40, 4  ;;  %6881 = vpow2.f32 %v4147_v42 }
 0x311   : > { %v4438_v18 = vrot.slane %v4437_v43, 1  ;;  %v4003_v8 = vsub.f32 0.0, %v3436_v20  ;;  %v4402_v37 = vadd.f32 %v4401_v59, %v4400_v51  ;;  %6883 = vpow2.f32 %v4145_v61 }
 0x312   : > { %v8624_v33 = vpop.f32.mrb[84].mxu0  ;;  %v8629_v52 = vpop.f32.mrb[64].mxu1  ;;  %v4431_v1 = vrot.slane %v4430_v6, 1  ;;  %v4447_v23 = vsel %vm4369_vm7, %v6872_v32, 0.0  ;;  %v4442_v19 = vadd.f32 %v4441_v29, %v4440_v40  ;;  %6885 = vpow2.f32 %v4151_v49 }
 0x313   : > { %v8627_v12 = vpop.f32.mrb[85].mxu0  ;;  %v8631_v57 = vpop.f32.mrb[65].mxu1  ;;  %v4439_v22 = vadd.f32 %v4438_v18, %v4437_v43  ;;  %v4421_v43 = vadd.f32 %v4420_v48, %v4419_v25  ;;  %v4149_v54 = vmul.f32 1.442695, %v4003_v8  ;;  %v4410_v45 = vrot.slane %v4409_v34, 1 }
 0x314   : > { %v4432_v35 = vadd.f32 %v4431_v1, %v4430_v6  ;;  %v4006_v20 = vsub.f32 0.0, %v8624_v33  ;;  %v6874_v51 = vpop.eup %6873  ;;  %v4397_v25 = vadd.f32 %v4396_v4, %v8620_v9  ;;  %v4414_v50 = vadd.f32 %v4413_v21, %v4412_v60 }
 0x315   : > { %v6125_v17 = vadd.f32 -1.0, %v4439_v22  ;;  %v4443_v14 = vrot.slane %v4442_v19, 2  ;;  %6887 = vpow2.f32 %v4149_v54  ;;  %v4403_v48 = vrot.slane %v4402_v37, 1  ;;  %v6876_v30 = vpop.eup %6875 }
 0x316   : > { %v8633_v47 = vpop.f32.mrb[86].mxu0  ;;  %v8638_v7 = vpop.f32.mrb[66].mxu1  ;;  %v6124_v24 = vadd.f32 -1.0, %v4432_v35  ;;  %v4422_v1 = vrot.slane %v4421_v43, 2  ;;  %v4448_v5 = vrot.slane %v4447_v23, 4  ;;  %v4461_v22 = vsel %vm4369_vm7, %v6874_v51, 0.0 }
 0x317   : > { %v8636_v3 = vpop.f32.mrb[87].mxu0  ;;  %v8641_v56 = vpop.f32.mrb[67].mxu1  ;;  %v4444_v35 = vadd.f32 %v4443_v14, %v4442_v19  ;;  %v4005_v33 = vsub.f32 0.0, %v8627_v12  ;;  %v4411_v9 = vadd.f32 %v4410_v45, %v4409_v34  ;;  %v4155_v4 = vmul.f32 1.442695, %v4006_v20 }
 0x318   : > { %v8646_v58 = vsel %vm5524_vm8, %v6125_v17, %v6124_v24  ;;  %v6878_v28 = vpop.eup %6877  ;;  %v4415_v17 = vrot.slane %v4414_v50, 2  ;;  %v4462_v61 = vrot.slane %v4461_v22, 4  ;;  %v4454_v32 = vsel %vm4369_vm7, %v6876_v30, 0.0 }
 0x319   : > { %v4445_v42 = vrot.slane %v4444_v35, 1  ;;  %v6880_v40 = vpop.eup %6879  ;;  %v8670_v49 = vadd.f32 -1.0, %v4397_v25  ;;  %v8672_v21 = vadd.f32 %v4403_v48, %v4402_v37  ;;  %v8674_v12 = vadd.f32 %v4422_v1, %v4421_v43 }
 0x31a   : > { %v8643_v11 = vpop.f32.mrb[88].mxu0  ;;  %v4449_v29 = vadd.f32 %v4448_v5, %v4447_v23  ;;  %v6882_v34 = vpop.eup %6881  ;;  %v4475_v54 = vsel %vm4369_vm7, %v6878_v28, 0.0  ;;  %v4153_v45 = vmul.f32 1.442695, %v4005_v33  ;;  %v4068_v20 = vsub.f32 0.0, %v8629_v52 }
 0x31b   : > { %v8648_v15 = vpop.f32.mrb[89].mxu0  ;;  %v8651_v6 = vpop.f32.mrb[68].mxu1  ;;  %v4446_v19 = vadd.f32 %v4445_v42, %v4444_v35  ;;  %v8682_v30 = vadd.f32 -1.0, %v4411_v9  ;;  %v4455_v25 = vrot.slane %v4454_v32, 4  ;;  %v4489_v37 = vsel %vm4369_vm7, %v6882_v34, 0.0 }
 0x31c   : > { %v8654_v18 = vpop.f32.mrb[69].mxu1  ;;  %v6884_v14 = vpop.eup %6883  ;;  %6889 = vpow2.f32 %v4155_v4  ;;  %v8687_v48 = vadd.f32 %v4415_v17, %v4414_v50  ;;  %v4463_v5 = vadd.f32 %v4462_v61, %v4461_v22  ;;  %v4008_v35 = vsub.f32 0.0, %v8633_v47 }
 0x31d   : > { %v6886_v23 = vpop.eup %6885  ;;  %v6126_v1 = vadd.f32 -1.0, %v4446_v19  ;;  %v4476_v52 = vrot.slane %v4475_v54, 4  ;;  %v4468_v28 = vsel %vm4369_vm7, %v6880_v40, 0.0  ;;  %v4490_v9 = vrot.slane %v4489_v37, 4 }
 0x31e   : > { %v8657_v59 = vpop.f32.mrb[90].mxu0  ;;  %v4482_v42 = vsel %vm4369_vm7, %v6884_v14, 0.0  ;;  %v4450_v34 = vrot.slane %v4449_v29, 2  ;;  %6891 = vpow2.f32 %v4153_v45  ;;  %v4279_v22 = vmul.f32 1.442695, %v4068_v20 }
 0x31f   : > { %v8660_v39 = vpop.f32.mrb[91].mxu0  ;;  %v8663_v55 = vpop.f32.mrb[70].mxu1  ;;  %v8698_v50 = vsel %vm5526_vm9, %v6126_v1, %v8646_v58  ;;  %v4456_v47 = vadd.f32 %v4455_v25, %v4454_v32  ;;  %v4491_v61 = vadd.f32 %v4490_v9, %v4489_v37  ;;  %v4483_v19 = vrot.slane %v4482_v42, 4 }
 0x320   : > { %v8665_v60 = vpop.f32.mrb[71].mxu1  ;;  %v6888_v4 = vpop.eup %6887  ;;  %v4503_v40 = vsel %vm4369_vm7, %v6886_v23, 0.0  ;;  %v4469_v14 = vrot.slane %v4468_v28, 4  ;;  %v4067_v53 = vsub.f32 0.0, %v8631_v57  ;;  %v4159_v31 = vmul.f32 1.442695, %v4008_v35 }
 0x321   : > { %v4496_v10 = vsel %vm4369_vm7, %v6888_v4, 0.0  ;;  %v4464_v58 = vrot.slane %v4463_v5, 2  ;;  %v4477_v45 = vadd.f32 %v4476_v52, %v4475_v54  ;;  %v4492_v20 = vrot.slane %v4491_v61, 2 }
 0x322   : > { %v8668_v24 = vpop.f32.mrb[92].mxu0  ;;  %v4484_v1 = vadd.f32 %v4483_v19, %v4482_v42  ;;  %v4451_v32 = vadd.f32 %v4450_v34, %v4449_v29  ;;  %v4504_v25 = vrot.slane %v4503_v40, 4  ;;  %v4497_v37 = vrot.slane %v4496_v10, 4 }
 0x323   : > { %v8676_v8 = vpop.f32.mrb[93].mxu0  ;;  %v8680_v51 = vpop.f32.mrb[72].mxu1  ;;  %v4007_v23 = vsub.f32 0.0, %v8636_v3  ;;  %v4457_v26 = vrot.slane %v4456_v47, 2  ;;  %v4493_v4 = vadd.f32 %v4492_v20, %v4491_v61  ;;  %6893 = vpow2.f32 %v4279_v22 }
 0x324   : > { %v8685_v43 = vpop.f32.mrb[73].mxu1  ;;  %v4485_v0 = vrot.slane %v4484_v1, 2  ;;  %v4470_v35 = vadd.f32 %v4469_v14, %v4468_v28  ;;  %v4498_v38 = vadd.f32 %v4497_v37, %v4496_v10  ;;  %v4277_v54 = vmul.f32 1.442695, %v4067_v53 }
 0x325   : > { %6895 = vpow2.f32 %v4159_v31  ;;  %v4465_v29 = vadd.f32 %v4464_v58, %v4463_v5  ;;  %v4478_v34 = vrot.slane %v4477_v45, 2  ;;  %v4494_v19 = vrot.slane %v4493_v4, 1 }
 0x326   : > { %v8690_v33 = vpop.f32.mrb[94].mxu0  ;;  %v6890_v42 = vpop.eup %6889  ;;  %v4486_v63 = vadd.f32 %v4485_v0, %v4484_v1  ;;  %v4417_v27 = vrot.slane %v8687_v48, 1  ;;  %v4452_v61 = vrot.slane %v4451_v32, 1  ;;  %v4505_v20 = vadd.f32 %v4504_v25, %v4503_v40 }
 0x327   : > { %v8694_v44 = vpop.f32.mrb[95].mxu0  ;;  %v8700_v17 = vpop.f32.mrb[74].mxu1  ;;  %v4499_v22 = vrot.slane %v4498_v38, 2  ;;  %v4458_v28 = vadd.f32 %v4457_v26, %v4456_v47  ;;  %v4495_v10 = vadd.f32 %v4494_v19, %v4493_v4  ;;  %v4157_v31 = vmul.f32 1.442695, %v4007_v23 }
 0x328   : > { %v8703_v62 = vpop.f32.mrb[75].mxu1  ;;  %v4487_v53 = vrot.slane %v4486_v63, 1  ;;  %v6892_v37 = vpop.eup %6891  ;;  %v4471_v5 = vrot.slane %v4470_v35, 2  ;;  %v4517_v0 = vsel %vm4369_vm7, %v6890_v42, 0.0  ;;  %6897 = vpow2.f32 %v4277_v54 }
 0x329   : > { %v4500_v58 = vadd.f32 %v4499_v22, %v4498_v38  ;;  %v4466_v41 = vrot.slane %v4465_v29, 1  ;;  %v4479_v2 = vadd.f32 %v4478_v34, %v4477_v45  ;;  %v6133_v40 = vadd.f32 -1.0, %v4495_v10 }
 0x32a   : > { %v8707_v46 = vpop.f32.mrb[96].mxu0  ;;  %v4488_v25 = vadd.f32 %v4487_v53, %v4486_v63  ;;  %v4424_v26 = vrot.slane %v8674_v12, 1  ;;  %v4418_v47 = vadd.f32 %v4417_v27, %v8687_v48  ;;  %v4506_v23 = vrot.slane %v4505_v20, 2 }
 0x32b   : > { %v8709_v13 = vpop.f32.mrb[97].mxu0  ;;  %v8712_v9 = vpop.f32.mrb[76].mxu1  ;;  %v4501_v4 = vrot.slane %v4500_v58, 1  ;;  %v4453_v38 = vadd.f32 %v4452_v61, %v4451_v32  ;;  %v4459_v22 = vrot.slane %v4458_v28, 1  ;;  %v4518_v54 = vrot.slane %v4517_v0, 4 }
 0x32c   : > { %v8714_v57 = vpop.f32.mrb[77].mxu1  ;;  %v6132_v42 = vadd.f32 -1.0, %v4488_v25  ;;  %v4510_v63 = vsel %vm4369_vm7, %v6892_v37, 0.0  ;;  %v4070_v34 = vsub.f32 0.0, %v8638_v7  ;;  %v4467_v27 = vadd.f32 %v4466_v41, %v4465_v29 }
 0x32d   : > { %v4502_v45 = vadd.f32 %v4501_v4, %v4500_v58  ;;  %v6894_v53 = vpop.eup %6893  ;;  %v4480_v48 = vrot.slane %v4479_v2, 1  ;;  %6899 = vpow2.f32 %v4157_v31  ;;  %v8744_v25 = vadd.f32 -1.0, %v8672_v21 }
 0x32e   : > { %v8716_v52 = vpop.f32.mrb[98].mxu0  ;;  %v4507_v37 = vadd.f32 %v4506_v23, %v4505_v20  ;;  %v8751_v58 = vadd.f32 -1.0, %v4418_v47  ;;  %v4460_v41 = vadd.f32 %v4459_v22, %v4458_v28  ;;  %v4519_v29 = vadd.f32 %v4518_v54, %v4517_v0 }
 0x32f   : > { %v8718_v3 = vpop.f32.mrb[99].mxu0  ;;  %v8721_v36 = vpop.f32.mrb[78].mxu1  ;;  %v4511_v4 = vrot.slane %v4510_v63, 4  ;;  %v4283_v21 = vmul.f32 1.442695, %v4070_v34  ;;  %v8761_v20 = vadd.f32 -1.0, %v4453_v38  ;;  %v8765_v47 = vadd.f32 %v4480_v48, %v4479_v2 }
 0x330   : > { %9754 = vst [vmem:[#allocation11_spill] sm:$0xff] %v8718_v3  ;;  %v8723_v14 = vpop.f32.mrb[79].mxu1  ;;  %v6896_v61 = vpop.eup %6895  ;;  %v4010_v28 = vsub.f32 0.0, %v8643_v11  ;;  %v4508_v22 = vrot.slane %v4507_v37, 1  ;;  %v8775_v38 = vadd.f32 -1.0, %v4460_v41  ;;  %v4520_v34 = vrot.slane %v4519_v29, 2 }
 0x331   : > { %9755 = vst [vmem:[#allocation12_spill] sm:$0xff] %v8723_v14  ;;  %v4531_v54 = vsel %vm4369_vm7, %v6896_v61, 0.0  ;;  %6901 = vpow2.f32 %v4283_v21  ;;  %v4074_v21 = vsub.f32 0.0, %v8663_v55 }
 0x332   : > { %v8726_v1 = vpop.f32.mrb[100].mxu0  ;;  %v6898_v23 = vpop.eup %6897  ;;  %v4163_v2 = vmul.f32 1.442695, %v4010_v28  ;;  %v4509_v41 = vadd.f32 %v4508_v22, %v4507_v37 }
 0x333   : > { %9756 = vst [vmem:[#allocation13_spill] sm:$0xff] %v8726_v1  ;;  %v8728_v3 = vpop.f32.mrb[101].mxu0  ;;  %v8732_v19 = vpop.f32.mrb[80].mxu1  ;;  %v4472_v1 = vadd.f32 %v4471_v5, %v4470_v35  ;;  %v8747_v35 = vadd.f32 %v4424_v26, %v8674_v12  ;;  %v6134_v5 = vadd.f32 -1.0, %v4502_v45  ;;  %v8763_v26 = vadd.f32 -1.0, %v4467_v27 }
 0x334   : > { %9757 = vst [vmem:[#allocation14_spill] sm:$0xff] %v8728_v3  ;;  %v8734_v14 = vpop.f32.mrb[81].mxu1  ;;  %v5545_v3 = vsel %vm5524_vm8, %v6133_v40, %v6132_v42  ;;  %v4512_v27 = vadd.f32 %v4511_v4, %v4510_v63  ;;  %v4944_v61 = vsel %vm4369_vm7, %v6898_v23, 0.0  ;;  %6903 = vpow2.f32 %v4163_v2 }
 0x335   : > { %v4473_v31 = vrot.slane %v4472_v1, 1  ;;  %v8756_v42 = vsel %vm5526_vm9, %v6134_v5, %v5545_v3  ;;  %v4951_v3 = vsel %vm4369_vm7, %v6894_v53, 0.0  ;;  %v4012_v63 = vsub.f32 0.0, %v8657_v59 }
 0x336   : > { %v8738_v10 = vpop.f32.mrb[102].mxu0  ;;  %9759 = vst [vmem:[#allocation16_spill] sm:$0xff] %v8756_v42  ;;  %v4952_v53 = vrot.slane %v4951_v3, 4  ;;  %v4011_v4 = vsub.f32 0.0, %v8660_v39  ;;  %v4072_v2 = vsub.f32 0.0, %v8651_v6  ;;  %v4945_v55 = vrot.slane %v4944_v61, 4 }
 0x337   : > { %v8741_v32 = vpop.f32.mrb[103].mxu0  ;;  %v8749_v7 = vpop.f32.mrb[82].mxu1  ;;  %v4474_v11 = vadd.f32 %v4473_v31, %v4472_v1  ;;  %v4513_v31 = vrot.slane %v4512_v27, 2  ;;  %v4167_v37 = vmul.f32 1.442695, %v4012_v63 }
 0x338   : > { %9758 = vst [vmem:[#allocation15_spill] sm:$0xff] %v8741_v32  ;;  %v8753_v40 = vpop.f32.mrb[83].mxu1  ;;  %v4069_v32 = vsub.f32 0.0, %v8641_v56  ;;  %v4009_v56 = vsub.f32 0.0, %v8648_v15  ;;  %v6900_v1 = vpop.eup %6899 }
 0x339   : > { %v4524_v39 = vsel %vm4369_vm7, %v6900_v1, 0.0  ;;  %v4514_v63 = vadd.f32 %v4513_v31, %v4512_v27  ;;  %v4287_v1 = vmul.f32 1.442695, %v4072_v2  ;;  %v4016_v31 = vsub.f32 0.0, %v8690_v33 }
 0x33a   : > { %v8759_v12 = vpop.f32.mrb[104].mxu0  ;;  %v4281_v5 = vmul.f32 1.442695, %v4069_v32  ;;  %v4161_v42 = vmul.f32 1.442695, %v4009_v56  ;;  %v4521_v32 = vadd.f32 %v4520_v34, %v4519_v29  ;;  %v4073_v56 = vsub.f32 0.0, %v8665_v60 }
 0x33b   : > { %9760 = vst [vmem:[#allocation17_spill] sm:$0xff] %v8759_v12  ;;  %v8768_v0 = vpop.f32.mrb[105].mxu0  ;;  %v8773_v45 = vpop.f32.mrb[84].mxu1  ;;  %v4532_v12 = vrot.slane %v4531_v54, 4  ;;  %v4291_v29 = vmul.f32 1.442695, %v4074_v21  ;;  %v8797_v34 = vadd.f32 %v4952_v53, %v4951_v3 }
 0x33c   : > { %9761 = vst [vmem:[#allocation18_spill] sm:$0xff] %v8768_v0  ;;  %v8777_v48 = vpop.f32.mrb[85].mxu1  ;;  %6905 = vpow2.f32 %v4161_v42  ;;  %v4165_v42 = vmul.f32 1.442695, %v4011_v4  ;;  %v4014_v60 = vsub.f32 0.0, %v8668_v24  ;;  %v4522_v6 = vrot.slane %v4521_v32, 1  ;;  %v6902_v27 = vpop.eup %6901 }
 0x33d   : > { %6907 = vpow2.f32 %v4281_v5  ;;  %v4533_v59 = vadd.f32 %v4532_v12, %v4531_v54  ;;  %9764 = vst [vmem:[#allocation31_spill] sm:$0xff] %v8797_v34  ;;  %v4289_v4 = vmul.f32 1.442695, %v4073_v56  ;;  %v8806_v54 = vadd.f32 -1.0, %v4474_v11 }
 0x33e   : > { %v8779_v0 = vpop.f32.mrb[106].mxu0  ;;  %6909 = vpow2.f32 %v4167_v37  ;;  %v4013_v3 = vsub.f32 0.0, %v8676_v8  ;;  %v8811_v21 = vadd.f32 -1.0, %v4509_v41  ;;  %v8816_v56 = vadd.f32 %v4945_v55, %v4944_v61  ;;  %v6904_v8 = vpop.eup %6903 }
 0x33f   : > { %v8782_v15 = vpop.f32.mrb[107].mxu0  ;;  %v8786_v28 = vpop.f32.mrb[86].mxu1  ;;  %6911 = vpow2.f32 %v4165_v42  ;;  %v4534_v24 = vrot.slane %v4533_v59, 2  ;;  %v4171_v11 = vmul.f32 1.442695, %v4014_v60  ;;  %v4076_v42 = vsub.f32 0.0, %v8680_v51 }
 0x340   : > { %9762 = vst [vmem:[#allocation19_spill] sm:$0xff] %v8786_v28  ;;  %v8790_v23 = vpop.f32.mrb[87].mxu1  ;;  %v4071_v28 = vsub.f32 0.0, %v8654_v18  ;;  %v4525_v18 = vrot.slane %v4524_v39, 4  ;;  %9768 = vst [vmem:[#allocation35_spill] sm:$0xff] %v8811_v21  ;;  %6913 = vpow2.f32 %v4291_v29  ;;  %v4075_v41 = vsub.f32 0.0, %v8685_v43 }
 0x341   : > { %9763 = vst [vmem:[#allocation30_spill] sm:$0xff] %v8790_v23  ;;  %9770 = vst [vmem:[#allocation37_spill] sm:$0xff] %v8816_v56  ;;  %6915 = vpow2.f32 %v4289_v4  ;;  %v4169_v61 = vmul.f32 1.442695, %v4013_v3  ;;  %v4535_v60 = vadd.f32 %v4534_v24, %v4533_v59  ;;  %v4295_v4 = vmul.f32 1.442695, %v4076_v42 }
 0x342   : > { %v8793_v22 = vpop.f32.mrb[108].mxu0  ;;  %v4285_v37 = vmul.f32 1.442695, %v4071_v28  ;;  %v4526_v21 = vadd.f32 %v4525_v18, %v4524_v39  ;;  %6917 = vpow2.f32 %v4287_v1  ;;  %v4965_v39 = vsel %vm4369_vm7, %v6902_v27, 0.0 }
 0x343   : > { %v8800_v23 = vpop.f32.mrb[109].mxu0  ;;  %v8802_v5 = vpop.f32.mrb[88].mxu1  ;;  %v4293_v1 = vmul.f32 1.442695, %v4075_v41  ;;  %v4536_v33 = vrot.slane %v4535_v60, 1 }
 0x344   : > { %9765 = vst [vmem:[#allocation32_spill] sm:$0xff] %v8802_v5  ;;  %v8804_v12 = vpop.f32.mrb[89].mxu1  ;;  %6919 = vpow2.f32 %v4285_v37  ;;  %v4527_v59 = vrot.slane %v4526_v21, 2  ;;  %v4175_v56 = vmul.f32 1.442695, %v4016_v31 }
 0x345   : > { %9766 = vst [vmem:[#allocation33_spill] sm:$0xff] %v8804_v12  ;;  %v4523_v12 = vadd.f32 %v4522_v6, %v4521_v32  ;;  %6921 = vpow2.f32 %v4171_v11 }
 0x346   : > { %v8809_v53 = vpop.f32.mrb[110].mxu0  ;;  %v6906_v29 = vpop.eup %6905  ;;  %6923 = vpow2.f32 %v4169_v61  ;;  %v4528_v42 = vadd.f32 %v4527_v59, %v4526_v21 }
 0x347   : > { %9767 = vst [vmem:[#allocation34_spill] sm:$0xff] %v8809_v53  ;;  %v8813_v5 = vpop.f32.mrb[111].mxu0  ;;  %v8819_v2 = vpop.f32.mrb[90].mxu1  ;;  %v4515_v53 = vrot.slane %v4514_v63, 1  ;;  %v4538_v43 = vsel %vm4369_vm7, %v6906_v29, 0.0  ;;  %v4966_v29 = vrot.slane %v4965_v39, 4  ;;  %6925 = vpow2.f32 %v4295_v4 }
 0x348   : > { %9769 = vst [vmem:[#allocation36_spill] sm:$0xff] %v8813_v5  ;;  %9771 = vst [vmem:[#allocation38_spill] sm:$0xff] %v8819_v2  ;;  %v8822_v28 = vpop.f32.mrb[91].mxu1  ;;  %v4545_v5 = vsel %vm4369_vm7, %v6904_v8, 0.0  ;;  %v6908_v32 = vpop.eup %6907  ;;  %v8831_v8 = vadd.f32 -1.0, %v4523_v12  ;;  %v4539_v24 = vrot.slane %v4538_v43, 4  ;;  %6927 = vpow2.f32 %v4293_v1 }
 0x349   : > { %9772 = vst [vmem:[#allocation39_spill] sm:$0xff] %v8822_v28  ;;  %v4546_v51 = vrot.slane %v4545_v5, 4  ;;  %v4516_v34 = vadd.f32 %v4515_v53, %v4514_v63  ;;  %v6910_v3 = vpop.eup %6909  ;;  %6929 = vpow2.f32 %v4175_v56  ;;  %v8840_v4 = vadd.f32 %v4966_v29, %v4965_v39 }
 0x34a   : > { %v8825_v55 = vpop.f32.mrb[112].mxu0  ;;  %9774 = vst [vmem:[#allocation41_spill] sm:$0xff] %v8831_v8  ;;  %v6912_v37 = vpop.eup %6911  ;;  %v4540_v11 = vadd.f32 %v4539_v24, %v4538_v43  ;;  %v4559_v63 = vsel %vm4369_vm7, %v6910_v3, 0.0  ;;  %v8838_v24 = vadd.f32 %v4536_v33, %v4535_v60  ;;  %v4015_v56 = vsub.f32 0.0, %v8694_v44 }
 0x34b   : > { %9773 = vst [vmem:[#allocation40_spill] sm:$0xff] %v8825_v55  ;;  %v4547_v18 = vadd.f32 %v4546_v51, %v4545_v5  ;;  %v4958_v55 = vsel %vm4369_vm7, %v6908_v32, 0.0  ;;  %v6914_v53 = vpop.eup %6913  ;;  %v8835_v5 = vadd.f32 -1.0, %v4516_v34  ;;  %v4560_v12 = vrot.slane %v4559_v63, 4  ;;  %9777 = vst [vmem:[#allocation44_spill] sm:$0xff] %v8840_v4 }
 0x34c   : > { %v4959_v41 = vrot.slane %v4958_v55, 4  ;;  %v4541_v61 = vrot.slane %v4540_v11, 2  ;;  %v4552_v51 = vsel %vm4369_vm7, %v6912_v37, 0.0  ;;  %v6916_v8 = vpop.eup %6915  ;;  %9776 = vst [vmem:[#allocation43_spill] sm:$0xff] %v8838_v24  ;;  %v4529_v60 = vrot.slane %v4528_v42, 1 }
 0x34d   : > { %v4548_v6 = vrot.slane %v4547_v18, 2  ;;  %9775 = vst [vmem:[#allocation42_spill] sm:$0xff] %v8835_v5  ;;  %v4561_v28 = vadd.f32 %v4560_v12, %v4559_v63  ;;  %v4553_v31 = vrot.slane %v4552_v51, 4  ;;  %v6918_v43 = vpop.eup %6917  ;;  %v4986_v63 = vsel %vm4369_vm7, %v6916_v8, 0.0 }
 0x34e   : > { %v4542_v34 = vadd.f32 %v4541_v61, %v4540_v11  ;;  %v8843_v37 = vadd.f32 %v4959_v41, %v4958_v55  ;;  %v8848_v39 = vsel %vm4369_vm7, %v6918_v43, 0.0  ;;  %v4987_v61 = vrot.slane %v4986_v63, 4 }
 0x34f   : > { %v4549_v27 = vadd.f32 %v4548_v6, %v4547_v18  ;;  %v4993_v6 = vsel %vm4369_vm7, %v6914_v53, 0.0  ;;  %v6920_v18 = vpop.eup %6919  ;;  %v4562_v21 = vrot.slane %v4561_v28, 2  ;;  %v4554_v3 = vadd.f32 %v4553_v31, %v4552_v51  ;;  %9779 = vst [vmem:[#allocation46_spill] sm:$0xff] %v8848_v39 }
 0x350   : > { %v4994_v59 = vrot.slane %v4993_v6, 4  ;;  %v6922_v5 = vpop.eup %6921  ;;  %9778 = vst [vmem:[#allocation45_spill] sm:$0xff] %v8843_v37  ;;  %v4543_v2 = vrot.slane %v4542_v34, 1  ;;  %v8851_v12 = vsel %vm4369_vm7, %v6920_v18, 0.0  ;;  %v4988_v31 = vadd.f32 %v4987_v61, %v4986_v63  ;;  %v8857_v63 = vpop.f32.mrb[113].mxu0 }
 0x351   : > { %v4550_v32 = vrot.slane %v4549_v27, 1  ;;  %v4555_v33 = vrot.slane %v4554_v3, 2  ;;  %v6924_v11 = vpop.eup %6923  ;;  %v4563_v55 = vadd.f32 %v4562_v21, %v4561_v28  ;;  %v4573_v8 = vsel %vm4369_vm7, %v6922_v5, 0.0  ;;  %9780 = vst [vmem:[#allocation47_spill] sm:$0xff] %v8857_v63 }
 0x352   : > { %v4995_v29 = vadd.f32 %v4994_v59, %v4993_v6  ;;  %v4574_v4 = vrot.slane %v4573_v8, 4  ;;  %v4173_v43 = vmul.f32 1.442695, %v4015_v56  ;;  %v4530_v24 = vadd.f32 %v4529_v60, %v4528_v42 }
 0x353   : > { %v4551_v1 = vadd.f32 %v4550_v32, %v4549_v27  ;;  %v4544_v27 = vadd.f32 %v4543_v2, %v4542_v34  ;;  %v4556_v41 = vadd.f32 %v4555_v33, %v4554_v3  ;;  %v6926_v32 = vpop.eup %6925  ;;  %v4566_v2 = vsel %vm4369_vm7, %v6924_v11, 0.0 }
 0x354   : > { %v4996_v51 = vrot.slane %v4995_v29, 2  ;;  %v6928_v37 = vpop.eup %6927  ;;  %v4973_v18 = vrot.slane %v8851_v12, 4  ;;  %v4989_v28 = vrot.slane %v4988_v31, 2  ;;  %v4564_v3 = vrot.slane %v4563_v55, 1 }
 0x355   : > { %v6141_v53 = vadd.f32 -1.0, %v4551_v1  ;;  %v6140_v44 = vadd.f32 -1.0, %v4544_v27  ;;  %v4557_v6 = vrot.slane %v4556_v41, 1  ;;  %v4575_v1 = vadd.f32 %v4574_v4, %v4573_v8  ;;  %v6930_v21 = vpop.eup %6929 }
 0x356   : > { %v4997_v59 = vadd.f32 %v4996_v51, %v4995_v29  ;;  %v4567_v27 = vrot.slane %v4566_v2, 4  ;;  %v4990_v56 = vadd.f32 %v4989_v28, %v4988_v31  ;;  %v5007_v42 = vsel %vm4369_vm7, %v6926_v32, 0.0  ;;  %v8865_v32 = vpop.f32.mrb[92].mxu1 }
 0x357   : > { %v5552_v34 = vsel %vm5524_vm8, %v6141_v53, %v6140_v44  ;;  %v4558_v5 = vadd.f32 %v4557_v6, %v4556_v41  ;;  %v4576_v61 = vrot.slane %v4575_v1, 2  ;;  %v5000_v60 = vsel %vm4369_vm7, %v6928_v37, 0.0 }
 0x358   : > { %v4998_v33 = vrot.slane %v4997_v59, 1  ;;  %v4568_v53 = vadd.f32 %v4567_v27, %v4566_v2  ;;  %v5008_v51 = vrot.slane %v5007_v42, 4  ;;  %v4991_v44 = vrot.slane %v4990_v56, 1 }
 0x359   : > { %v6142_v29 = vadd.f32 -1.0, %v4558_v5  ;;  %v4577_v4 = vadd.f32 %v4576_v61, %v4575_v1  ;;  %v5001_v8 = vrot.slane %v5000_v60, 4  ;;  %v4587_v41 = vsel %vm4369_vm7, %v6930_v21, 0.0  ;;  %v8870_v21 = vpop.f32.mrb[114].mxu0 }
 0x35a   : > { %v4999_v11 = vadd.f32 %v4998_v33, %v4997_v59  ;;  %v4565_v6 = vadd.f32 %v4564_v3, %v4563_v55  ;;  %v4569_v31 = vrot.slane %v4568_v53, 2  ;;  %v5009_v28 = vadd.f32 %v5008_v51, %v5007_v42  ;;  %v8867_v33 = vpop.f32.mrb[93].mxu1 }
 0x35b   : > { %v8863_v63 = vsel %vm5526_vm9, %v6142_v29, %v5552_v34  ;;  %v4992_v59 = vadd.f32 %v4991_v44, %v4990_v56  ;;  %v5002_v2 = vadd.f32 %v5001_v8, %v5000_v60  ;;  %v4588_v5 = vrot.slane %v4587_v41, 4  ;;  %v8872_v29 = vpop.f32.mrb[115].mxu0  ;;  %v8875_v44 = vpop.f32.mrb[94].mxu1 }
 0x35c   : > { %v6205_v37 = vadd.f32 -1.0, %v4999_v11  ;;  %v4570_v1 = vadd.f32 %v4569_v31, %v4568_v53  ;;  %v5010_v27 = vrot.slane %v5009_v28, 2  ;;  %6931 = vpow2.f32 %v4173_v43  ;;  %9781 = vst [vmem:[#allocation48_spill] sm:$0xff] %v8872_v29  ;;  %v8879_v31 = vpop.f32.mrb[95].mxu1  ;;  %v8883_v29 = vpop.f32.mrb[116].mxu0 }
 0x35d   : > { %v4078_v55 = vsub.f32 0.0, %v8700_v17  ;;  %v6204_v34 = vadd.f32 -1.0, %v4992_v59  ;;  %v4578_v3 = vrot.slane %v4577_v4, 1  ;;  %v5003_v61 = vrot.slane %v5002_v2, 2 }
 0x35e   : > { %v4589_v42 = vadd.f32 %v4588_v5, %v4587_v41  ;;  %v4571_v11 = vrot.slane %v4570_v1, 1  ;;  %v5011_v56 = vadd.f32 %v5010_v27, %v5009_v28  ;;  %v4077_v51 = vsub.f32 0.0, %v8703_v62 }
 0x35f   : > { %v4299_v60 = vmul.f32 1.442695, %v4078_v55  ;;  %v5608_v43 = vsel %vm5524_vm8, %v6205_v37, %v6204_v34  ;;  %v5004_v17 = vadd.f32 %v5003_v61, %v5002_v2  ;;  %v8881_v59 = vadd.f32 -1.0, %v4530_v24  ;;  %v8891_v37 = vpop.f32.mrb[117].mxu0  ;;  %v8899_v61 = vpop.f32.mrb[96].mxu1 }
 0x360   : > { %v4590_v8 = vrot.slane %v4589_v42, 2  ;;  %v5012_v41 = vrot.slane %v5011_v56, 1  ;;  %v4297_v5 = vmul.f32 1.442695, %v4077_v51  ;;  %v8886_v28 = vadd.f32 %v4973_v18, %v8851_v12 }
 0x361   : > { %6933 = vpow2.f32 %v4299_v60  ;;  %v8888_v62 = vadd.f32 -1.0, %v4565_v6  ;;  %v5005_v27 = vrot.slane %v5004_v17, 1  ;;  %v4018_v55 = vsub.f32 0.0, %v8707_v46  ;;  %v8905_v46 = vpop.f32.mrb[97].mxu1 }
 0x362   : > { %9782 = vst [vmem:[#allocation49_spill] sm:$0xff] %v8886_v28  ;;  %v8893_v2 = vadd.f32 %v4578_v3, %v4577_v4  ;;  %v8895_v34 = vadd.f32 %v4571_v11, %v4570_v1  ;;  %v8897_v24 = vadd.f32 %v4590_v8, %v4589_v42  ;;  %6935 = vpow2.f32 %v4297_v5  ;;  %v8914_v3 = vpop.f32.mrb[118].mxu0 }
 0x363   : > { %v5006_v60 = vadd.f32 %v5005_v27, %v5004_v17  ;;  %v4179_v51 = vmul.f32 1.442695, %v4018_v55  ;;  %v6123_v12 = vadd.f32 -1.0, %v8747_v35  ;;  %v5529_v18 = vsel %vm5528_vm10, %v8670_v49, %v8618_v16  ;;  %v8919_v49 = vpop.f32.mrb[119].mxu0  ;;  %v8927_v17 = vpop.f32.mrb[98].mxu1  ;;  %v9922_v55 = vld [vmem:[#allocation23_spill] sm:$0xff] }
 0x364   : > { %v8907_v6 = vadd.f32 %v5012_v41, %v5011_v56  ;;  %v5531_v4 = vsel %vm5530_vm11, %v8744_v25, %v5529_v18  ;;  %v5540_v1 = vsel %vm5528_vm10, %v8761_v20, %v8698_v50  ;;  %v6131_v35 = vadd.f32 -1.0, %v8765_v47  ;;  %9783 = vst [vmem:[#allocation50_spill] sm:$0xff] %v8927_v17  ;;  %v8940_v27 = vpop.f32.mrb[120].mxu0 }
 0x365   : > { %v6206_v42 = vadd.f32 -1.0, %v5006_v60  ;;  %6937 = vpow2.f32 %v4179_v51  ;;  %v5533_v16 = vsel %vm5532_vm12, %v8682_v30, %v5531_v4  ;;  %v5541_v56 = vsel %vm5530_vm11, %v8775_v38, %v5540_v1  ;;  %9786 = vst [vmem:[#allocation53_spill] sm:$0xff] %v8940_v27  ;;  %v9789_v51 = vld [vmem:[#allocation11_spill] sm:$0xff] }
 0x366   : > { %v6932_v11 = vpop.eup %6931  ;;  %v5535_v25 = vsel %vm5534_vm13, %v8751_v58, %v5533_v16  ;;  %v4017_v50 = vsub.f32 0.0, %v8709_v13  ;;  %v4080_v20 = vsub.f32 0.0, %v8712_v9  ;;  %v5542_v41 = vsel %vm5532_vm12, %v8763_v26, %v5541_v56  ;;  %v8936_v58 = vpop.f32.mrb[99].mxu1 }
 0x367   : > { %v8930_v47 = vsel %vm5526_vm9, %v6206_v42, %v5608_v43  ;;  %v4580_v30 = vsel %vm4369_vm7, %v6932_v11, 0.0  ;;  %v5537_v8 = vsel %vm5536_vm14, %v6123_v12, %v5535_v25  ;;  %9785 = vst [vmem:[#allocation52_spill] sm:$0xff] %v8936_v58  ;;  %v5543_v13 = vsel %vm5534_vm13, %v8806_v54, %v5542_v41  ;;  %v8953_v42 = vpop.f32.mrb[121].mxu0  ;;  %v8956_v25 = vpop.f32.mrb[100].mxu1  ;;  %v9793_v41 = vld [vmem:[#allocation13_spill] sm:$0xff] }
 0x368   : > { %9784 = vst [vmem:[#allocation51_spill] sm:$0xff] %v8930_v47  ;;  %v4581_v5 = vrot.slane %v4580_v30, 4  ;;  %v4177_v38 = vmul.f32 1.442695, %v4017_v50  ;;  %v4303_v9 = vmul.f32 1.442695, %v4080_v20  ;;  %v5544_v43 = vsel %vm5536_vm14, %v6131_v35, %v5543_v13 }
 0x369   : > { %v4079_v26 = vsub.f32 0.0, %v8714_v57  ;;  %v4020_v60 = vsub.f32 0.0, %v8716_v52  ;;  %v4019_v12 = vsub.f32 0.0, %v9789_v51  ;;  %v6755_v4 = vpack.c.bf16 %v5544_v43, %v5537_v8  ;;  %9790 = vst [vmem:[#allocation11_spill] sm:$0xff] %v8953_v42  ;;  %9791 = vst [vmem:[#allocation54_spill] sm:$0xff] %v8956_v25 }
 0x36a   : > { %v4582_v54 = vadd.f32 %v4581_v5, %v4580_v30  ;;  %6939 = vpow2.f32 %v4177_v38  ;;  %v4082_v1 = vsub.f32 0.0, %v8721_v36  ;;  %v9792_v36 = vld [vmem:[#allocation12_spill] sm:$0xff]  ;;  %v4022_v5 = vsub.f32 0.0, %v9793_v41  ;;  %v8964_v38 = vpop.f32.mrb[101].mxu1 }
 0x36b   : > { %v6934_v18 = vpop.eup %6933  ;;  %6941 = vpow2.f32 %v4303_v9  ;;  %v4301_v16 = vmul.f32 1.442695, %v4079_v26  ;;  %v4183_v11 = vmul.f32 1.442695, %v4020_v60  ;;  %6757 = vmatpush3.bf16.xpose.msk.msra.mxu1 %vm8945_vm15, %v6755_v4  ;;  %v4181_v50 = vmul.f32 1.442695, %v4019_v12 }
 0x36c   : > { %v5021_v35 = vsel %vm4369_vm7, %v6934_v18, 0.0  ;;  %v6936_v57 = vpop.eup %6935  ;;  %v4583_v56 = vrot.slane %v4582_v54, 2  ;;  %v4307_v20 = vmul.f32 1.442695, %v4082_v1  ;;  %v4081_v8 = vsub.f32 0.0, %v9792_v36  ;;  %9795 = vst [vmem:[#allocation12_spill] sm:$0xff] %v8964_v38 }
 0x36d   : > { %v5022_v52 = vrot.slane %v5021_v35, 4  ;;  %v5014_v30 = vsel %vm4369_vm7, %v6936_v57, 0.0  ;;  %6943 = vpow2.f32 %v4301_v16  ;;  %v9794_v13 = vmov 0.0|0.0   ;;  %v9796_v18 = vld [vmem:[#allocation14_spill] sm:$0xff]  ;;  %v8967_v1 = vpop.f32.mrb[122].mxu0 }
 0x36e   : > { %6758 = vmatprep.subr.bf16.mxu1 %v9794_v13  ;;  %v4584_v9 = vadd.f32 %v4583_v56, %v4582_v54  ;;  %v5015_v26 = vrot.slane %v5014_v30, 4  ;;  %6945 = vpow2.f32 %v4183_v11  ;;  %v4305_v51 = vmul.f32 1.442695, %v4081_v8  ;;  %9797 = vst [vmem:[#allocation13_spill] sm:$0xff] %v8967_v1  ;;  %v8970_v53 = vpop.f32.mrb[123].mxu0 }
 0x36f   : > { %v5023_v43 = vadd.f32 %v5022_v52, %v5021_v35  ;;  %v6938_v60 = vpop.eup %6937  ;;  %6947 = vpow2.f32 %v4181_v50  ;;  %v4187_v12 = vmul.f32 1.442695, %v4022_v5  ;;  %v4021_v4 = vsub.f32 0.0, %v9796_v18  ;;  %9798 = vst [vmem:[#allocation14_spill] sm:$0xff] %v8970_v53 }
 0x370   : > { %v4585_v16 = vrot.slane %v4584_v9, 1  ;;  %v5016_v36 = vadd.f32 %v5015_v26, %v5014_v30  ;;  %v4601_v41 = vsel %vm4369_vm7, %v6938_v60, 0.0  ;;  %v4592_v54 = vrot.slane %v8897_v24, 1  ;;  %v8975_v30 = vpop.f32.mrb[102].mxu1 }
 0x371   : > { %v5024_v57 = vrot.slane %v5023_v43, 2  ;;  %v4602_v35 = vrot.slane %v4601_v41, 4  ;;  %6949 = vpow2.f32 %v4307_v20  ;;  %v4084_v11 = vsub.f32 0.0, %v8732_v19  ;;  %9799 = vst [vmem:[#allocation55_spill] sm:$0xff] %v8975_v30 }
 0x372   : > { %v5017_v52 = vrot.slane %v5016_v36, 2  ;;  %6951 = vpow2.f32 %v4305_v51  ;;  %v4185_v50 = vmul.f32 1.442695, %v4021_v4  ;;  %v4586_v8 = vadd.f32 %v4585_v16, %v4584_v9  ;;  %v8990_v4 = vpop.f32.mrb[103].mxu1 }
 0x373   : > { %v5025_v56 = vadd.f32 %v5024_v57, %v5023_v43  ;;  %v4603_v5 = vadd.f32 %v4602_v35, %v4601_v41  ;;  %6953 = vpow2.f32 %v4187_v12  ;;  %v4083_v18 = vsub.f32 0.0, %v8734_v14  ;;  %9801 = vst [vmem:[#allocation57_spill] sm:$0xff] %v8990_v4 }
 0x374   : > { %v6940_v26 = vpop.eup %6939  ;;  %v8978_v60 = vadd.f32 -1.0, %v8893_v2  ;;  %v8981_v28 = vadd.f32 -1.0, %v8895_v34  ;;  %v5018_v20 = vadd.f32 %v5017_v52, %v5016_v36  ;;  %v4311_v19 = vmul.f32 1.442695, %v4084_v11 }
 0x375   : > { %v6942_v43 = vpop.eup %6941  ;;  %v8984_v51 = vadd.f32 -1.0, %v8907_v6  ;;  %v8987_v9 = vadd.f32 %v4592_v54, %v8897_v24  ;;  %v4604_v12 = vrot.slane %v4603_v5, 2  ;;  %v4594_v14 = vsel %vm4369_vm7, %v6940_v26, 0.0  ;;  %v8996_v26 = vpop.f32.mrb[124].mxu0 }
 0x376   : > { %v5026_v16 = vrot.slane %v5025_v56, 1  ;;  %v4595_v2 = vrot.slane %v4594_v14, 4  ;;  %v5035_v57 = vsel %vm4369_vm7, %v6942_v43, 0.0  ;;  %6955 = vpow2.f32 %v4185_v50  ;;  %9802 = vst [vmem:[#allocation58_spill] sm:$0xff] %v8996_v26 }
 0x377   : > { %9800 = vst [vmem:[#allocation56_spill] sm:$0xff] %v8984_v51  ;;  %v6944_v34 = vpop.eup %6943  ;;  %v8993_v36 = vadd.f32 -1.0, %v4586_v8  ;;  %v4605_v41 = vadd.f32 %v4604_v12, %v4603_v5  ;;  %v5036_v35 = vrot.slane %v5035_v57, 4  ;;  %v4309_v6 = vmul.f32 1.442695, %v4083_v18  ;;  %v9000_v18 = vpop.f32.mrb[125].mxu0 }
 0x378   : > { %v6946_v11 = vpop.eup %6945  ;;  %v5019_v52 = vrot.slane %v5018_v20, 1  ;;  %v4596_v24 = vadd.f32 %v4595_v2, %v4594_v14  ;;  %v5028_v54 = vsel %vm4369_vm7, %v6944_v34, 0.0  ;;  %6957 = vpow2.f32 %v4311_v19  ;;  %9803 = vst [vmem:[#allocation59_spill] sm:$0xff] %v9000_v18 }
 0x379   : > { %v6948_v39 = vpop.eup %6947  ;;  %v4606_v51 = vrot.slane %v4605_v41, 1  ;;  %v5037_v47 = vadd.f32 %v5036_v35, %v5035_v57  ;;  %v5029_v4 = vrot.slane %v5028_v54, 4  ;;  %v4615_v50 = vsel %vm4369_vm7, %v6946_v11, 0.0 }
 0x37a   : > { %v5027_v43 = vadd.f32 %v5026_v16, %v5025_v56  ;;  %v4597_v8 = vrot.slane %v4596_v24, 2  ;;  %v4616_v30 = vrot.slane %v4615_v50, 4  ;;  %v4608_v5 = vsel %vm4369_vm7, %v6948_v39, 0.0 }
 0x37b   : > { %v6950_v12 = vpop.eup %6949  ;;  %v4607_v14 = vadd.f32 %v4606_v51, %v4605_v41  ;;  %v5030_v2 = vadd.f32 %v5029_v4, %v5028_v54  ;;  %v4609_v34 = vrot.slane %v4608_v5, 4  ;;  %6959 = vpow2.f32 %v4309_v6 }
 0x37c   : > { %v6952_v19 = vpop.eup %6951  ;;  %v4598_v26 = vadd.f32 %v4597_v8, %v4596_v24  ;;  %v5038_v53 = vrot.slane %v5037_v47, 2  ;;  %v4617_v1 = vadd.f32 %v4616_v30, %v4615_v50  ;;  %v5049_v57 = vsel %vm4369_vm7, %v6950_v12, 0.0 }
 0x37d   : > { %v6954_v35 = vpop.eup %6953  ;;  %v5020_v11 = vadd.f32 %v5019_v52, %v5018_v20  ;;  %v5031_v56 = vrot.slane %v5030_v2, 2  ;;  %v4610_v16 = vadd.f32 %v4609_v34, %v4608_v5  ;;  %v4024_v38 = vsub.f32 0.0, %v8738_v10 }
 0x37e   : > { %v4599_v39 = vrot.slane %v4598_v26, 1  ;;  %v4618_v25 = vrot.slane %v4617_v1, 2  ;;  %v5050_v18 = vrot.slane %v5049_v57, 4  ;;  %v5042_v51 = vsel %vm4369_vm7, %v6952_v19, 0.0 }
 0x37f   : > { %v9005_v4 = vadd.f32 -1.0, %v5027_v43  ;;  %v6149_v41 = vadd.f32 -1.0, %v4607_v14  ;;  %v4611_v6 = vrot.slane %v4610_v16, 2  ;;  %v5043_v24 = vrot.slane %v5042_v51, 4 }
 0x380   : > { %v6956_v54 = vpop.eup %6955  ;;  %v4600_v30 = vadd.f32 %v4599_v39, %v4598_v26  ;;  %v5039_v50 = vadd.f32 %v5038_v53, %v5037_v47  ;;  %v5051_v8 = vadd.f32 %v5050_v18, %v5049_v57  ;;  %v4629_v20 = vsel %vm4369_vm7, %v6954_v35, 0.0 }
 0x381   : > { %9804 = vst [vmem:[#allocation60_spill] sm:$0xff] %v9005_v4  ;;  %v9008_v52 = vadd.f32 -1.0, %v5020_v11  ;;  %v5032_v5 = vadd.f32 %v5031_v56, %v5030_v2  ;;  %v4612_v10 = vadd.f32 %v4611_v6, %v4610_v16  ;;  %v5044_v12 = vadd.f32 %v5043_v24, %v5042_v51  ;;  %v9013_v51 = vpop.f32.mrb[104].mxu1 }
 0x382   : > { %v6958_v34 = vpop.eup %6957  ;;  %v6148_v42 = vadd.f32 -1.0, %v4600_v30  ;;  %v4619_v27 = vadd.f32 %v4618_v25, %v4617_v1  ;;  %v5052_v19 = vrot.slane %v5051_v8, 2  ;;  %v4630_v43 = vrot.slane %v4629_v20, 4 }
 0x383   : > { %9805 = vst [vmem:[#allocation61_spill] sm:$0xff] %v9008_v52  ;;  %v4613_v4 = vrot.slane %v4612_v10, 1  ;;  %v5045_v14 = vrot.slane %v5044_v12, 2  ;;  %v4622_v58 = vsel %vm4369_vm7, %v6956_v54, 0.0  ;;  %v4191_v17 = vmul.f32 1.442695, %v4024_v38 }
 0x384   : > { %v5559_v53 = vsel %vm5524_vm8, %v6149_v41, %v6148_v42  ;;  %v5040_v47 = vrot.slane %v5039_v50, 1  ;;  %v5053_v26 = vadd.f32 %v5052_v19, %v5051_v8  ;;  %v4631_v18 = vadd.f32 %v4630_v43, %v4629_v20  ;;  %v9016_v8 = vpop.f32.mrb[105].mxu1 }
 0x385   : > { %v6960_v57 = vpop.eup %6959  ;;  %v5033_v35 = vrot.slane %v5032_v5, 1  ;;  %v4614_v2 = vadd.f32 %v4613_v4, %v4612_v10  ;;  %v5046_v11 = vadd.f32 %v5045_v14, %v5044_v12  ;;  %v4623_v56 = vrot.slane %v4622_v58, 4  ;;  %v9806_v14 = vld [vmem:[#allocation15_spill] sm:$0xff] }
 0x386   : > { %v4620_v16 = vrot.slane %v4619_v27, 1  ;;  %v5054_v39 = vrot.slane %v5053_v26, 1  ;;  %v4632_v25 = vrot.slane %v4631_v18, 2  ;;  %v5063_v1 = vsel %vm4369_vm7, %v6958_v34, 0.0 }
 0x387   : > { %v6150_v6 = vadd.f32 -1.0, %v4614_v2  ;;  %v5047_v24 = vrot.slane %v5046_v11, 1  ;;  %v4624_v38 = vadd.f32 %v4623_v56, %v4622_v58  ;;  %v5064_v54 = vrot.slane %v5063_v1, 4 }
 0x388   : > { %v5055_v42 = vadd.f32 %v5054_v39, %v5053_v26  ;;  %v4633_v41 = vadd.f32 %v4632_v25, %v4631_v18  ;;  %v5056_v30 = vsel %vm4369_vm7, %v6960_v57, 0.0  ;;  %6961 = vpow2.f32 %v4191_v17  ;;  %v9026_v25 = vpop.f32.mrb[126].mxu0 }
 0x389   : > { %v9019_v4 = vsel %vm5526_vm9, %v6150_v6, %v5559_v53  ;;  %v5048_v20 = vadd.f32 %v5047_v24, %v5046_v11  ;;  %v4625_v10 = vrot.slane %v4624_v38, 2  ;;  %v5065_v12 = vadd.f32 %v5064_v54, %v5063_v1  ;;  %v9029_v6 = vpop.f32.mrb[127].mxu0 }
 0x38a   : > { %v5034_v34 = vadd.f32 %v5033_v35, %v5032_v5  ;;  %v6213_v19 = vadd.f32 -1.0, %v5055_v42  ;;  %v5057_v43 = vrot.slane %v5056_v30, 4  ;;  %v4023_v2 = vsub.f32 0.0, %v9806_v14 }
 0x38b   : > { %v4621_v58 = vadd.f32 %v4620_v16, %v4619_v27  ;;  %v6212_v56 = vadd.f32 -1.0, %v5048_v20  ;;  %v4634_v26 = vrot.slane %v4633_v41, 1  ;;  %v4086_v18 = vsub.f32 0.0, %v8749_v7 }
 0x38c   : > { %v9023_v57 = vadd.f32 %v5040_v47, %v5039_v50  ;;  %v5058_v17 = vadd.f32 %v5057_v43, %v5056_v30  ;;  %v4189_v39 = vmul.f32 1.442695, %v4023_v2  ;;  %v4085_v53 = vsub.f32 0.0, %v8753_v40  ;;  %v9033_v50 = vpop.f32.mrb[106].mxu1  ;;  %v9810_v40 = vld [vmem:[#allocation17_spill] sm:$0xff] }
 0x38d   : > { %v5615_v11 = vsel %vm5524_vm8, %v6213_v19, %v6212_v56  ;;  %v4626_v5 = vadd.f32 %v4625_v10, %v4624_v38  ;;  %v5066_v35 = vrot.slane %v5065_v12, 2  ;;  %v4315_v1 = vmul.f32 1.442695, %v4086_v18  ;;  %v9811_v38 = vld [vmem:[#allocation18_spill] sm:$0xff]  ;;  %v9041_v14 = vpop.f32.mrb[107].mxu1 }
 0x38e   : > { %9807 = vst [vmem:[#allocation15_spill] sm:$0xff] %v9023_v57  ;;  %v9031_v27 = vadd.f32 -1.0, %v5034_v34  ;;  %v5059_v16 = vrot.slane %v5058_v17, 2  ;;  %6963 = vpow2.f32 %v4189_v39  ;;  %v4313_v7 = vmul.f32 1.442695, %v4085_v53 }
 0x38f   : > { %v9035_v47 = vadd.f32 -1.0, %v4621_v58  ;;  %v4635_v24 = vadd.f32 %v4634_v26, %v4633_v41  ;;  %6965 = vpow2.f32 %v4315_v1  ;;  %v4026_v54 = vsub.f32 0.0, %v9810_v40  ;;  %v9813_v1 = vld [vmem:[#allocation19_spill] sm:$0xff] }
 0x390   : > { %9808 = vst [vmem:[#allocation62_spill] sm:$0xff] %v9031_v27  ;;  %v5060_v42 = vadd.f32 %v5059_v16, %v5058_v17  ;;  %6967 = vpow2.f32 %v4313_v7  ;;  %v4025_v30 = vsub.f32 0.0, %v9811_v38  ;;  %v4088_v20 = vsub.f32 0.0, %v8773_v45  ;;  %v9047_v45 = vpop.f32.mrb[128].mxu0  ;;  %v9814_v7 = vld [vmem:[#allocation30_spill] sm:$0xff] }
 0x391   : > { %9809 = vst [vmem:[#allocation63_spill] sm:$0xff] %v9035_v47  ;;  %v4627_v10 = vrot.slane %v4626_v5, 1  ;;  %v5067_v34 = vadd.f32 %v5066_v35, %v5065_v12  ;;  %v4195_v19 = vmul.f32 1.442695, %v4026_v54  ;;  %v4087_v43 = vsub.f32 0.0, %v8777_v48 }
 0x392   : > { %v6962_v2 = vpop.eup %6961  ;;  %v5061_v58 = vrot.slane %v5060_v42, 1  ;;  %v4193_v56 = vmul.f32 1.442695, %v4025_v30  ;;  %v4319_v41 = vmul.f32 1.442695, %v4088_v20  ;;  %v4028_v26 = vsub.f32 0.0, %v8779_v0 }
 0x393   : > { %v9044_v18 = vadd.f32 -1.0, %v4635_v24  ;;  %v4643_v17 = vsel %vm4369_vm7, %v6962_v2, 0.0  ;;  %6969 = vpow2.f32 %v4195_v19  ;;  %v4317_v39 = vmul.f32 1.442695, %v4087_v43 }
 0x394   : > { %v5062_v12 = vadd.f32 %v5061_v58, %v5060_v42  ;;  %v4644_v53 = vrot.slane %v4643_v17, 4  ;;  %6971 = vpow2.f32 %v4193_v56  ;;  %v4199_v48 = vmul.f32 1.442695, %v4028_v26 }
 0x395   : > { %9812 = vst [vmem:[#allocation17_spill] sm:$0xff] %v9044_v18  ;;  %6973 = vpow2.f32 %v4319_v41  ;;  %v4027_v35 = vsub.f32 0.0, %v8782_v15  ;;  %v4090_v16 = vsub.f32 0.0, %v9813_v1  ;;  %v4089_v40 = vsub.f32 0.0, %v9814_v7 }
 0x396   : > { %v6214_v0 = vadd.f32 -1.0, %v5062_v12  ;;  %v4645_v24 = vadd.f32 %v4644_v53, %v4643_v17  ;;  %6975 = vpow2.f32 %v4317_v39  ;;  %v4030_v54 = vsub.f32 0.0, %v8793_v22  ;;  %v9816_v53 = vld [vmem:[#allocation32_spill] sm:$0xff] }
 0x397   : > { %v5068_v38 = vrot.slane %v5067_v34, 1  ;;  %6977 = vpow2.f32 %v4199_v48  ;;  %v4197_v30 = vmul.f32 1.442695, %v4027_v35  ;;  %v4323_v20 = vmul.f32 1.442695, %v4090_v16 }
 0x398   : > { %v6964_v42 = vpop.eup %6963  ;;  %v9054_v19 = vsel %vm5526_vm9, %v6214_v0, %v5615_v11  ;;  %v4646_v43 = vrot.slane %v4645_v24, 2  ;;  %v4321_v2 = vmul.f32 1.442695, %v4089_v40  ;;  %v4029_v15 = vsub.f32 0.0, %v8800_v23  ;;  %v9817_v0 = vld [vmem:[#allocation33_spill] sm:$0xff] }
 0x399   : > { %9815 = vst [vmem:[#allocation18_spill] sm:$0xff] %v9054_v19  ;;  %v6966_v58 = vpop.eup %6965  ;;  %v4628_v56 = vadd.f32 %v4627_v10, %v4626_v5  ;;  %v4636_v41 = vsel %vm4369_vm7, %v6964_v42, 0.0  ;;  %6979 = vpow2.f32 %v4197_v30  ;;  %v4203_v26 = vmul.f32 1.442695, %v4030_v54 }
 0x39a   : > { %v6968_v17 = vpop.eup %6967  ;;  %v4647_v22 = vadd.f32 %v4646_v43, %v4645_v24  ;;  %v4637_v39 = vrot.slane %v4636_v41, 4  ;;  %v5077_v12 = vsel %vm4369_vm7, %v6966_v58, 0.0  ;;  %v4092_v48 = vsub.f32 0.0, %v9816_v53 }
 0x39b   : > { %v5078_v35 = vrot.slane %v5077_v12, 4  ;;  %v5070_v11 = vsel %vm4369_vm7, %v6968_v17, 0.0  ;;  %6981 = vpow2.f32 %v4323_v20  ;;  %v4201_v1 = vmul.f32 1.442695, %v4029_v15 }
 0x39c   : > { %v5069_v16 = vadd.f32 %v5068_v38, %v5067_v34  ;;  %v4638_v23 = vadd.f32 %v4637_v39, %v4636_v41  ;;  %v5071_v7 = vrot.slane %v5070_v11, 4  ;;  %6983 = vpow2.f32 %v4321_v2 }
 0x39d   : > { %v6970_v5 = vpop.eup %6969  ;;  %v4648_v10 = vrot.slane %v4647_v22, 1  ;;  %v5079_v40 = vadd.f32 %v5078_v35, %v5077_v12  ;;  %6985 = vpow2.f32 %v4203_v26  ;;  %v4091_v24 = vsub.f32 0.0, %v9817_v0 }
 0x39e   : > { %v6972_v54 = vpop.eup %6971  ;;  %v4639_v30 = vrot.slane %v4638_v23, 2  ;;  %v5072_v42 = vadd.f32 %v5071_v7, %v5070_v11  ;;  %v4657_v43 = vsel %vm4369_vm7, %v6970_v5, 0.0  ;;  %v4327_v58 = vmul.f32 1.442695, %v4092_v48 }
 0x39f   : > { %v6974_v53 = vpop.eup %6973  ;;  %v5080_v17 = vrot.slane %v5079_v40, 2  ;;  %v4658_v20 = vrot.slane %v4657_v43, 4  ;;  %v4650_v34 = vsel %vm4369_vm7, %v6972_v54, 0.0  ;;  %6987 = vpow2.f32 %v4201_v1 }
 0x3a0   : > { %v6976_v38 = vpop.eup %6975  ;;  %v4640_v2 = vadd.f32 %v4639_v30, %v4638_v23  ;;  %v5073_v15 = vrot.slane %v5072_v42, 2  ;;  %v4651_v41 = vrot.slane %v4650_v34, 4  ;;  %v5091_v26 = vsel %vm4369_vm7, %v6974_v53, 0.0 }
 0x3a1   : > { %v6978_v39 = vpop.eup %6977  ;;  %v5081_v12 = vadd.f32 %v5080_v17, %v5079_v40  ;;  %v4659_v35 = vadd.f32 %v4658_v20, %v4657_v43  ;;  %v5092_v0 = vrot.slane %v5091_v26, 4  ;;  %v5084_v11 = vsel %vm4369_vm7, %v6976_v38, 0.0 }
 0x3a2   : > { %v4641_v7 = vrot.slane %v4640_v2, 1  ;;  %v4652_v48 = vadd.f32 %v4651_v41, %v4650_v34  ;;  %v5085_v5 = vrot.slane %v5084_v11, 4  ;;  %6989 = vpow2.f32 %v4327_v58 }
 0x3a3   : > { %v6980_v19 = vpop.eup %6979  ;;  %v5074_v27 = vadd.f32 %v5073_v15, %v5072_v42  ;;  %v4660_v54 = vrot.slane %v4659_v35, 2  ;;  %v5093_v1 = vadd.f32 %v5092_v0, %v5091_v26  ;;  %v4671_v23 = vsel %vm4369_vm7, %v6978_v39, 0.0 }
 0x3a4   : > { %v9067_v30 = vadd.f32 -1.0, %v4628_v56  ;;  %v5082_v52 = vrot.slane %v5081_v12, 1  ;;  %v4653_v53 = vrot.slane %v4652_v48, 2  ;;  %v5086_v57 = vadd.f32 %v5085_v5, %v5084_v11 }
 0x3a5   : > { %v6982_v40 = vpop.eup %6981  ;;  %v9069_v43 = vadd.f32 -1.0, %v5069_v16  ;;  %v4642_v17 = vadd.f32 %v4641_v7, %v4640_v2  ;;  %v4661_v20 = vadd.f32 %v4660_v54, %v4659_v35  ;;  %v4672_v38 = vrot.slane %v4671_v23, 4 }
 0x3a6   : > { %9818 = vst [vmem:[#allocation19_spill] sm:$0xff] %v9067_v30  ;;  %v6984_v34 = vpop.eup %6983  ;;  %v4654_v41 = vadd.f32 %v4653_v53, %v4652_v48  ;;  %v5094_v58 = vrot.slane %v5093_v1, 2  ;;  %v5087_v18 = vrot.slane %v5086_v57, 2  ;;  %v4325_v42 = vmul.f32 1.442695, %v4091_v24 }
 0x3a7   : > { %9819 = vst [vmem:[#allocation30_spill] sm:$0xff] %v9069_v43  ;;  %v6986_v15 = vpop.eup %6985  ;;  %v9071_v26 = vadd.f32 %v4648_v10, %v4647_v22  ;;  %v5075_v39 = vrot.slane %v5074_v27, 1  ;;  %v4662_v56 = vrot.slane %v4661_v20, 1  ;;  %v4673_v0 = vadd.f32 %v4672_v38, %v4671_v23  ;;  %v9825_v43 = vld [vmem:[#allocation36_spill] sm:$0xff] }
 0x3a8   : > { %v5083_v30 = vadd.f32 %v5082_v52, %v5081_v12  ;;  %v4655_v47 = vrot.slane %v4654_v41, 1  ;;  %v5088_v11 = vadd.f32 %v5087_v18, %v5086_v57  ;;  %v4664_v16 = vsel %vm4369_vm7, %v6980_v19, 0.0 }
 0x3a9   : > { %v6988_v5 = vpop.eup %6987  ;;  %v9074_v2 = vadd.f32 -1.0, %v4642_v17  ;;  %v4663_v35 = vadd.f32 %v4662_v56, %v4661_v20  ;;  %v4674_v7 = vrot.slane %v4673_v0, 2  ;;  %v4665_v48 = vrot.slane %v4664_v16, 4 }
 0x3aa   : > { %v4656_v54 = vadd.f32 %v4655_v47, %v4654_v41  ;;  %v9076_v53 = vadd.f32 %v5094_v58, %v5093_v1  ;;  %v5105_v22 = vsel %vm4369_vm7, %v6982_v40, 0.0  ;;  %v5098_v10 = vsel %vm4369_vm7, %v6984_v34, 0.0 }
 0x3ab   : > { %9820 = vst [vmem:[#allocation32_spill] sm:$0xff] %v9074_v2  ;;  %v9080_v24 = vadd.f32 %v5075_v39, %v5074_v27  ;;  %v6157_v52 = vadd.f32 -1.0, %v4663_v35  ;;  %v5089_v12 = vrot.slane %v5088_v11, 1  ;;  %v4666_v57 = vadd.f32 %v4665_v48, %v4664_v16  ;;  %v9088_v35 = vpop.f32.mrb[129].mxu0 }
 0x3ac   : > { %v6990_v18 = vpop.eup %6989  ;;  %v9082_v19 = vadd.f32 -1.0, %v5083_v30  ;;  %v6156_v23 = vadd.f32 -1.0, %v4656_v54  ;;  %v5106_v17 = vrot.slane %v5105_v22, 4  ;;  %v5099_v20 = vrot.slane %v5098_v10, 4  ;;  %9822 = vst [vmem:[#allocation64_spill] sm:$0xff] %v9088_v35 }
 0x3ad   : > { %v4675_v38 = vadd.f32 %v4674_v7, %v4673_v0  ;;  %v4667_v56 = vrot.slane %v4666_v57, 2  ;;  %v4685_v47 = vsel %vm4369_vm7, %v6986_v15, 0.0  ;;  %v4678_v1 = vsel %vm4369_vm7, %v6988_v5, 0.0 }
 0x3ae   : > { %9821 = vst [vmem:[#allocation33_spill] sm:$0xff] %v9082_v19  ;;  %v5566_v40 = vsel %vm5524_vm8, %v6157_v52, %v6156_v23  ;;  %v5096_v27 = vrot.slane %v9076_v53, 1  ;;  %v5107_v34 = vadd.f32 %v5106_v17, %v5105_v22  ;;  %v5100_v41 = vadd.f32 %v5099_v20, %v5098_v10  ;;  %v9091_v52 = vpop.f32.mrb[108].mxu1 }
 0x3af   : > { %v5090_v58 = vadd.f32 %v5089_v12, %v5088_v11  ;;  %v4668_v39 = vadd.f32 %v4667_v56, %v4666_v57  ;;  %v4686_v16 = vrot.slane %v4685_v47, 4  ;;  %v4679_v30 = vrot.slane %v4678_v1, 4  ;;  %v9823_v11 = vld [vmem:[#allocation34_spill] sm:$0xff]  ;;  %v9094_v57 = vpop.f32.mrb[109].mxu1 }
 0x3b0   : > { %v5108_v48 = vrot.slane %v5107_v34, 2  ;;  %v5101_v54 = vrot.slane %v5100_v41, 2  ;;  %v5119_v0 = vsel %vm4369_vm7, %v6990_v18, 0.0  ;;  %6991 = vpow2.f32 %v4325_v42  ;;  %9824 = vst [vmem:[#allocation34_spill] sm:$0xff] %v9094_v57  ;;  %v9097_v18 = vpop.f32.mrb[130].mxu0 }
 0x3b1   : > { %v4676_v15 = vrot.slane %v4675_v38, 1  ;;  %v4669_v7 = vrot.slane %v4668_v39, 1  ;;  %v4687_v5 = vadd.f32 %v4686_v16, %v4685_v47  ;;  %v4680_v19 = vadd.f32 %v4679_v30, %v4678_v1  ;;  %9826 = vst [vmem:[#allocation36_spill] sm:$0xff] %v9097_v18  ;;  %v9099_v16 = vpop.f32.mrb[131].mxu0 }
 0x3b2   : > { %v5109_v23 = vadd.f32 %v5108_v48, %v5107_v34  ;;  %v5102_v22 = vadd.f32 %v5101_v54, %v5100_v41  ;;  %v5120_v10 = vrot.slane %v5119_v0, 4  ;;  %v4032_v12 = vsub.f32 0.0, %v9823_v11  ;;  %9827 = vst [vmem:[#allocation65_spill] sm:$0xff] %v9099_v16  ;;  %v9104_v18 = vpop.f32.mrb[132].mxu0  ;;  %v9828_v16 = vld [vmem:[#allocation38_spill] sm:$0xff] }
 0x3b3   : > { %v4670_v17 = vadd.f32 %v4669_v7, %v4668_v39  ;;  %v4688_v20 = vrot.slane %v4687_v5, 2  ;;  %v4681_v56 = vrot.slane %v4680_v19, 2  ;;  %v4031_v2 = vsub.f32 0.0, %v9825_v43 }
 0x3b4   : > { %v5110_v42 = vrot.slane %v5109_v23, 1  ;;  %v5103_v35 = vrot.slane %v5102_v22, 1  ;;  %v5121_v47 = vadd.f32 %v5120_v10, %v5119_v0  ;;  %v4207_v1 = vmul.f32 1.442695, %v4032_v12 }
 0x3b5   : > { %v6158_v34 = vadd.f32 -1.0, %v4670_v17  ;;  %v4689_v41 = vadd.f32 %v4688_v20, %v4687_v5  ;;  %v4682_v30 = vadd.f32 %v4681_v56, %v4680_v19  ;;  %v4205_v48 = vmul.f32 1.442695, %v4031_v2  ;;  %v9107_v5 = vpop.f32.mrb[133].mxu0 }
 0x3b6   : > { %v4677_v54 = vadd.f32 %v4676_v15, %v4675_v38  ;;  %v5111_v11 = vadd.f32 %v5110_v42, %v5109_v23  ;;  %v5104_v57 = vadd.f32 %v5103_v35, %v5102_v22  ;;  %6993 = vpow2.f32 %v4207_v1  ;;  %v9831_v38 = vld [vmem:[#allocation39_spill] sm:$0xff]  ;;  %v9832_v35 = vld [vmem:[#allocation40_spill] sm:$0xff] }
 0x3b7   : > { %v9102_v39 = vsel %vm5526_vm9, %v6158_v34, %v5566_v40  ;;  %v4690_v43 = vrot.slane %v4689_v41, 1  ;;  %v5122_v7 = vrot.slane %v5121_v47, 2  ;;  %6995 = vpow2.f32 %v4205_v48 }
 0x3b8   : > { %v6221_v0 = vadd.f32 -1.0, %v5111_v11  ;;  %v6220_v10 = vadd.f32 -1.0, %v5104_v57  ;;  %v4683_v12 = vrot.slane %v4682_v30, 1  ;;  %v4094_v17 = vsub.f32 0.0, %v9828_v16 }
 0x3b9   : > { %v9110_v2 = vadd.f32 -1.0, %v9080_v24  ;;  %v9113_v19 = vadd.f32 %v5096_v27, %v9076_v53  ;;  %v4093_v40 = vsub.f32 0.0, %v9831_v38  ;;  %v4034_v15 = vsub.f32 0.0, %v9832_v35  ;;  %v9127_v27 = vpop.f32.mrb[134].mxu0  ;;  %v9839_v35 = vld [vmem:[#allocation47_spill] sm:$0xff] }
 0x3ba   : > { %v6992_v23 = vpop.eup %6991  ;;  %v9117_v22 = vadd.f32 -1.0, %v5090_v58  ;;  %v9119_v20 = vadd.f32 -1.0, %v4677_v54  ;;  %v9122_v57 = vsel %vm5524_vm8, %v6221_v0, %v6220_v10  ;;  %v4331_v56 = vmul.f32 1.442695, %v4094_v17  ;;  %v9131_v48 = vpop.f32.mrb[135].mxu0  ;;  %v9834_v54 = vld [vmem:[#allocation43_spill] sm:$0xff] }
 0x3bb   : > { %9829 = vst [vmem:[#allocation38_spill] sm:$0xff] %v9110_v2  ;;  %9830 = vst [vmem:[#allocation66_spill] sm:$0xff] %v9113_v19  ;;  %v4691_v42 = vadd.f32 %v4690_v43, %v4689_v41  ;;  %v9124_v1 = vadd.f32 %v5122_v7, %v5121_v47  ;;  %v5112_v24 = vsel %vm4369_vm7, %v6992_v23, 0.0  ;;  %v4329_v53 = vmul.f32 1.442695, %v4093_v40  ;;  %v9835_v0 = vld [vmem:[#allocation16_spill] sm:$0xff] }
 0x3bc   : > { %9833 = vst [vmem:[#allocation39_spill] sm:$0xff] %v9117_v22  ;;  %v9129_v16 = vadd.f32 %v4683_v12, %v4682_v30  ;;  %v5113_v34 = vrot.slane %v5112_v24, 4  ;;  %6997 = vpow2.f32 %v4331_v56  ;;  %v4211_v58 = vmul.f32 1.442695, %v4034_v15  ;;  %v9836_v10 = vld [vmem:[#allocation35_spill] sm:$0xff]  ;;  %v9837_v7 = vld [vmem:[#allocation42_spill] sm:$0xff] }
 0x3bd   : > { %6999 = vpow2.f32 %v4329_v53  ;;  %v6139_v11 = vadd.f32 -1.0, %v9834_v54  ;;  %v5547_v47 = vsel %vm5528_vm10, %v9836_v10, %v9835_v0  ;;  %v5554_v41 = vsel %vm5528_vm10, %v8888_v62, %v8863_v63  ;;  %v9838_v17 = vld [vmem:[#allocation41_spill] sm:$0xff]  ;;  %v9149_v56 = vpop.f32.mrb[136].mxu0 }
 0x3be   : > { %v5114_v43 = vadd.f32 %v5113_v34, %v5112_v24  ;;  %7001 = vpow2.f32 %v4211_v58  ;;  %v6147_v30 = vadd.f32 -1.0, %v8987_v9  ;;  %v5548_v12 = vsel %vm5530_vm11, %v9837_v7, %v5547_v47  ;;  %v9156_v34 = vpop.f32.mrb[137].mxu0 }
 0x3bf   : > { %v5549_v38 = vsel %vm5532_vm12, %v9838_v17, %v5548_v12  ;;  %v5555_v40 = vsel %vm5530_vm11, %v8981_v28, %v5554_v41  ;;  %v4033_v15 = vsub.f32 0.0, %v9839_v35  ;;  %v4096_v23 = vsub.f32 0.0, %v8865_v32  ;;  %v9164_v12 = vpop.f32.mrb[138].mxu0 }
 0x3c0   : > { %v6994_v63 = vpop.eup %6993  ;;  %v5115_v62 = vrot.slane %v5114_v43, 2  ;;  %v5550_v9 = vsel %vm5534_vm13, %v8881_v59, %v5549_v38  ;;  %v5556_v24 = vsel %vm5532_vm12, %v8978_v60, %v5555_v40  ;;  %v4095_v53 = vsub.f32 0.0, %v8867_v33  ;;  %v9167_v35 = vpop.f32.mrb[139].mxu0 }
 0x3c1   : > { %v6996_v58 = vpop.eup %6995  ;;  %v4699_v28 = vsel %vm4369_vm7, %v6994_v63, 0.0  ;;  %v5551_v54 = vsel %vm5536_vm14, %v6139_v11, %v5550_v9  ;;  %v5557_v32 = vsel %vm5534_vm13, %v8993_v36, %v5556_v24  ;;  %v4209_v0 = vmul.f32 1.442695, %v4033_v15 }
 0x3c2   : > { %v5116_v10 = vadd.f32 %v5115_v62, %v5114_v43  ;;  %v4700_v47 = vrot.slane %v4699_v28, 4  ;;  %v4692_v59 = vsel %vm4369_vm7, %v6996_v58, 0.0  ;;  %v5558_v41 = vsel %vm5536_vm14, %v6147_v30, %v5557_v32  ;;  %v9840_v43 = vld [vmem:[#allocation48_spill] sm:$0xff] }
 0x3c3   : > { %v4693_v60 = vrot.slane %v4692_v59, 4  ;;  %v6759_v7 = vpack.c.bf16 %v5558_v41, %v5551_v54  ;;  %7003 = vpow2.f32 %v4209_v0  ;;  %v4335_v33 = vmul.f32 1.442695, %v4096_v23 }
 0x3c4   : > { %v5117_v17 = vrot.slane %v5116_v10, 1  ;;  %v4701_v38 = vadd.f32 %v4700_v47, %v4699_v28  ;;  %v4333_v40 = vmul.f32 1.442695, %v4095_v53  ;;  %v4036_v11 = vsub.f32 0.0, %v8870_v21 }
 0x3c5   : > { %v4694_v36 = vadd.f32 %v4693_v60, %v4692_v59  ;;  %6761 = vmatpush3.bf16.xpose.msk.msra.mxu1 %vm8945_vm15, %v6759_v7  ;;  %7005 = vpow2.f32 %v4335_v33  ;;  %v4035_v30 = vsub.f32 0.0, %v9840_v43  ;;  %v4098_v15 = vsub.f32 0.0, %v8875_v44  ;;  %v9179_v59 = vpop.f32.mrb[140].mxu0 }
 0x3c6   : > { %v6998_v63 = vpop.eup %6997  ;;  %v5124_v23 = vrot.slane %v9124_v1, 1  ;;  %v5118_v62 = vadd.f32 %v5117_v17, %v5116_v10  ;;  %7007 = vpow2.f32 %v4333_v40  ;;  %v4215_v9 = vmul.f32 1.442695, %v4036_v11  ;;  %6762 = vmatprep.subr.bf16.mxu1 %v9794_v13  ;;  %v9182_v7 = vpop.f32.mrb[141].mxu0 }
 0x3c7   : > { %v7000_v21 = vpop.eup %6999  ;;  %v9175_v24 = vadd.f32 -1.0, %v4691_v42  ;;  %v4695_v53 = vrot.slane %v4694_v36, 2  ;;  %v5133_v58 = vsel %vm4369_vm7, %v6998_v63, 0.0  ;;  %v4213_v28 = vmul.f32 1.442695, %v4035_v30  ;;  %9841 = vst [vmem:[#allocation40_spill] sm:$0xff] %v9182_v7 }
 0x3c8   : > { %v7002_v54 = vpop.eup %7001  ;;  %v6222_v32 = vadd.f32 -1.0, %v5118_v62  ;;  %v5134_v0 = vrot.slane %v5133_v58, 4  ;;  %v5126_v44 = vsel %vm4369_vm7, %v7000_v21, 0.0  ;;  %v4339_v47 = vmul.f32 1.442695, %v4098_v15  ;;  %v9192_v15 = vpop.f32.mrb[142].mxu0 }
 0x3c9   : > { %v4702_v10 = vrot.slane %v4701_v38, 2  ;;  %v5127_v41 = vrot.slane %v5126_v44, 4  ;;  %v4713_v60 = vsel %vm4369_vm7, %v7002_v54, 0.0  ;;  %7009 = vpow2.f32 %v4215_v9  ;;  %9843 = vst [vmem:[#allocation16_spill] sm:$0xff] %v9192_v15  ;;  %v9195_v21 = vpop.f32.mrb[143].mxu0 }
 0x3ca   : > { %v9186_v42 = vsel %vm5526_vm9, %v6222_v32, %v9122_v57  ;;  %v4696_v33 = vadd.f32 %v4695_v53, %v4694_v36  ;;  %v5135_v17 = vadd.f32 %v5134_v0, %v5133_v58  ;;  %v4714_v40 = vrot.slane %v4713_v60, 4  ;;  %9844 = vst [vmem:[#allocation35_spill] sm:$0xff] %v9195_v21 }
 0x3cb   : > { %9842 = vst [vmem:[#allocation43_spill] sm:$0xff] %v9186_v42  ;;  %v9189_v11 = vadd.f32 -1.0, %v9129_v16  ;;  %v5128_v43 = vadd.f32 %v5127_v41, %v5126_v44  ;;  %7011 = vpow2.f32 %v4213_v28  ;;  %v4097_v30 = vsub.f32 0.0, %v8879_v31 }
 0x3cc   : > { %v5125_v63 = vadd.f32 %v5124_v23, %v9124_v1  ;;  %v5136_v62 = vrot.slane %v5135_v17, 2  ;;  %v4715_v9 = vadd.f32 %v4714_v40, %v4713_v60  ;;  %7013 = vpow2.f32 %v4339_v47  ;;  %v9200_v23 = vpop.f32.mrb[144].mxu0 }
 0x3cd   : > { %v7004_v57 = vpop.eup %7003  ;;  %v4703_v36 = vadd.f32 %v4702_v10, %v4701_v38  ;;  %v5129_v53 = vrot.slane %v5128_v43, 2  ;;  %v4337_v58 = vmul.f32 1.442695, %v4097_v30  ;;  %v4038_v16 = vsub.f32 0.0, %v8883_v29  ;;  %9845 = vst [vmem:[#allocation42_spill] sm:$0xff] %v9200_v23 }
 0x3ce   : > { %v4697_v54 = vrot.slane %v4696_v33, 1  ;;  %v5137_v32 = vadd.f32 %v5136_v62, %v5135_v17  ;;  %v4716_v28 = vrot.slane %v4715_v9, 2  ;;  %v4706_v31 = vsel %vm4369_vm7, %v7004_v57, 0.0 }
 0x3cf   : > { %v7006_v0 = vpop.eup %7005  ;;  %v5130_v44 = vadd.f32 %v5129_v53, %v5128_v43  ;;  %v4707_v41 = vrot.slane %v4706_v31, 4  ;;  %7015 = vpow2.f32 %v4337_v58  ;;  %v4037_v1 = vsub.f32 0.0, %v8891_v37 }
 0x3d0   : > { %v7008_v47 = vpop.eup %7007  ;;  %v5138_v60 = vrot.slane %v5137_v32, 1  ;;  %v4717_v38 = vadd.f32 %v4716_v28, %v4715_v9  ;;  %v5147_v10 = vsel %vm4369_vm7, %v7006_v0, 0.0  ;;  %v4219_v40 = vmul.f32 1.442695, %v4038_v16 }
 0x3d1   : > { %v9203_v29 = vadd.f32 -1.0, %v5125_v63  ;;  %v4708_v17 = vadd.f32 %v4707_v41, %v4706_v31  ;;  %v5148_v30 = vrot.slane %v5147_v10, 4  ;;  %v5140_v62 = vsel %vm4369_vm7, %v7008_v47, 0.0 }
 0x3d2   : > { %v4704_v57 = vrot.slane %v4703_v36, 1  ;;  %v4718_v43 = vrot.slane %v4717_v38, 1  ;;  %v5141_v53 = vrot.slane %v5140_v62, 4  ;;  %7017 = vpow2.f32 %v4219_v40 }
 0x3d3   : > { %9846 = vst [vmem:[#allocation41_spill] sm:$0xff] %v9203_v29  ;;  %v7010_v58 = vpop.eup %7009  ;;  %v4698_v37 = vadd.f32 %v4697_v54, %v4696_v33  ;;  %v4709_v22 = vrot.slane %v4708_v17, 2  ;;  %v5149_v2 = vadd.f32 %v5148_v30, %v5147_v10  ;;  %v4217_v42 = vmul.f32 1.442695, %v4037_v1 }
 0x3d4   : > { %v5139_v19 = vadd.f32 %v5138_v60, %v5137_v32  ;;  %v5131_v9 = vrot.slane %v5130_v44, 1  ;;  %v5142_v28 = vadd.f32 %v5141_v53, %v5140_v62  ;;  %v4727_v16 = vsel %vm4369_vm7, %v7010_v58, 0.0 }
 0x3d5   : > { %v7012_v63 = vpop.eup %7011  ;;  %v4719_v0 = vadd.f32 %v4718_v43, %v4717_v38  ;;  %v4710_v31 = vadd.f32 %v4709_v22, %v4708_v17  ;;  %v5150_v41 = vrot.slane %v5149_v2, 2  ;;  %v4728_v29 = vrot.slane %v4727_v16, 4 }
 0x3d6   : > { %v7014_v47 = vpop.eup %7013  ;;  %v9207_v23 = vadd.f32 %v4704_v57, %v4703_v36  ;;  %v5143_v21 = vrot.slane %v5142_v28, 2  ;;  %v4720_v40 = vsel %vm4369_vm7, %v7012_v63, 0.0  ;;  %7019 = vpow2.f32 %v4217_v42 }
 0x3d7   : > { %v9210_v33 = vadd.f32 -1.0, %v4698_v37  ;;  %v4711_v54 = vrot.slane %v4710_v31, 1  ;;  %v5151_v32 = vadd.f32 %v5150_v41, %v5149_v2  ;;  %v4721_v1 = vrot.slane %v4720_v40, 4 }
 0x3d8   : > { %v9212_v60 = vadd.f32 -1.0, %v5139_v19  ;;  %v5132_v10 = vadd.f32 %v5131_v9, %v5130_v44  ;;  %v5161_v38 = vsel %vm4369_vm7, %v7014_v47, 0.0  ;;  %v4100_v22 = vsub.f32 0.0, %v8899_v61 }
 0x3d9   : > { %v7016_v17 = vpop.eup %7015  ;;  %v6165_v30 = vadd.f32 -1.0, %v4719_v0  ;;  %v4712_v36 = vadd.f32 %v4711_v54, %v4710_v31  ;;  %v4729_v62 = vadd.f32 %v4728_v29, %v4727_v16  ;;  %v4722_v57 = vadd.f32 %v4721_v1, %v4720_v40 }
 0x3da   : > { %9847 = vst [vmem:[#allocation47_spill] sm:$0xff] %v9212_v60  ;;  %v5144_v43 = vadd.f32 %v5143_v21, %v5142_v28  ;;  %v5162_v53 = vrot.slane %v5161_v38, 4  ;;  %v5154_v42 = vsel %vm4369_vm7, %v7016_v17, 0.0  ;;  %v4343_v58 = vmul.f32 1.442695, %v4100_v22 }
 0x3db   : > { %v6164_v37 = vadd.f32 -1.0, %v4712_v36  ;;  %v5152_v2 = vrot.slane %v5151_v32, 1  ;;  %v4723_v63 = vrot.slane %v4722_v57, 2  ;;  %v4099_v19 = vsub.f32 0.0, %v8905_v46 }
 0x3dc   : > { %v7018_v44 = vpop.eup %7017  ;;  %v9218_v9 = vadd.f32 -1.0, %v5132_v10  ;;  %v5163_v41 = vadd.f32 %v5162_v53, %v5161_v38  ;;  %v5155_v61 = vrot.slane %v5154_v42, 4  ;;  %7021 = vpow2.f32 %v4343_v58 }
 0x3dd   : > { %v5573_v0 = vsel %vm5524_vm8, %v6165_v30, %v6164_v37  ;;  %v4730_v29 = vrot.slane %v4729_v62, 2  ;;  %v4724_v16 = vadd.f32 %v4723_v63, %v4722_v57  ;;  %v4741_v21 = vsel %vm4369_vm7, %v7018_v44, 0.0  ;;  %v9227_v37 = vpop.f32.mrb[145].mxu0 }
 0x3de   : > { %9848 = vst [vmem:[#allocation48_spill] sm:$0xff] %v9218_v9  ;;  %v5145_v28 = vrot.slane %v5144_v43, 1  ;;  %v5164_v31 = vrot.slane %v5163_v41, 2  ;;  %v5156_v47 = vadd.f32 %v5155_v61, %v5154_v42  ;;  %v4742_v40 = vrot.slane %v4741_v21, 4  ;;  %9850 = vst [vmem:[#allocation68_spill] sm:$0xff] %v9227_v37  ;;  %v9851_v61 = vld [vmem:[#allocation50_spill] sm:$0xff] }
 0x3df   : > { %v9222_v54 = vadd.f32 %v5152_v2, %v5151_v32  ;;  %v4725_v1 = vrot.slane %v4724_v16, 1  ;;  %v4341_v46 = vmul.f32 1.442695, %v4099_v19  ;;  %v4040_v10 = vsub.f32 0.0, %v8914_v3 }
 0x3e0   : > { %v7020_v22 = vpop.eup %7019  ;;  %v5165_v38 = vadd.f32 %v5164_v31, %v5163_v41  ;;  %v5157_v17 = vrot.slane %v5156_v47, 2  ;;  %v4743_v36 = vadd.f32 %v4742_v40, %v4741_v21  ;;  %v4039_v30 = vsub.f32 0.0, %v8919_v49 }
 0x3e1   : > { %9849 = vst [vmem:[#allocation67_spill] sm:$0xff] %v9222_v54  ;;  %v4731_v53 = vadd.f32 %v4730_v29, %v4729_v62  ;;  %v4726_v57 = vadd.f32 %v4725_v1, %v4724_v16  ;;  %v4734_v58 = vsel %vm4369_vm7, %v7020_v22, 0.0  ;;  %7023 = vpow2.f32 %v4341_v46  ;;  %v9853_v16 = vld [vmem:[#allocation52_spill] sm:$0xff] }
 0x3e2   : > { %v5166_v42 = vrot.slane %v5165_v38, 1  ;;  %v5158_v32 = vadd.f32 %v5157_v17, %v5156_v47  ;;  %v4744_v2 = vrot.slane %v4743_v36, 2  ;;  %v4735_v63 = vrot.slane %v4734_v58, 4 }
 0x3e3   : > { %v6166_v19 = vadd.f32 -1.0, %v4726_v57  ;;  %v4223_v44 = vmul.f32 1.442695, %v4040_v10  ;;  %v4221_v3 = vmul.f32 1.442695, %v4039_v30  ;;  %v4102_v41 = vsub.f32 0.0, %v9851_v61 }
 0x3e4   : > { %v5146_v31 = vadd.f32 %v5145_v28, %v5144_v43  ;;  %v5167_v21 = vadd.f32 %v5166_v42, %v5165_v38  ;;  %v5159_v40 = vrot.slane %v5158_v32, 1  ;;  %v4736_v49 = vadd.f32 %v4735_v63, %v4734_v58  ;;  %v9854_v43 = vld [vmem:[#allocation53_spill] sm:$0xff]  ;;  %v9857_v61 = vld [vmem:[#allocation54_spill] sm:$0xff] }
 0x3e5   : > { %v9231_v62 = vsel %vm5526_vm9, %v6166_v19, %v5573_v0  ;;  %7025 = vpow2.f32 %v4223_v44  ;;  %v4347_v29 = vmul.f32 1.442695, %v4102_v41  ;;  %v4101_v1 = vsub.f32 0.0, %v9853_v16  ;;  %v9856_v19 = vld [vmem:[#allocation11_spill] sm:$0xff]  ;;  %v9858_v16 = vld [vmem:[#allocation12_spill] sm:$0xff] }
 0x3e6   : > { %9852 = vst [vmem:[#allocation50_spill] sm:$0xff] %v9231_v62  ;;  %v7022_v46 = vpop.eup %7021  ;;  %v6229_v47 = vadd.f32 -1.0, %v5167_v21  ;;  %v5160_v22 = vadd.f32 %v5159_v40, %v5158_v32  ;;  %v4745_v17 = vadd.f32 %v4744_v2, %v4743_v36  ;;  %v4737_v57 = vrot.slane %v4736_v49, 2 }
 0x3e7   : > { %v5175_v10 = vsel %vm4369_vm7, %v7022_v46, 0.0  ;;  %7027 = vpow2.f32 %v4221_v3  ;;  %v4345_v30 = vmul.f32 1.442695, %v4101_v1  ;;  %v4042_v28 = vsub.f32 0.0, %v9854_v43 }
 0x3e8   : > { %v9236_v38 = vadd.f32 -1.0, %v5146_v31  ;;  %v4732_v58 = vrot.slane %v4731_v53, 1  ;;  %v6228_v0 = vadd.f32 -1.0, %v5160_v22  ;;  %v5176_v42 = vrot.slane %v5175_v10, 4 }
 0x3e9   : > { %7029 = vpow2.f32 %v4347_v29  ;;  %v4227_v63 = vmul.f32 1.442695, %v4042_v28  ;;  %v4041_v44 = vsub.f32 0.0, %v9856_v19  ;;  %v4104_v41 = vsub.f32 0.0, %v9857_v61  ;;  %v9859_v19 = vld [vmem:[#allocation13_spill] sm:$0xff] }
 0x3ea   : > { %9855 = vst [vmem:[#allocation52_spill] sm:$0xff] %v9236_v38  ;;  %v9241_v36 = vsel %vm5524_vm8, %v6229_v47, %v6228_v0  ;;  %v4746_v32 = vrot.slane %v4745_v17, 1  ;;  %v4738_v2 = vadd.f32 %v4737_v57, %v4736_v49  ;;  %v5177_v3 = vadd.f32 %v5176_v42, %v5175_v10  ;;  %v9860_v49 = vld [vmem:[#allocation14_spill] sm:$0xff] }
 0x3eb   : > { %v7024_v21 = vpop.eup %7023  ;;  %7031 = vpow2.f32 %v4345_v30  ;;  %v4225_v40 = vmul.f32 1.442695, %v4041_v44  ;;  %v4351_v31 = vmul.f32 1.442695, %v4104_v41  ;;  %v4103_v1 = vsub.f32 0.0, %v9858_v16  ;;  %v9861_v41 = vld [vmem:[#allocation55_spill] sm:$0xff] }
 0x3ec   : > { %v4733_v46 = vadd.f32 %v4732_v58, %v4731_v53  ;;  %v5178_v22 = vrot.slane %v5177_v3, 2  ;;  %v5168_v29 = vsel %vm4369_vm7, %v7024_v21, 0.0  ;;  %7033 = vpow2.f32 %v4227_v63  ;;  %v9862_v21 = vld [vmem:[#allocation57_spill] sm:$0xff] }
 0x3ed   : > { %v5169_v43 = vrot.slane %v5168_v29, 4  ;;  %7035 = vpow2.f32 %v4225_v40  ;;  %v4349_v28 = vmul.f32 1.442695, %v4103_v1  ;;  %v4044_v47 = vsub.f32 0.0, %v9859_v19 }
 0x3ee   : > { %v4739_v0 = vrot.slane %v4738_v2, 1  ;;  %v5179_v61 = vadd.f32 %v5178_v22, %v5177_v3  ;;  %7037 = vpow2.f32 %v4351_v31  ;;  %v4043_v57 = vsub.f32 0.0, %v9860_v49 }
 0x3ef   : > { %v7026_v10 = vpop.eup %7025  ;;  %v4747_v30 = vadd.f32 %v4746_v32, %v4745_v17  ;;  %v5170_v42 = vadd.f32 %v5169_v43, %v5168_v29  ;;  %v4231_v44 = vmul.f32 1.442695, %v4044_v47  ;;  %v4106_v53 = vsub.f32 0.0, %v9861_v41 }
 0x3f0   : > { %v4755_v58 = vsel %vm4369_vm7, %v7026_v10, 0.0  ;;  %7039 = vpow2.f32 %v4349_v28  ;;  %v4229_v63 = vmul.f32 1.442695, %v4043_v57  ;;  %v4105_v40 = vsub.f32 0.0, %v9862_v21 }
 0x3f1   : > { %v7028_v16 = vpop.eup %7027  ;;  %v9250_v1 = vadd.f32 -1.0, %v4733_v46  ;;  %v5171_v19 = vrot.slane %v5170_v42, 2  ;;  %v4756_v3 = vrot.slane %v4755_v58, 4  ;;  %7041 = vpow2.f32 %v4231_v44  ;;  %v9865_v46 = vld [vmem:[#allocation58_spill] sm:$0xff] }
 0x3f2   : > { %v4740_v31 = vadd.f32 %v4739_v0, %v4738_v2  ;;  %v5180_v22 = vrot.slane %v5179_v61, 1  ;;  %v4748_v17 = vsel %vm4369_vm7, %v7028_v16, 0.0  ;;  %v4355_v32 = vmul.f32 1.442695, %v4106_v53 }
 0x3f3   : > { %9863 = vst [vmem:[#allocation53_spill] sm:$0xff] %v9250_v1  ;;  %v7030_v29 = vpop.eup %7029  ;;  %v9253_v43 = vadd.f32 -1.0, %v4747_v30  ;;  %v5172_v47 = vadd.f32 %v5171_v19, %v5170_v42  ;;  %v4757_v49 = vadd.f32 %v4756_v3, %v4755_v58  ;;  %v4749_v28 = vrot.slane %v4748_v17, 4 }
 0x3f4   : > { %v5189_v57 = vsel %vm4369_vm7, %v7030_v29, 0.0  ;;  %7043 = vpow2.f32 %v4229_v63  ;;  %v4353_v10 = vmul.f32 1.442695, %v4105_v40  ;;  %v4046_v41 = vsub.f32 0.0, %v9865_v46 }
 0x3f5   : > { %9864 = vst [vmem:[#allocation11_spill] sm:$0xff] %v9253_v43  ;;  %v7032_v21 = vpop.eup %7031  ;;  %v5173_v38 = vrot.slane %v5172_v47, 1  ;;  %v4758_v44 = vrot.slane %v4757_v49, 2  ;;  %v4750_v2 = vadd.f32 %v4749_v28, %v4748_v17  ;;  %v5190_v0 = vrot.slane %v5189_v57, 4 }
 0x3f6   : > { %v7034_v60 = vpop.eup %7033  ;;  %v9257_v16 = vadd.f32 -1.0, %v4740_v31  ;;  %v5181_v53 = vadd.f32 %v5180_v22, %v5179_v61  ;;  %v5182_v30 = vsel %vm4369_vm7, %v7032_v21, 0.0  ;;  %7045 = vpow2.f32 %v4355_v32 }
 0x3f7   : > { %v7036_v42 = vpop.eup %7035  ;;  %v5174_v58 = vadd.f32 %v5173_v38, %v5172_v47  ;;  %v4751_v19 = vrot.slane %v4750_v2, 2  ;;  %v5191_v3 = vadd.f32 %v5190_v0, %v5189_v57  ;;  %v4235_v63 = vmul.f32 1.442695, %v4046_v41 }
 0x3f8   : > { %9866 = vst [vmem:[#allocation54_spill] sm:$0xff] %v9257_v16  ;;  %v7038_v40 = vpop.eup %7037  ;;  %v5183_v29 = vrot.slane %v5182_v30, 4  ;;  %v4769_v46 = vsel %vm4369_vm7, %v7034_v60, 0.0  ;;  %v4762_v9 = vsel %vm4369_vm7, %v7036_v42, 0.0  ;;  %7047 = vpow2.f32 %v4353_v10 }
 0x3f9   : > { %v6230_v17 = vadd.f32 -1.0, %v5174_v58  ;;  %v4759_v28 = vadd.f32 %v4758_v44, %v4757_v49  ;;  %v4752_v31 = vadd.f32 %v4751_v19, %v4750_v2  ;;  %v5192_v54 = vrot.slane %v5191_v3, 2 }
 0x3fa   : > { %v7040_v61 = vpop.eup %7039  ;;  %v5184_v22 = vadd.f32 %v5183_v29, %v5182_v30  ;;  %v4770_v21 = vrot.slane %v4769_v46, 4  ;;  %v4763_v32 = vrot.slane %v4762_v9, 4  ;;  %v5203_v38 = vsel %vm4369_vm7, %v7038_v40, 0.0 }
 0x3fb   : > { %v7042_v47 = vpop.eup %7041  ;;  %v9265_v57 = vsel %vm5526_vm9, %v6230_v17, %v9241_v36  ;;  %v4753_v41 = vrot.slane %v4752_v31, 1  ;;  %v5193_v60 = vadd.f32 %v5192_v54, %v5191_v3  ;;  %7049 = vpow2.f32 %v4235_v63  ;;  %v9869_v3 = vld [vmem:[#allocation59_spill] sm:$0xff] }
 0x3fc   : > { %9867 = vst [vmem:[#allocation12_spill] sm:$0xff] %v9265_v57  ;;  %v5185_v0 = vrot.slane %v5184_v22, 2  ;;  %v4771_v10 = vadd.f32 %v4770_v21, %v4769_v46  ;;  %v4764_v42 = vadd.f32 %v4763_v32, %v4762_v9  ;;  %v5204_v49 = vrot.slane %v5203_v38, 4 }
 0x3fd   : > { %v9267_v44 = vadd.f32 -1.0, %v5181_v53  ;;  %v5194_v2 = vrot.slane %v5193_v60, 1  ;;  %v5196_v30 = vsel %vm4369_vm7, %v7040_v61, 0.0  ;;  %v4783_v58 = vsel %vm4369_vm7, %v7042_v47, 0.0 }
 0x3fe   : > { %v7044_v19 = vpop.eup %7043  ;;  %v5186_v40 = vadd.f32 %v5185_v0, %v5184_v22  ;;  %v4772_v29 = vrot.slane %v4771_v10, 2  ;;  %v4765_v37 = vrot.slane %v4764_v42, 2  ;;  %v5205_v36 = vadd.f32 %v5204_v49, %v5203_v38 }
 0x3ff   : > { %9868 = vst [vmem:[#allocation13_spill] sm:$0xff] %v9267_v44  ;;  %v4760_v17 = vrot.slane %v4759_v28, 1  ;;  %v5197_v57 = vrot.slane %v5196_v30, 4  ;;  %v4784_v54 = vrot.slane %v4783_v58, 4  ;;  %v4045_v63 = vsub.f32 0.0, %v9869_v3 }
 0x400   : > { %v7046_v46 = vpop.eup %7045  ;;  %v4754_v9 = vadd.f32 %v4753_v41, %v4752_v31  ;;  %v5187_v21 = vrot.slane %v5186_v40, 1  ;;  %v4773_v53 = vadd.f32 %v4772_v29, %v4771_v10  ;;  %v4766_v32 = vadd.f32 %v4765_v37, %v4764_v42 }
 0x401   : > { %v5206_v44 = vrot.slane %v5205_v36, 2  ;;  %v5198_v43 = vadd.f32 %v5197_v57, %v5196_v30  ;;  %v4785_v61 = vadd.f32 %v4784_v54, %v4783_v58  ;;  %v4776_v47 = vsel %vm4369_vm7, %v7044_v19, 0.0 }
 0x402   : > { %v7048_v16 = vpop.eup %7047  ;;  %v5195_v22 = vadd.f32 %v5194_v2, %v5193_v60  ;;  %v4774_v0 = vrot.slane %v4773_v53, 1  ;;  %v4767_v1 = vrot.slane %v4766_v32, 1  ;;  %v4108_v38 = vsub.f32 0.0, %v9013_v51 }
 0x403   : > { %v5199_v49 = vrot.slane %v5198_v43, 2  ;;  %v4786_v62 = vrot.slane %v4785_v61, 2  ;;  %v4777_v15 = vrot.slane %v4776_v47, 4  ;;  %v5217_v3 = vsel %vm4369_vm7, %v7046_v46, 0.0 }
 0x404   : > { %v9275_v31 = vadd.f32 %v4760_v17, %v4759_v28  ;;  %v9277_v41 = vadd.f32 -1.0, %v4754_v9  ;;  %v4775_v37 = vadd.f32 %v4774_v0, %v4773_v53  ;;  %v4768_v57 = vadd.f32 %v4767_v1, %v4766_v32 }
 0x405   : > { %v7050_v10 = vpop.eup %7049  ;;  %v5188_v42 = vadd.f32 %v5187_v21, %v5186_v40  ;;  %v5207_v30 = vadd.f32 %v5206_v44, %v5205_v36  ;;  %v4778_v58 = vadd.f32 %v4777_v15, %v4776_v47  ;;  %v5218_v60 = vrot.slane %v5217_v3, 4 }
 0x406   : > { %v9279_v2 = vadd.f32 -1.0, %v5195_v22  ;;  %v6173_v19 = vadd.f32 -1.0, %v4775_v37  ;;  %v6172_v51 = vadd.f32 -1.0, %v4768_v57  ;;  %v5210_v29 = vsel %vm4369_vm7, %v7048_v16, 0.0 }
 0x407   : > { %v5200_v54 = vadd.f32 %v5199_v49, %v5198_v43  ;;  %v4787_v7 = vadd.f32 %v4786_v62, %v4785_v61  ;;  %v4779_v46 = vrot.slane %v4778_v58, 2  ;;  %v5219_v28 = vadd.f32 %v5218_v60, %v5217_v3 }
 0x408   : > { %v5580_v17 = vsel %vm5524_vm8, %v6173_v19, %v6172_v51  ;;  %v5211_v9 = vrot.slane %v5210_v29, 4  ;;  %v4797_v1 = vsel %vm4369_vm7, %v7050_v10, 0.0  ;;  %v4233_v53 = vmul.f32 1.442695, %v4045_v63 }
 0x409   : > { %v9284_v40 = vadd.f32 -1.0, %v5188_v42  ;;  %v5208_v15 = vrot.slane %v5207_v30, 1  ;;  %v4780_v44 = vadd.f32 %v4779_v46, %v4778_v58  ;;  %v5220_v36 = vrot.slane %v5219_v28, 2 }
 0x40a   : > { %v5212_v21 = vadd.f32 %v5211_v9, %v5210_v29  ;;  %v4798_v32 = vrot.slane %v4797_v1, 4  ;;  %7051 = vpow2.f32 %v4233_v53  ;;  %v4359_v47 = vmul.f32 1.442695, %v4108_v38 }
 0x40b   : > { %v5201_v16 = vrot.slane %v5200_v54, 1  ;;  %v4788_v43 = vrot.slane %v4787_v7, 1  ;;  %v4781_v62 = vrot.slane %v4780_v44, 1  ;;  %v5221_v61 = vadd.f32 %v5220_v36, %v5219_v28 }
 0x40c   : > { %v5213_v22 = vrot.slane %v5212_v21, 2  ;;  %v4799_v0 = vadd.f32 %v4798_v32, %v4797_v1  ;;  %7053 = vpow2.f32 %v4359_v47  ;;  %v4107_v49 = vsub.f32 0.0, %v9016_v8  ;;  %v9870_v32 = vld [vmem:[#allocation63_spill] sm:$0xff] }
 0x40d   : > { %v4782_v3 = vadd.f32 %v4781_v62, %v4780_v44  ;;  %v5222_v63 = vrot.slane %v5221_v61, 1  ;;  %v4048_v37 = vsub.f32 0.0, %v9026_v25  ;;  %v4047_v57 = vsub.f32 0.0, %v9029_v6 }
 0x40e   : > { %v5214_v10 = vadd.f32 %v5213_v22, %v5212_v21  ;;  %v4800_v42 = vrot.slane %v4799_v0, 2  ;;  %v4357_v58 = vmul.f32 1.442695, %v4107_v49  ;;  %v4110_v38 = vsub.f32 0.0, %v9033_v50  ;;  %v9872_v22 = vld [vmem:[#allocation17_spill] sm:$0xff] }
 0x40f   : > { %v6174_v60 = vadd.f32 -1.0, %v4782_v3  ;;  %v5223_v19 = vadd.f32 %v5222_v63, %v5221_v61  ;;  %v4239_v51 = vmul.f32 1.442695, %v4048_v37  ;;  %v4237_v29 = vmul.f32 1.442695, %v4047_v57  ;;  %v9873_v3 = vld [vmem:[#allocation64_spill] sm:$0xff] }
 0x410   : > { %v9290_v46 = vadd.f32 %v5208_v15, %v5207_v30  ;;  %v5215_v28 = vrot.slane %v5214_v10, 1  ;;  %7055 = vpow2.f32 %v4357_v58  ;;  %v4363_v8 = vmul.f32 1.442695, %v4110_v38 }
 0x411   : > { %v5202_v9 = vadd.f32 %v5201_v16, %v5200_v54  ;;  %v9293_v1 = vsel %vm5526_vm9, %v6174_v60, %v5580_v17  ;;  %7057 = vpow2.f32 %v4239_v51  ;;  %v4109_v25 = vsub.f32 0.0, %v9041_v14  ;;  %v9871_v16 = vld [vmem:[#allocation19_spill] sm:$0xff] }
 0x412   : > { %v6237_v6 = vadd.f32 -1.0, %v5223_v19  ;;  %v5216_v53 = vadd.f32 %v5215_v28, %v5214_v10  ;;  %7059 = vpow2.f32 %v4237_v29  ;;  %v4050_v50 = vsub.f32 0.0, %v9047_v45  ;;  %v9875_v29 = vld [vmem:[#allocation34_spill] sm:$0xff] }
 0x413   : > { %v9297_v44 = vadd.f32 %v4788_v43, %v4787_v7  ;;  %v9299_v36 = vadd.f32 %v4800_v42, %v4799_v0  ;;  %7061 = vpow2.f32 %v4363_v8  ;;  %v4361_v30 = vmul.f32 1.442695, %v4109_v25 }
 0x414   : > { %v7052_v15 = vpop.eup %7051  ;;  %v6236_v21 = vadd.f32 -1.0, %v5216_v53  ;;  %v4243_v54 = vmul.f32 1.442695, %v4050_v50  ;;  %v6155_v17 = vadd.f32 -1.0, %v9071_v26  ;;  %v5561_v14 = vsel %vm5528_vm10, %v9870_v32, %v9019_v4 }
 0x415   : > { %v4790_v47 = vsel %vm4369_vm7, %v7052_v15, 0.0  ;;  %7063 = vpow2.f32 %v4361_v30  ;;  %v5562_v45 = vsel %vm5530_vm11, %v9871_v16, %v5561_v14  ;;  %v5568_v7 = vsel %vm5528_vm10, %v9119_v20, %v9102_v39  ;;  %v9874_v20 = vld [vmem:[#allocation32_spill] sm:$0xff] }
 0x416   : > { %v7054_v43 = vpop.eup %7053  ;;  %v9312_v62 = vsel %vm5524_vm8, %v6237_v6, %v6236_v21  ;;  %v4791_v61 = vrot.slane %v4790_v47, 4  ;;  %7065 = vpow2.f32 %v4243_v54  ;;  %v6163_v26 = vadd.f32 -1.0, %v9207_v23 }
 0x417   : > { %v5231_v4 = vsel %vm4369_vm7, %v7054_v43, 0.0  ;;  %v5563_v0 = vsel %vm5532_vm12, %v9872_v22, %v5562_v45  ;;  %v5569_v49 = vsel %vm5530_vm11, %v9189_v11, %v5568_v7  ;;  %v4049_v63 = vsub.f32 0.0, %v9873_v3 }
 0x418   : > { %v4792_v37 = vadd.f32 %v4791_v61, %v4790_v47  ;;  %v5232_v39 = vrot.slane %v5231_v4, 4  ;;  %v5564_v57 = vsel %vm5534_vm13, %v9874_v20, %v5563_v0  ;;  %v5570_v10 = vsel %vm5532_vm12, %v9175_v24, %v5569_v49  ;;  %v9876_v49 = vld [vmem:[#allocation36_spill] sm:$0xff] }
 0x419   : > { %v5565_v23 = vsel %vm5536_vm14, %v6155_v17, %v5564_v57  ;;  %v5571_v42 = vsel %vm5534_vm13, %v9210_v33, %v5570_v10  ;;  %v4241_v58 = vmul.f32 1.442695, %v4049_v63  ;;  %v4112_v38 = vsub.f32 0.0, %v9091_v52 }
 0x41a   : > { %v7056_v60 = vpop.eup %7055  ;;  %v4793_v11 = vrot.slane %v4792_v37, 2  ;;  %v5233_v19 = vadd.f32 %v5232_v39, %v5231_v4  ;;  %v5572_v51 = vsel %vm5536_vm14, %v6163_v26, %v5571_v42  ;;  %v4111_v28 = vsub.f32 0.0, %v9875_v29 }
 0x41b   : > { %v7058_v8 = vpop.eup %7057  ;;  %v5224_v25 = vsel %vm4369_vm7, %v7056_v60, 0.0  ;;  %v6763_v6 = vpack.c.bf16 %v5572_v51, %v5565_v23  ;;  %7067 = vpow2.f32 %v4241_v58  ;;  %v4367_v24 = vmul.f32 1.442695, %v4112_v38 }
 0x41c   : > { %v7060_v53 = vpop.eup %7059  ;;  %v4794_v50 = vadd.f32 %v4793_v11, %v4792_v37  ;;  %v5234_v30 = vrot.slane %v5233_v19, 2  ;;  %v5225_v33 = vrot.slane %v5224_v25, 4  ;;  %v4811_v15 = vsel %vm4369_vm7, %v7058_v8, 0.0 }
 0x41d   : > { %v7062_v52 = vpop.eup %7061  ;;  %v4812_v21 = vrot.slane %v4811_v15, 4  ;;  %v4804_v54 = vsel %vm4369_vm7, %v7060_v53, 0.0  ;;  %6765 = vmatpush3.bf16.xpose.msk.msra.mxu1 %vm8945_vm15, %v6763_v6  ;;  %7069 = vpow2.f32 %v4367_v24  ;;  %v4365_v17 = vmul.f32 1.442695, %v4111_v28 }
 0x41e   : > { %v9336_v32 = vadd.f32 -1.0, %v5202_v9  ;;  %v4802_v14 = vrot.slane %v9299_v36, 1  ;;  %v5226_v47 = vadd.f32 %v5225_v33, %v5224_v25  ;;  %v4805_v16 = vrot.slane %v4804_v54, 4  ;;  %6766 = vmatprep.subr.bf16.mxu1 %v9794_v13 }
 0x41f   : > { %v7064_v45 = vpop.eup %7063  ;;  %v4795_v7 = vrot.slane %v4794_v50, 1  ;;  %v4813_v43 = vadd.f32 %v4812_v21, %v4811_v15  ;;  %v5245_v61 = vsel %vm4369_vm7, %v7062_v52, 0.0  ;;  %7071 = vpow2.f32 %v4365_v17 }
 0x420   : > { %v7066_v26 = vpop.eup %7065  ;;  %v5235_v4 = vadd.f32 %v5234_v30, %v5233_v19  ;;  %v5227_v22 = vrot.slane %v5226_v47, 2  ;;  %v4806_v0 = vadd.f32 %v4805_v16, %v4804_v54  ;;  %v4052_v3 = vsub.f32 0.0, %v9876_v49 }
 0x421   : > { %v4814_v9 = vrot.slane %v4813_v43, 2  ;;  %v5246_v63 = vrot.slane %v5245_v61, 4  ;;  %v5238_v37 = vsel %vm4369_vm7, %v7064_v45, 0.0  ;;  %v4825_v39 = vsel %vm4369_vm7, %v7066_v26, 0.0 }
 0x422   : > { %v9345_v20 = vadd.f32 -1.0, %v9297_v44  ;;  %v4803_v57 = vadd.f32 %v4802_v14, %v9299_v36  ;;  %v5228_v10 = vadd.f32 %v5227_v22, %v5226_v47  ;;  %v4807_v23 = vrot.slane %v4806_v0, 2 }
 0x423   : > { %v4796_v42 = vadd.f32 %v4795_v7, %v4794_v50  ;;  %v5247_v58 = vadd.f32 %v5246_v63, %v5245_v61  ;;  %v5239_v38 = vrot.slane %v5238_v37, 4  ;;  %v4826_v60 = vrot.slane %v4825_v39, 4 }
 0x424   : > { %v5236_v11 = vrot.slane %v5235_v4, 1  ;;  %v5229_v19 = vrot.slane %v5228_v10, 1  ;;  %v4808_v51 = vadd.f32 %v4807_v23, %v4806_v0  ;;  %v4247_v29 = vmul.f32 1.442695, %v4052_v3 }
 0x425   : > { %v7068_v28 = vpop.eup %7067  ;;  %v4815_v8 = vadd.f32 %v4814_v9, %v4813_v43  ;;  %v5248_v25 = vrot.slane %v5247_v58, 2  ;;  %v5240_v6 = vadd.f32 %v5239_v38, %v5238_v37  ;;  %v4827_v24 = vadd.f32 %v4826_v60, %v4825_v39 }
 0x426   : > { %v5230_v53 = vadd.f32 %v5229_v19, %v5228_v10  ;;  %v4809_v44 = vrot.slane %v4808_v51, 1  ;;  %v4818_v30 = vsel %vm4369_vm7, %v7068_v28, 0.0  ;;  %7073 = vpow2.f32 %v4247_v29 }
 0x427   : > { %v7070_v36 = vpop.eup %7069  ;;  %v9349_v33 = vadd.f32 -1.0, %v4803_v57  ;;  %v5249_v50 = vadd.f32 %v5248_v25, %v5247_v58  ;;  %v5241_v15 = vrot.slane %v5240_v6, 2  ;;  %v4828_v52 = vrot.slane %v4827_v24, 2  ;;  %v9877_v57 = vld [vmem:[#allocation65_spill] sm:$0xff] }
 0x428   : > { %v9351_v21 = vadd.f32 -1.0, %v4796_v42  ;;  %v6238_v54 = vadd.f32 -1.0, %v5230_v53  ;;  %v4819_v17 = vrot.slane %v4818_v30, 4  ;;  %v5259_v14 = vsel %vm4369_vm7, %v7070_v36, 0.0 }
 0x429   : > { %v7072_v47 = vpop.eup %7071  ;;  %v5237_v16 = vadd.f32 %v5236_v11, %v5235_v4  ;;  %v4816_v45 = vrot.slane %v4815_v8, 1  ;;  %v4829_v7 = vadd.f32 %v4828_v52, %v4827_v24  ;;  %v5260_v43 = vrot.slane %v5259_v14, 4 }
 0x42a   : > { %v9356_v61 = vsel %vm5526_vm9, %v6238_v54, %v9312_v62  ;;  %v4810_v26 = vadd.f32 %v4809_v44, %v4808_v51  ;;  %v4820_v22 = vadd.f32 %v4819_v17, %v4818_v30  ;;  %v5252_v0 = vsel %vm4369_vm7, %v7072_v47, 0.0 }
 0x42b   : > { %v5250_v49 = vrot.slane %v5249_v50, 1  ;;  %v5242_v3 = vadd.f32 %v5241_v15, %v5240_v6  ;;  %v4830_v9 = vrot.slane %v4829_v7, 1  ;;  %v5261_v63 = vadd.f32 %v5260_v43, %v5259_v14 }
 0x42c   : > { %v4821_v37 = vrot.slane %v4820_v22, 2  ;;  %v5253_v39 = vrot.slane %v5252_v0, 4  ;;  %v4051_v10 = vsub.f32 0.0, %v9877_v57  ;;  %v4054_v4 = vsub.f32 0.0, %v9104_v18  ;;  %v9879_v57 = vld [vmem:[#allocation16_spill] sm:$0xff] }
 0x42d   : > { %v9361_v23 = vadd.f32 -1.0, %v5237_v16  ;;  %v9363_v42 = vadd.f32 %v4816_v45, %v4815_v8  ;;  %v4831_v62 = vadd.f32 %v4830_v9, %v4829_v7  ;;  %v5262_v58 = vrot.slane %v5261_v63, 2 }
 0x42e   : > { %v4822_v38 = vadd.f32 %v4821_v37, %v4820_v22  ;;  %v5254_v60 = vadd.f32 %v5253_v39, %v5252_v0  ;;  %v4245_v11 = vmul.f32 1.442695, %v4051_v10  ;;  %v4251_v19 = vmul.f32 1.442695, %v4054_v4 }
 0x42f   : > { %v9365_v51 = vadd.f32 -1.0, %v4810_v26  ;;  %v5251_v29 = vadd.f32 %v5250_v49, %v5249_v50  ;;  %v5243_v28 = vrot.slane %v5242_v3, 1  ;;  %v4053_v25 = vsub.f32 0.0, %v9107_v5 }
 0x430   : > { %v7074_v6 = vpop.eup %7073  ;;  %v4823_v24 = vrot.slane %v4822_v38, 1  ;;  %v5255_v53 = vrot.slane %v5254_v60, 2  ;;  %7075 = vpow2.f32 %v4245_v11  ;;  %v4056_v18 = vsub.f32 0.0, %v9127_v27 }
 0x431   : > { %v6181_v8 = vadd.f32 -1.0, %v4831_v62  ;;  %v4839_v44 = vsel %vm4369_vm7, %v7074_v6, 0.0  ;;  %7077 = vpow2.f32 %v4251_v19  ;;  %v4249_v30 = vmul.f32 1.442695, %v4053_v25 }
 0x432   : > { %v4824_v36 = vadd.f32 %v4823_v24, %v4822_v38  ;;  %v5263_v15 = vadd.f32 %v5262_v58, %v5261_v63  ;;  %v4840_v52 = vrot.slane %v4839_v44, 4  ;;  %v4255_v54 = vmul.f32 1.442695, %v4056_v18  ;;  %v9880_v58 = vld [vmem:[#allocation35_spill] sm:$0xff]  ;;  %v9881_v24 = vld [vmem:[#allocation42_spill] sm:$0xff] }
 0x433   : > { %v5244_v17 = vadd.f32 %v5243_v28, %v5242_v3  ;;  %7079 = vpow2.f32 %v4249_v30  ;;  %v4055_v50 = vsub.f32 0.0, %v9131_v48  ;;  %v4058_v5 = vsub.f32 0.0, %v9149_v56 }
 0x434   : > { %v6180_v14 = vadd.f32 -1.0, %v4824_v36  ;;  %v5256_v47 = vadd.f32 %v5255_v53, %v5254_v60  ;;  %v4841_v16 = vadd.f32 %v4840_v52, %v4839_v44  ;;  %7081 = vpow2.f32 %v4255_v54 }
 0x435   : > { %v4253_v27 = vmul.f32 1.442695, %v4055_v50  ;;  %v4259_v45 = vmul.f32 1.442695, %v4058_v5  ;;  %v4057_v7 = vsub.f32 0.0, %v9156_v34  ;;  %v4060_v43 = vsub.f32 0.0, %v9164_v12 }
 0x436   : > { %v9375_v26 = vsel %vm5524_vm8, %v6181_v8, %v6180_v14  ;;  %v5264_v22 = vrot.slane %v5263_v15, 1  ;;  %v4842_v0 = vrot.slane %v4841_v16, 2  ;;  %v4059_v49 = vsub.f32 0.0, %v9167_v35  ;;  %v9878_v12 = vld [vmem:[#allocation40_spill] sm:$0xff] }
 0x437   : > { %7083 = vpow2.f32 %v4253_v27  ;;  %v4257_v48 = vmul.f32 1.442695, %v4057_v7  ;;  %v4263_v56 = vmul.f32 1.442695, %v4060_v43  ;;  %v4062_v3 = vsub.f32 0.0, %v9179_v59  ;;  %v9882_v43 = vld [vmem:[#allocation50_spill] sm:$0xff] }
 0x438   : > { %v9379_v9 = vadd.f32 -1.0, %v5251_v29  ;;  %v5257_v63 = vrot.slane %v5256_v47, 1  ;;  %v4843_v37 = vadd.f32 %v4842_v0, %v4841_v16  ;;  %7085 = vpow2.f32 %v4259_v45 }
 0x439   : > { %7087 = vpow2.f32 %v4257_v48  ;;  %v4261_v34 = vmul.f32 1.442695, %v4059_v49  ;;  %v4061_v39 = vsub.f32 0.0, %v9878_v12  ;;  %v4064_v10 = vsub.f32 0.0, %v9879_v57 }
 0x43a   : > { %v7076_v4 = vpop.eup %7075  ;;  %v4844_v62 = vrot.slane %v4843_v37, 1  ;;  %7089 = vpow2.f32 %v4263_v56  ;;  %v4267_v35 = vmul.f32 1.442695, %v4062_v3  ;;  %v4063_v38 = vsub.f32 0.0, %v9880_v58 }
 0x43b   : > { %v7078_v60 = vpop.eup %7077  ;;  %v9384_v11 = vadd.f32 -1.0, %v5244_v17  ;;  %v9386_v59 = vadd.f32 %v5264_v22, %v5263_v15  ;;  %v4832_v19 = vsel %vm4369_vm7, %v7076_v4, 0.0  ;;  %v4265_v29 = vmul.f32 1.442695, %v4061_v39  ;;  %v9883_v22 = vld [vmem:[#allocation53_spill] sm:$0xff] }
 0x43c   : > { %v4833_v28 = vrot.slane %v4832_v19, 4  ;;  %v4853_v25 = vsel %vm4369_vm7, %v7078_v60, 0.0  ;;  %v4271_v6 = vmul.f32 1.442695, %v4064_v10  ;;  %v4066_v53 = vsub.f32 0.0, %v9881_v24 }
 0x43d   : > { %v7080_v18 = vpop.eup %7079  ;;  %v5258_v8 = vadd.f32 %v5257_v63, %v5256_v47  ;;  %v4854_v44 = vrot.slane %v4853_v25, 4  ;;  %7091 = vpow2.f32 %v4261_v34  ;;  %v4269_v30 = vmul.f32 1.442695, %v4063_v38  ;;  %v9884_v63 = vld [vmem:[#allocation54_spill] sm:$0xff] }
 0x43e   : > { %v7082_v36 = vpop.eup %7081  ;;  %v4845_v52 = vadd.f32 %v4844_v62, %v4843_v37  ;;  %v4834_v54 = vadd.f32 %v4833_v28, %v4832_v19  ;;  %v4846_v15 = vsel %vm4369_vm7, %v7080_v18, 0.0  ;;  %7093 = vpow2.f32 %v4267_v35 }
 0x43f   : > { %v4855_v17 = vadd.f32 %v4854_v44, %v4853_v25  ;;  %v4847_v50 = vrot.slane %v4846_v15, 4  ;;  %v4867_v5 = vsel %vm4369_vm7, %v7082_v36, 0.0  ;;  %7095 = vpow2.f32 %v4265_v29 }
 0x440   : > { %v4835_v14 = vrot.slane %v4834_v54, 2  ;;  %v4868_v16 = vrot.slane %v4867_v5, 4  ;;  %7097 = vpow2.f32 %v4271_v6  ;;  %v4275_v27 = vmul.f32 1.442695, %v4066_v53 }
 0x441   : > { %v7084_v45 = vpop.eup %7083  ;;  %v4856_v47 = vrot.slane %v4855_v17, 2  ;;  %v4848_v7 = vadd.f32 %v4847_v50, %v4846_v15  ;;  %7099 = vpow2.f32 %v4269_v30  ;;  %v5575_v0 = vsel %vm5528_vm10, %v9883_v22, %v9882_v43 }
 0x442   : > { %v7086_v49 = vpop.eup %7085  ;;  %v4836_v48 = vadd.f32 %v4835_v14, %v4834_v54  ;;  %v4869_v56 = vadd.f32 %v4868_v16, %v4867_v5  ;;  %v4860_v3 = vsel %vm4369_vm7, %v7084_v45, 0.0  ;;  %v9399_v37 = vsel %vm5530_vm11, %v9884_v63, %v5575_v0 }
 0x443   : > { %v7088_v34 = vpop.eup %7087  ;;  %v4857_v12 = vadd.f32 %v4856_v47, %v4855_v17  ;;  %v4849_v39 = vrot.slane %v4848_v7, 2  ;;  %v4861_v57 = vrot.slane %v4860_v3, 4  ;;  %v4881_v10 = vsel %vm4369_vm7, %v7086_v49, 0.0 }
 0x444   : > { %v7090_v4 = vpop.eup %7089  ;;  %v4837_v62 = vrot.slane %v4836_v48, 1  ;;  %v4870_v35 = vrot.slane %v4869_v56, 2  ;;  %v4882_v58 = vrot.slane %v4881_v10, 4  ;;  %v4874_v38 = vsel %vm4369_vm7, %v7088_v34, 0.0 }
 0x445   : > { %v4850_v60 = vadd.f32 %v4849_v39, %v4848_v7  ;;  %v4862_v19 = vadd.f32 %v4861_v57, %v4860_v3  ;;  %v4875_v29 = vrot.slane %v4874_v38, 4  ;;  %7101 = vpow2.f32 %v4275_v27 }
 0x446   : > { %v4838_v28 = vadd.f32 %v4837_v62, %v4836_v48  ;;  %v4858_v25 = vrot.slane %v4857_v12, 1  ;;  %v4883_v6 = vadd.f32 %v4882_v58, %v4881_v10  ;;  %v4895_v24 = vsel %vm4369_vm7, %v7090_v4, 0.0 }
 0x447   : > { %v7092_v53 = vpop.eup %7091  ;;  %v9404_v18 = vadd.f32 -1.0, %v5258_v8  ;;  %v4871_v44 = vadd.f32 %v4870_v35, %v4869_v56  ;;  %v4863_v30 = vrot.slane %v4862_v19, 2  ;;  %v4876_v36 = vadd.f32 %v4875_v29, %v4874_v38 }
 0x448   : > { %v7094_v54 = vpop.eup %7093  ;;  %v9406_v15 = vadd.f32 -1.0, %v4845_v52  ;;  %v6182_v17 = vadd.f32 -1.0, %v4838_v28  ;;  %v4884_v50 = vrot.slane %v4883_v6, 2  ;;  %v4896_v5 = vrot.slane %v4895_v24, 4 }
 0x449   : > { %v7096_v14 = vpop.eup %7095  ;;  %v4851_v16 = vrot.slane %v4850_v60, 1  ;;  %v4877_v27 = vrot.slane %v4876_v36, 2  ;;  %v6171_v45 = vadd.f32 -1.0, %v9275_v31  ;;  %v9410_v47 = vadd.f32 -1.0, %v9363_v42 }
 0x44a   : > { %v7098_v7 = vpop.eup %7097  ;;  %v9414_v8 = vsel %vm5526_vm9, %v6182_v17, %v9375_v26  ;;  %v9416_v43 = vadd.f32 %v4858_v25, %v4857_v12  ;;  %v4885_v52 = vadd.f32 %v4884_v50, %v4883_v6  ;;  %v4897_v22 = vadd.f32 %v4896_v5, %v4895_v24 }
 0x44b   : > { %v7100_v0 = vpop.eup %7099  ;;  %v4872_v49 = vrot.slane %v4871_v44, 1  ;;  %v4864_v48 = vadd.f32 %v4863_v30, %v4862_v19  ;;  %v4878_v56 = vadd.f32 %v4877_v27, %v4876_v36  ;;  %v4888_v3 = vsel %vm4369_vm7, %v7092_v53, 0.0 }
 0x44c   : > { %v4886_v63 = vrot.slane %v4885_v52, 1  ;;  %v4898_v31 = vrot.slane %v4897_v22, 2  ;;  %v4889_v34 = vrot.slane %v4888_v3, 4  ;;  %v4909_v42 = vsel %vm4369_vm7, %v7094_v54, 0.0 }
 0x44d   : > { %v4852_v39 = vadd.f32 %v4851_v16, %v4850_v60  ;;  %v4879_v57 = vrot.slane %v4878_v56, 1  ;;  %v4910_v10 = vrot.slane %v4909_v42, 4  ;;  %v4902_v26 = vsel %vm4369_vm7, %v7096_v14, 0.0 }
 0x44e   : > { %v4887_v12 = vadd.f32 %v4886_v63, %v4885_v52  ;;  %v4899_v4 = vadd.f32 %v4898_v31, %v4897_v22  ;;  %v4890_v62 = vadd.f32 %v4889_v34, %v4888_v3  ;;  %v4903_v35 = vrot.slane %v4902_v26, 4  ;;  %v9885_v34 = vld [vmem:[#allocation11_spill] sm:$0xff] }
 0x44f   : > { %v7102_v58 = vpop.eup %7101  ;;  %v9421_v38 = vadd.f32 %v4872_v49, %v4871_v44  ;;  %v4880_v19 = vadd.f32 %v4879_v57, %v4878_v56  ;;  %v4911_v29 = vadd.f32 %v4910_v10, %v4909_v42  ;;  %v4923_v28 = vsel %vm4369_vm7, %v7098_v7, 0.0 }
 0x450   : > { %v4865_v25 = vrot.slane %v4864_v48, 1  ;;  %v6189_v6 = vadd.f32 -1.0, %v4887_v12  ;;  %v4891_v24 = vrot.slane %v4890_v62, 2  ;;  %v4904_v53 = vadd.f32 %v4903_v35, %v4902_v26 }
 0x451   : > { %v6188_v60 = vadd.f32 -1.0, %v4880_v19  ;;  %v4912_v30 = vrot.slane %v4911_v29, 2  ;;  %v4924_v36 = vrot.slane %v4923_v28, 4  ;;  %v4916_v54 = vsel %vm4369_vm7, %v7100_v0, 0.0 }
 0x452   : > { %v4900_v17 = vrot.slane %v4899_v4, 1  ;;  %v4892_v50 = vadd.f32 %v4891_v24, %v4890_v62  ;;  %v4905_v5 = vrot.slane %v4904_v53, 2  ;;  %v4917_v14 = vrot.slane %v4916_v54, 4 }
 0x453   : > { %v5594_v44 = vsel %vm5524_vm8, %v6189_v6, %v6188_v60  ;;  %v4913_v16 = vadd.f32 %v4912_v30, %v4911_v29  ;;  %v4925_v27 = vadd.f32 %v4924_v36, %v4923_v28  ;;  %v4937_v52 = vsel %vm4369_vm7, %v7102_v58, 0.0 }
 0x454   : > { %v4866_v7 = vadd.f32 %v4865_v25, %v4864_v48  ;;  %v4893_v22 = vrot.slane %v4892_v50, 1  ;;  %v4906_v49 = vadd.f32 %v4905_v5, %v4904_v53  ;;  %v4918_v56 = vadd.f32 %v4917_v14, %v4916_v54 }
 0x455   : > { %v4914_v3 = vrot.slane %v4913_v16, 1  ;;  %v4926_v63 = vrot.slane %v4925_v27, 2  ;;  %v4938_v31 = vrot.slane %v4937_v52, 4  ;;  %v5577_v0 = vsel %vm5532_vm12, %v9885_v34, %v9399_v37  ;;  %v9890_v34 = vld [vmem:[#allocation61_spill] sm:$0xff] }
 0x456   : > { %v4894_v42 = vadd.f32 %v4893_v22, %v4892_v50  ;;  %v4907_v57 = vrot.slane %v4906_v49, 1  ;;  %v4919_v10 = vrot.slane %v4918_v56, 2  ;;  %v5578_v26 = vsel %vm5534_vm13, %v9277_v41, %v5577_v0  ;;  %v9887_v22 = vld [vmem:[#allocation51_spill] sm:$0xff] }
 0x457   : > { %v6184_v12 = vadd.f32 -1.0, %v4852_v39  ;;  %v4901_v62 = vadd.f32 %v4900_v17, %v4899_v4  ;;  %v4927_v35 = vadd.f32 %v4926_v63, %v4925_v27  ;;  %v5579_v48 = vsel %vm5536_vm14, %v6171_v45, %v5578_v26  ;;  %v9892_v26 = vld [vmem:[#allocation66_spill] sm:$0xff] }
 0x458   : > { %v6190_v58 = vadd.f32 -1.0, %v4894_v42  ;;  %v4908_v19 = vadd.f32 %v4907_v57, %v4906_v49  ;;  %v4920_v29 = vadd.f32 %v4919_v10, %v4918_v56  ;;  %v5582_v28 = vsel %vm5528_vm10, %v9345_v20, %v9293_v1  ;;  %v9886_v1 = vld [vmem:[#allocation68_spill] sm:$0xff] }
 0x459   : > { %v6186_v25 = vadd.f32 -1.0, %v4866_v7  ;;  %v4915_v37 = vadd.f32 %v4914_v3, %v4913_v16  ;;  %v4928_v6 = vrot.slane %v4927_v35, 1  ;;  %v5583_v24 = vsel %vm5530_vm11, %v9351_v21, %v5582_v28  ;;  %v9888_v49 = vld [vmem:[#allocation56_spill] sm:$0xff]  ;;  %v9896_v28 = vld [vmem:[#allocation30_spill] sm:$0xff] }
 0x45a   : > { %v5595_v41 = vsel %vm5526_vm9, %v6190_v58, %v5594_v44  ;;  %v4921_v39 = vrot.slane %v4920_v29, 1  ;;  %v9439_v4 = vadd.f32 %v4938_v31, %v4937_v52  ;;  %v5584_v45 = vsel %vm5532_vm12, %v9349_v33, %v5583_v24  ;;  %v9891_v57 = vld [vmem:[#allocation60_spill] sm:$0xff]  ;;  %v9894_v58 = vld [vmem:[#allocation62_spill] sm:$0xff] }
 0x45b   : > { %v6191_v53 = vadd.f32 -1.0, %v4901_v62  ;;  %v6192_v60 = vadd.f32 -1.0, %v4908_v19  ;;  %v5585_v30 = vsel %vm5534_vm13, %v9365_v51, %v5584_v45  ;;  %v4065_v20 = vsub.f32 0.0, %v9886_v1  ;;  %v9893_v62 = vld [vmem:[#allocation67_spill] sm:$0xff]  ;;  %v9901_v1 = vld [vmem:[#allocation33_spill] sm:$0xff] }
 0x45c   : > { %v4929_v36 = vadd.f32 %v4928_v6, %v4927_v35  ;;  %v4922_v54 = vadd.f32 %v4921_v39, %v4920_v29  ;;  %v5586_v21 = vsel %vm5536_vm14, %v9410_v47, %v5585_v30  ;;  %v5589_v17 = vsel %vm5528_vm10, %v9406_v15, %v9414_v8  ;;  %v9895_v29 = vld [vmem:[#allocation18_spill] sm:$0xff]  ;;  %v9898_v6 = vld [vmem:[#allocation41_spill] sm:$0xff] }
 0x45d   : > { %v6185_v50 = vadd.f32 -1.0, %v9416_v43  ;;  %v6193_v5 = vadd.f32 -1.0, %v4915_v37  ;;  %v6767_v33 = vpack.c.bf16 %v5586_v21, %v5579_v48  ;;  %v4273_v14 = vmul.f32 1.442695, %v4065_v20  ;;  %v9897_v37 = vld [vmem:[#allocation43_spill] sm:$0xff]  ;;  %v9899_v39 = vld [vmem:[#allocation38_spill] sm:$0xff] }
 0x45e   : > { %v6194_v44 = vadd.f32 -1.0, %v4922_v54  ;;  %v4940_v16 = vrot.slane %v9439_v4, 2  ;;  %v5590_v51 = vsel %vm5530_vm11, %v6184_v12, %v5589_v17  ;;  %v5596_v27 = vsel %vm5528_vm10, %v6191_v53, %v5595_v41  ;;  %v9900_v53 = vld [vmem:[#allocation48_spill] sm:$0xff] }
 0x45f   : > { %6769 = vmatpush3.bf16.xpose.msk.msra.mxu1 %vm8945_vm15, %v6767_v33  ;;  %7103 = vpow2.f32 %v4273_v14  ;;  %v6187_v47 = vadd.f32 -1.0, %v9421_v38  ;;  %v5591_v15 = vsel %vm5532_vm12, %v6185_v50, %v5590_v51  ;;  %v5597_v8 = vsel %vm5530_vm11, %v6192_v60, %v5596_v27  ;;  %v9889_v38 = vld [vmem:[#allocation15_spill] sm:$0xff]  ;;  %v9903_v17 = vld [vmem:[#allocation12_spill] sm:$0xff]  ;;  %v9904_v50 = vld [vmem:[#allocation13_spill] sm:$0xff] }
 0x460   : > { %6770 = vmatprep.subr.bf16.mxu1 %v9794_v13  ;;  %v6195_v43 = vadd.f32 -1.0, %v4929_v36  ;;  %v5592_v52 = vsel %vm5534_vm13, %v6186_v25, %v5591_v15  ;;  %v5598_v7 = vsel %vm5532_vm12, %v6193_v5, %v5597_v8  ;;  %v5610_v56 = vsel %vm5528_vm10, %v9888_v49, %v9887_v22  ;;  %v9902_v36 = vld [vmem:[#allocation47_spill] sm:$0xff] }
 0x461   : > { %v5593_v3 = vsel %vm5536_vm14, %v6187_v47, %v5592_v52  ;;  %v5599_v63 = vsel %vm5534_vm13, %v6194_v44, %v5598_v7  ;;  %v6211_v31 = vadd.f32 -1.0, %v9889_v38  ;;  %v5611_v0 = vsel %vm5530_vm11, %v9890_v34, %v5610_v56  ;;  %v9905_v33 = vld [vmem:[#allocation39_spill] sm:$0xff]  ;;  %v9906_v44 = vld [vmem:[#allocation52_spill] sm:$0xff]  ;;  %v9907_v52 = vld [vmem:[#allocation46_spill] sm:$0xff] }
 0x462   : > { %v5600_v42 = vsel %vm5536_vm14, %v6195_v43, %v5599_v63  ;;  %v5612_v10 = vsel %vm5532_vm12, %v9891_v57, %v5611_v0  ;;  %v6219_v12 = vadd.f32 -1.0, %v9892_v26  ;;  %v6227_v35 = vadd.f32 -1.0, %v9893_v62  ;;  %v9911_v38 = vld [vmem:[#allocation44_spill] sm:$0xff]  ;;  %v9914_v57 = vld [vmem:[#allocation49_spill] sm:$0xff] }
 0x463   : > { %v6771_v48 = vpack.c.bf16 %v5600_v42, %v5593_v3  ;;  %v5613_v19 = vsel %vm5534_vm13, %v9894_v58, %v5612_v10  ;;  %v5617_v25 = vsel %vm5528_vm10, %v9896_v28, %v9895_v29  ;;  %v5624_v24 = vsel %vm5528_vm10, %v9898_v6, %v9897_v37  ;;  %v9910_v3 = vld [vmem:[#allocation45_spill] sm:$0xff] }
 0x464   : > { %v9485_v41 = vsel %vm5536_vm14, %v6211_v31, %v5613_v19  ;;  %v5618_v45 = vsel %vm5530_vm11, %v9899_v39, %v5617_v25  ;;  %v5625_v60 = vsel %vm5530_vm11, %v9900_v53, %v5624_v24  ;;  %v6235_v30 = vadd.f32 -1.0, %v9290_v46  ;;  %v9912_v42 = vld [vmem:[#allocation37_spill] sm:$0xff] }
 0x465   : > { %v5619_v20 = vsel %vm5532_vm12, %v9901_v1, %v5618_v45  ;;  %v5626_v54 = vsel %vm5532_vm12, %v9902_v36, %v5625_v60  ;;  %v6243_v21 = vadd.f32 -1.0, %v9386_v59  ;;  %v5631_v5 = vsel %vm5528_vm10, %v9904_v50, %v9903_v17 }
 0x466   : > { %v5620_v14 = vsel %vm5534_vm13, %v9905_v33, %v5619_v20  ;;  %v5627_v51 = vsel %vm5534_vm13, %v9906_v44, %v5626_v54  ;;  %v5632_v46 = vsel %vm5530_vm11, %v9284_v40, %v5631_v5  ;;  %v5638_v27 = vsel %vm5528_vm10, %v9361_v23, %v9356_v61 }
 0x467   : > { %6773 = vmatpush3.bf16.xpose.msk.msra.mxu1 %vm8945_vm15, %v6771_v48  ;;  %v9512_v59 = vsel %vm5536_vm14, %v6219_v12, %v5620_v14  ;;  %v9515_v47 = vsel %vm5536_vm14, %v6227_v35, %v5627_v51  ;;  %v5633_v15 = vsel %vm5532_vm12, %v9279_v2, %v5632_v46  ;;  %v5639_v8 = vsel %vm5530_vm11, %v9384_v11, %v5638_v27 }
 0x468   : > { %6774 = vmatprep.subr.bf16.mxu1 %v9794_v13  ;;  %v6779_v40 = vpack.c.bf16 %v9515_v47, %v9512_v59  ;;  %v5634_v61 = vsel %vm5534_vm13, %v9336_v32, %v5633_v15  ;;  %v5640_v23 = vsel %vm5532_vm12, %v9379_v9, %v5639_v8  ;;  %v9908_v7 = vrot.slane %v9907_v52, 4 }
 0x469   : > { %v7104_v43 = vpop.eup %7103  ;;  %v4941_v2 = vadd.f32 %v4940_v16, %v9439_v4  ;;  %v5635_v11 = vsel %vm5536_vm14, %v6235_v30, %v5634_v61  ;;  %v5641_v49 = vsel %vm5534_vm13, %v9404_v18, %v5640_v23  ;;  %v9909_v56 = vmov 0.0   ;;  %v9915_v18 = vld [vmem:[#allocation31_spill] sm:$0xff] }
 0x46a   : > { %v4981_v22 = vadd.f32 %v9908_v7, %v9907_v52  ;;  %6679 = vmatprep.mubr.msk.f32.mxu1 %vm7121_vm0, %v9909_v56  ;;  %v4961_v32 = vrot.slane %v9910_v3, 2  ;;  %v4930_v63 = vsel %vm4369_vm7, %v7104_v43, 0.0  ;;  %v5642_v9 = vsel %vm5536_vm14, %v6243_v21, %v5641_v49  ;;  %v9920_v49 = vld [vmem:[#allocation21_spill] sm:$0xff] }
 0x46b   : > { %v4968_v31 = vrot.slane %v9911_v38, 2  ;;  %v4931_v34 = vrot.slane %v4930_v63, 4  ;;  %v6783_v0 = vpack.c.bf16 %v5642_v9, %v5635_v11  ;;  %v9913_v4 = vrot.slane %v9912_v42, 2  ;;  %v9925_v9 = vld [vmem:[#allocation24_spill] sm:$0xff] }
 0x46c   : > { %v4975_v10 = vrot.slane %v9914_v57, 2  ;;  %v9916_v26 = vrot.slane %v9915_v18, 2  ;;  %v4982_v62 = vrot.slane %v4981_v22, 2  ;;  %v4942_v35 = vrot.slane %v4941_v2, 1 }
 0x46d   : > { %v4948_v16 = vadd.f32 %v9913_v4, %v9912_v42  ;;  %v4932_v48 = vadd.f32 %v4931_v34, %v4930_v63  ;;  %v4962_v58 = vadd.f32 %v4961_v32, %v9910_v3  ;;  %v4969_v19 = vadd.f32 %v4968_v31, %v9911_v38  ;;  %v9921_v3 = vld [vmem:[#allocation20_spill] sm:$0xff]  ;;  %v9923_v32 = vld [vmem:[#allocation22_spill] sm:$0xff]  ;;  %v9924_v63 = vld [vmem:[#allocation25_spill] sm:$0xff] }
 0x46e   : > { %v4955_v12 = vadd.f32 %v9916_v26, %v9915_v18  ;;  %v4976_v25 = vadd.f32 %v4975_v10, %v9914_v57  ;;  %v4983_v6 = vadd.f32 %v4982_v62, %v4981_v22  ;;  %v4943_v24 = vadd.f32 %v4942_v35, %v4941_v2  ;;  %v9926_v38 = vld [vmem:[#allocation27_spill] sm:$0xff]  ;;  %v9927_v31 = vld [vmem:[#allocation26_spill] sm:$0xff]  ;;  %v9928_v34 = vld [vmem:[#allocation29_spill] sm:$0xff] }
 0x46f   : > { %v4933_v29 = vrot.slane %v4932_v48, 2  ;;  %v4949_v28 = vrot.slane %v4948_v16, 1  ;;  %v4963_v45 = vrot.slane %v4962_v58, 1  ;;  %v4970_v53 = vrot.slane %v4969_v19, 1  ;;  %v9930_v42 = vld [vmem:[#allocation4_spill] sm:$0xff]  ;;  %v9931_v4 = vld [vmem:[#allocation3_spill] sm:$0xff] }
 0x470   : > { %v4956_v37 = vrot.slane %v4955_v12, 1  ;;  %v4977_v1 = vrot.slane %v4976_v25, 1  ;;  %v4984_v36 = vrot.slane %v4983_v6, 1  ;;  %v6197_v54 = vadd.f32 -1.0, %v4943_v24  ;;  %v9933_v57 = vld [vmem:[#allocation5_spill] sm:$0xff]  ;;  %v9934_v10 = vld [vmem:[#allocation8_spill] sm:$0xff] }
 0x471   : > { %v4934_v39 = vadd.f32 %v4933_v29, %v4932_v48  ;;  %v4950_v30 = vadd.f32 %v4949_v28, %v4948_v16  ;;  %v4964_v17 = vadd.f32 %v4963_v45, %v4962_v58  ;;  %v4971_v50 = vadd.f32 %v4970_v53, %v4969_v19  ;;  %v9932_v16 = vld [vmem:[#allocation6_spill] sm:$0xff]  ;;  %v9935_v18 = vld [vmem:[#allocation7_spill] sm:$0xff] }
 0x472   : > { %v4957_v20 = vadd.f32 %v4956_v37, %v4955_v12  ;;  %v4978_v14 = vadd.f32 %v4977_v1, %v4976_v25  ;;  %v4985_v51 = vadd.f32 %v4984_v36, %v4983_v6  ;;  %v9936_v26 = vld [vmem:[#allocation10_spill] sm:$0xff]  ;;  %v5831_v58 = vstv %s5830_s20 }
 0x473   : > { %v4935_v60 = vrot.slane %v4934_v39, 1  ;;  %v6198_v33 = vadd.f32 -1.0, %v4950_v30  ;;  %v6200_v27 = vadd.f32 -1.0, %v4964_v17  ;;  %v6201_v47 = vadd.f32 -1.0, %v4971_v50 }
 0x474   : > { %v6199_v44 = vadd.f32 -1.0, %v4957_v20  ;;  %v6202_v8 = vadd.f32 -1.0, %v4978_v14  ;;  %v6203_v23 = vadd.f32 -1.0, %v4985_v51 }
 0x475   : > { %v4936_v21 = vadd.f32 %v4935_v60, %v4934_v39 }
 0x477   : > { %v6196_v5 = vadd.f32 -1.0, %v4936_v21 }
 0x479   : > { %v5601_v46 = vsel %vm5524_vm8, %v6197_v54, %v6196_v5 }
 0x47a   : > { %v5602_v59 = vsel %vm5526_vm9, %v6198_v33, %v5601_v46 }
 0x47b   : > { %v5603_v15 = vsel %vm5528_vm10, %v6199_v44, %v5602_v59 }
 0x47c   : > { %v5604_v61 = vsel %vm5530_vm11, %v6200_v27, %v5603_v15 }
 0x47d   : > { %v5605_v43 = vsel %vm5532_vm12, %v6201_v47, %v5604_v61 }
 0x47e   : > { %v5606_v52 = vsel %vm5534_vm13, %v6202_v8, %v5605_v43 }
 0x47f   : > { %v5607_v7 = vsel %vm5536_vm14, %v6203_v23, %v5606_v52 }
 0x480   : > { %v6775_v22 = vpack.c.bf16 %v9485_v41, %v5607_v7  ;;  %v9919_v41 = vld [vmem:[#allocation9_spill] sm:$0xff] }
 0x481   : > { %v5755_v11 = vsub.s32 1, %v9919_v41 }
 0x482   : > { %6777 = vmatpush3.bf16.xpose.msk.msra.mxu1 %vm8945_vm15, %v6775_v22 }
 0x483   : > { %6778 = vmatprep.subr.bf16.mxu1 %v9794_v13 }
 0x48a   : > { %6781 = vmatpush3.bf16.xpose.msk.msra.mxu1 %vm8945_vm15, %v6779_v40  ;;  %v5394_v40 = vld [vmem:[%s9626_s4] sm:$0x3] }
 0x48b   : > { %6782 = vmatprep.subr.bf16.mxu1 %v9794_v13  ;;  %v5395_v13 = vld [vmem:[%s9627_s5] sm:$0x1]  ;;  %v5756_v56 = vrot.slane %v5394_v40, %v5755_v11  ;;  %v5752_v12 = vrot.slane %v5394_v40, %v9936_v26 }
 0x492   : > { %6785 = vmatpush3.bf16.xpose.msk.msra.mxu1 %vm8945_vm15, %v6783_v0  ;;  %v9929_v0 = vld [vmem:[#allocation28_spill] sm:$0xff] }
 0x493   : > { %6788 = vmatprep.subr.msk.bf16.mxu1 %vm9566_vm1, %v9920_v49 }
 0x499   : > { %6680 = vmatmul.mubr.msk.f32.vlgmr.msra.gmra.mrb[110].mxu1 %vm4369_vm7, %v5395_v13 }
 0x49a   : > { %6790 = vmatpush1.bf16.xpose.msra.mxu1 %v9921_v3  ;;  %6277 = vmatprep.mubr.msk.f32.mxu1 %vm991_vm5, %v5756_v56 }
 0x49b   : > { %6793 = vmatprep.subr.msk.bf16.mxu1 %vm9566_vm1, %v9922_v55 }
 0x4a2   : > { %6795 = vmatpush1.bf16.xpose.msra.mxu1 %v9923_v32 }
 0x4a3   : > { %6798 = vmatprep.subr.msk.bf16.mxu1 %vm9566_vm1, %v9924_v63 }
 0x4aa   : > { %6800 = vmatpush1.bf16.xpose.msra.mxu1 %v9925_v9 }
 0x4ab   : > { %6803 = vmatprep.subr.msk.bf16.mxu1 %vm9566_vm1, %v9926_v38 }
 0x4b2   : > { %6805 = vmatpush1.bf16.xpose.msra.mxu1 %v9927_v31 }
 0x4b3   : > { %6808 = vmatprep.subr.msk.bf16.mxu1 %vm9566_vm1, %v9928_v34 }
 0x4ba   : > { %6810 = vmatpush1.bf16.xpose.msra.mxu1 %v9929_v0 }
 0x4bb   : > { %6813 = vmatprep.subr.msk.bf16.mxu1 %vm9566_vm1, %v9930_v42 }
 0x4c2   : > { %6815 = vmatpush1.bf16.xpose.msra.mxu1 %v9931_v4 }
 0x4c3   : > { %6818 = vmatprep.subr.msk.bf16.mxu1 %vm9566_vm1, %v9932_v16 }
 0x4ca   : > { %6820 = vmatpush1.bf16.xpose.msra.mxu1 %v9933_v57 }
 0x4cb   : > { %6823 = vmatprep.subr.msk.bf16.mxu1 %vm9566_vm1, %v9934_v10 }
 0x4d2   : > { %6825 = vmatpush1.bf16.xpose.msra.mxu1 %v9935_v18 }
 0x4d9   : > { %5825 = vmatmul.mubr.f32.vlgmr.msra.gmra.mrb[112].mxu1 %v5752_v12 }
 0x56c   : > { %v5744_v62 = vpop.f32.mrb[110].mxu1 }
 0x56d   : > { %v6681_v35 = vpop.f32.mrb[111].mxu1 }
 0x5ac   : > { %v5826_v48 = vpop.f32.mrb[112].mxu1 }
 0x5ad   : > { %v5827_v19 = vadd.f32 %v5826_v48, %v5744_v62  ;;  %v5828_v29 = vpop.f32.mrb[113].mxu1 }
 0x5af   : > { %v5832_v28 = vadd.f32 %v5831_v58, %v5827_v19 }
 0x5b1   : > { %vm5833_vm2 = vcmp.ge.f32.partialorder %v5832_v28, 0.0  ;;  %v5834_v25 = vsub.f32 0.0, %v5832_v28 }
 0x5b3   : > { %v5835_v37 = vsel %vm5833_vm2, %v5834_v25, %v5832_v28 }
 0x5b4   : > { %v5836_v6 = vmul.f32 1.442695, %v5835_v37 }
 0x5b6   : > { %7105 = vpow2.f32 %v5836_v6 }
 0x5c0   : > { %v7106_v24 = vpop.eup %7105 }
 0x5c1   : > { %v5839_v39 = vadd.f32 1.0, %v7106_v24  ;;  %v5838_v53 = vsel %vm5833_vm2, 1.0, %v7106_v24 }
 0x5c3   : > { %7107 = vrcp.f32 %v5839_v39 }
 0x5cd   : > { %v7108_v45 = vpop.eup %7107 }
 0x5ce   : > { %v5841_v60 = vmul.f32 %v7108_v45, %v5838_v53 }
 0x5d0   : > { %5842 = vst [vmem:[%s277_s10] sm:$0x1] %v5841_v60 }
 0x5d1 PF: > { %s18_s26 = sadd.s32 1, %s7115_s26  }
 0x5d2   : > { %p15_p5 = scmp.ge.s32.totalorder %s18_s26, 4  }
 0x5d4   :  { %17 = sbr.rel (!%p15_p5) target bundleno = 2 (0x2), region = 80 }

</bundles_post_ra>
